<compile_context>
chip_gen: v7x
topology: tpu7x:2x2x1
jax: 0.10.0
libtpu: 0.0.40
codegen_flags: <defaults>
</compile_context>

<pallas_src>
import functools
import math

import numpy as np
import jax
import jax.numpy as jnp
from jax.experimental import pallas as pl
from jax.experimental.pallas import tpu as pltpu


def cra_kernel(x_ref, wqk_ref, wccc_ref, pool_ref, cstl2_ref, rowimg_ref,
               rep_ref, segt_ref, cstc_ref, out_ref, y_scr,
               *, num_heads, pool_tokens, pack, eps):
    f32 = jnp.float32
    bf16 = jnp.bfloat16
    H = num_heads
    Np = pool_tokens

    Bt, N, C = x_ref.shape
    BN = Bt * N
    BNp = Bt * Np
    L2 = Bt * H * Np                 # stacked attention lanes: images x heads x keys

    # ---- Bt-image token slab (leading-dim merge only, layout-preserving) ----
    x = x_ref[...].reshape(BN, C)
    x_bf = x.astype(bf16)

    # ---- fused AvgPool2d as one block-diagonal (BNp, BN) matmul -------------
    xp = jnp.dot(pool_ref[...], x_bf, preferred_element_type=f32)        # (BNp, C)

    # ---- sr (1x1 conv) + LayerNorm + GELU (elementwise in f32) --------------
    bsr = cstc_ref[pl.ds(L2 + H + 0, 1), :]
    gamma = cstc_ref[pl.ds(L2 + H + 1, 1), :]
    beta = cstc_ref[pl.ds(L2 + H + 2, 1), :]
    bproj = cstc_ref[pl.ds(L2 + H + 3, 1), :]
    xs = jnp.dot(xp.astype(bf16), wccc_ref[0], preferred_element_type=f32) + bsr
    mean = jnp.mean(xs, axis=-1, keepdims=True)
    var = jnp.mean(jnp.square(xs - mean), axis=-1, keepdims=True)
    xn = (xs - mean) * jax.lax.rsqrt(var + eps) * gamma + beta
    xg = 0.5 * xn * (1.0 + jax.lax.erf(xn * 0.7071067811865476))         # exact GELU
    xg_bf = xg.astype(bf16)

    # ---- projections (qkv_bias=False; attention scale pre-folded into Wq) ---
    qs = jnp.dot(x_bf, wqk_ref[0], preferred_element_type=f32)           # (BN, H)
    k = jnp.dot(xg_bf, wqk_ref[1], preferred_element_type=f32)           # (BNp, H)
    v = jnp.dot(xg_bf, wccc_ref[1], preferred_element_type=f32)          # (BNp, C)

    # ---- stacked lane-dense attention over Bt images x H heads x Np keys ----
    pos2 = cstl2_ref[pl.ds(0, BNp), :]            # (BNp, L2) key gather
    seg_f2 = cstl2_ref[pl.ds(BNp, H), :]          # (H, L2)   head segments
    cst_b = cstl2_ref[pl.ds(BNp, H + Bt), :]      # (H+Bt, L2) [seg_f2 ; -BIG cross-image]

    kg = jnp.dot(k.T, pos2, preferred_element_type=f32) * seg_f2         # (H, L2)

    # exact rank-1 softmax bound; softmax shift-invariance makes the global
    # (both-image) extrema still mathematically exact.
    kmax = jnp.max(k, axis=0, keepdims=True)
    kmin = jnp.min(k, axis=0, keepdims=True)
    m = jnp.maximum(qs * kmax, qs * kmin)                                # (BN, H)

    # shifted = qs@kg - m@seg_f2 - BIG*(row image != lane image), one matmul
    a_mat = jnp.concatenate([qs, -m, rowimg_ref[...]], axis=1)           # (BN, 2H+Bt)
    b_mat = jnp.concatenate([kg, cst_b], axis=0)                         # (2H+Bt, L2)
    shifted = jnp.dot(a_mat, b_mat, preferred_element_type=f32)          # (BN, L2)
    e = jnp.exp(shifted)              # <= 1 in-image, exactly 0 cross-image
    e_bf = e.astype(bf16)

    ssum = jnp.dot(e_bf, segt_ref[...], preferred_element_type=f32)      # (BN, H)
    inv = pl.reciprocal(ssum, approx=True)

    vmask = cstc_ref[pl.ds(0, L2), :]             # (L2, C) head block-diagonal mask
    head_c = cstc_ref[pl.ds(L2, H), :]            # (H, C)  head -> channel map
    v_rep = jnp.dot(rep_ref[...], v.astype(bf16), preferred_element_type=f32)  # (L2, C)
    vblk = (v_rep * vmask).astype(bf16)
    o_un = jnp.dot(e_bf, vblk, preferred_element_type=f32)               # (BN, C)
    o = o_un * jnp.dot(inv, head_c, preferred_element_type=f32)

    # ---- output projection; attn_drop / proj_drop are p=0.0 -> identity -----
    y = jnp.dot(o.astype(bf16), wccc_ref[2], preferred_element_type=f32) + bproj

    # ---- lane-dense epilogue: pack `pack` consecutive tokens per 128-lane row
    if pack > 1:
        y_scr[...] = y
        parts = [y_scr[pl.ds(q, BN // pack, pack), :] for q in range(pack)]
        y_pk = jnp.concatenate(parts, axis=1)                            # (BN/pack, pack*C)
        out_ref[...] = y_pk.reshape(Bt, N // pack, pack * C).astype(out_ref.dtype)
    else:
        out_ref[...] = y.reshape(Bt, N, C).astype(out_ref.dtype)


def channel_reduction_attention(x, h, w, params, *, num_heads=8, pool_ratio=4,
                                batch_tile=None):
    B, N, C = x.shape
    H = num_heads
    assert N == h * w and C % H == 0
    assert h % pool_ratio == 0 and w % pool_ratio == 0
    head_dim = C // H
    scale = head_dim ** (-0.5)
    hp, wp = h // pool_ratio, w // pool_ratio
    Np = hp * wp

    # Images per grid step.  2 widens the stacked attention slab to 256 lanes
    # (fills v6e/v7x's 256-wide MXU) and halves the fixed per-step overhead.
    # On v5e prefer batch_tile=1 (128-lane slab matches its 128-wide MXU).
    if batch_tile is None:
        batch_tile = 2 if B % 2 == 0 else 1
    Bt = batch_tile
    assert B % Bt == 0
    BN, BNp, L2 = Bt * N, Bt * Np, Bt * H * Np

    # Output lane packing factor: store `pack` consecutive tokens per row so
    # the output block's last dim is 128 (dense stores instead of masked).
    pack = 128 // C if (C < 128 and 128 % C == 0 and N % (128 // C) == 0) else 1

    f32, bf16 = jnp.float32, jnp.bfloat16

    # ---- weights: pre-transposed, bf16, attention scale folded into Wq ------
    wqk = jnp.stack([params["wq"].T * scale, params["wk"].T]).astype(bf16)        # (2, C, H)
    wccc = jnp.stack([params["wsr"].T, params["wv"].T, params["wproj"].T]).astype(bf16)  # (3, C, C)

    # ---- data-independent indicator constants (hoisted out of the kernel) ---
    l = np.arange(L2)
    img_l = l // (H * Np)
    head_l = (l // Np) % H
    key_l = img_l * Np + l % Np
    pos2 = (np.arange(BNp)[:, None] == key_l[None, :]).astype(np.float32)         # (BNp, L2)
    seg_f2 = (np.arange(H)[:, None] == head_l[None, :]).astype(np.float32)        # (H, L2)
    neg_big = np.where(np.arange(Bt)[:, None] == img_l[None, :],
                       0.0, -1e9).astype(np.float32)                              # (Bt, L2)
    cst_l2f = jnp.asarray(np.concatenate([pos2, seg_f2, neg_big], axis=0), f32)

    tok = np.arange(N)
    cell = np.arange(Np)
    P = ((((tok[None, :] // w) // pool_ratio) == (cell[:, None] // wp))
         & (((tok[None, :] % w) // pool_ratio) == (cell[:, None] % wp)))
    P = P.astype(np.float32) / (pool_ratio * pool_ratio)
    pool_bd = jnp.asarray(np.kron(np.eye(Bt, dtype=np.float32), P), bf16)         # (BNp, BN)

    row_img = jnp.asarray((np.arange(BN)[:, None] // N
                           == np.arange(Bt)[None, :]).astype(np.float32), f32)    # (BN, Bt)
    rep = jnp.asarray(pos2.T, bf16)                                               # (L2, BNp)
    seg_t2 = jnp.asarray(seg_f2.T, bf16)                                          # (L2, H)

    vmask = (head_l[:, None] == (np.arange(C)[None, :] // head_dim)).astype(np.float32)  # (L2, C)
    head_c = (np.arange(H)[:, None] == (np.arange(C)[None, :] // head_dim)).astype(np.float32)
    cst_cf = jnp.concatenate(
        [jnp.asarray(vmask, f32), jnp.asarray(head_c, f32),
         params["bsr"].astype(f32), params["gamma"].astype(f32),
         params["beta"].astype(f32), params["bproj"].astype(f32)], axis=0)        # (L2+H+4, C)

    kernel = functools.partial(cra_kernel, num_heads=H, pool_tokens=Np,
                               pack=pack, eps=1e-5)

    const2 = lambda b: (0, 0)
    const3 = lambda b: (0, 0, 0)
    out = pl.pallas_call(
        kernel,
        out_shape=jax.ShapeDtypeStruct((B, N // pack, pack * C), x.dtype),
        grid=(B // Bt,),
        in_specs=[
            pl.BlockSpec((Bt, N, C), lambda b: (b, 0, 0)),          # x tokens
            pl.BlockSpec((2, C, H), const3),                        # [Wq^T*scale ; Wk^T]
            pl.BlockSpec((3, C, C), const3),                        # [Wsr^T ; Wv^T ; Wproj^T]
            pl.BlockSpec((BNp, BN), const2),                        # block-diag AvgPool
            pl.BlockSpec((BNp + H + Bt, L2), const2),               # [pos2 ; seg_f2 ; -BIG]
            pl.BlockSpec((BN, Bt), const2),                         # row -> image one-hot
            pl.BlockSpec((L2, BNp), const2),                        # key replication
            pl.BlockSpec((L2, H), const2),                          # head segment sum
            pl.BlockSpec((L2 + H + 4, C), const2),                  # [vmask;head_c;bsr;gamma;beta;bproj]
        ],
        out_specs=pl.BlockSpec((Bt, N // pack, pack * C), lambda b: (b, 0, 0)),
        scratch_shapes=[pltpu.VMEM((BN, C), jnp.float32)],
        compiler_params=pltpu.CompilerParams(dimension_semantics=("parallel",)),
    )(x, wqk, wccc, pool_bd, cst_l2f, row_img, rep, seg_t2, cst_cf)

    return out.reshape(B, N, C)


def cra_reference(x, h, w, params, *, num_heads=8, pool_ratio=4):
    """Pure-JAX f32 reference mirroring the PyTorch forward (sanity check)."""
    B, N, C = x.shape
    head_dim = C // num_heads
    scale = head_dim ** (-0.5)
    hp, wp = h // pool_ratio, w // pool_ratio
    xp = x.reshape(B, hp, pool_ratio, wp, pool_ratio, C).mean(axis=(2, 4)).reshape(B, hp * wp, C)
    xs = jnp.einsum('bnc,dc->bnd', xp, params['wsr']) + params['bsr']
    mean = xs.mean(-1, keepdims=True)
    var = ((xs - mean) ** 2).mean(-1, keepdims=True)
    xn = (xs - mean) / jnp.sqrt(var + 1e-5) * params['gamma'] + params['beta']
    xg = 0.5 * xn * (1.0 + jax.lax.erf(xn * 0.7071067811865476))
    q = jnp.einsum('bnc,hc->bnh', x, params['wq'])
    k = jnp.einsum('bmc,hc->bmh', xg, params['wk'])
    v = jnp.einsum('bmc,dc->bmd', xg, params['wv']).reshape(B, -1, num_heads, head_dim)
    logits = jnp.einsum('bih,bjh->bhij', q, k) * scale
    p = jax.nn.softmax(logits, axis=-1)
    out = jnp.einsum('bhij,bjhd->bihd', p, v).reshape(B, N, C)
    return jnp.einsum('bnc,dc->bnd', out, params['wproj']) + params['bproj']


def make_params(key, dim1, num_heads):
    ks = jax.random.split(key, 5)
    std = 0.02
    return {
        "wq": (jax.random.normal(ks[0], (num_heads, dim1), jnp.float32) * std),
        "wk": (jax.random.normal(ks[1], (num_heads, dim1), jnp.float32) * std),
        "wv": (jax.random.normal(ks[2], (dim1, dim1), jnp.float32) * std),
        "wproj": (jax.random.normal(ks[3], (dim1, dim1), jnp.float32) * std),
        "bproj": jnp.zeros((1, dim1), jnp.float32),
        # Conv2d(dim1, dim1, 1): fan_out = 1*1*dim1
        "wsr": (jax.random.normal(ks[4], (dim1, dim1), jnp.float32)
                * math.sqrt(2.0 / dim1)),
        "bsr": jnp.zeros((1, dim1), jnp.float32),
        "gamma": jnp.ones((1, dim1), jnp.float32),
        "beta": jnp.zeros((1, dim1), jnp.float32),
    }


if __name__ == "__main__":
    B, C, h, w = 4, 32, 16, 16
    num_heads, pool_ratio = 8, 4
    N = h * w

    key = jax.random.PRNGKey(0)
    kx, kp = jax.random.split(key)
    x = jax.random.normal(kx, (B, N, C), jnp.float32)
    params = make_params(kp, C, num_heads)

    out = channel_reduction_attention(x, h, w, params,
                                      num_heads=num_heads, pool_ratio=pool_ratio)
    out = jax.block_until_ready(out)

    ref = cra_reference(x, h, w, params, num_heads=num_heads, pool_ratio=pool_ratio)
    assert out.shape == (B, N, C)
    assert jnp.allclose(out, ref, atol=1e-2, rtol=1e-2), "mismatch vs reference"

    print("KERNEL_OK")
</pallas_src>

<mosaic_0001>
module attributes {stable_mosaic.version = 11 : i64} {
  func.func @cra_kernel(%arg0: i32, %arg1: memref<2x256x32xf32, #tpu.memory_space<vmem>>, %arg2: memref<2x32x8xbf16, #tpu.memory_space<vmem>>, %arg3: memref<3x32x32xbf16, #tpu.memory_space<vmem>>, %arg4: memref<32x512xbf16, #tpu.memory_space<vmem>>, %arg5: memref<42x256xf32, #tpu.memory_space<vmem>>, %arg6: memref<512x2xf32, #tpu.memory_space<vmem>>, %arg7: memref<256x32xbf16, #tpu.memory_space<vmem>>, %arg8: memref<256x8xbf16, #tpu.memory_space<vmem>>, %arg9: memref<268x32xf32, #tpu.memory_space<vmem>>, %arg10: memref<2x64x128xf32, #tpu.memory_space<vmem>>, %arg11: memref<512x32xf32, #tpu.memory_space<vmem>>) attributes {dimension_semantics = [#tpu.dimension_semantics<parallel>], iteration_bounds = array<i64: 2>, scalar_prefetch = 0 : i64, scratch_operands = 1 : i64, tpu.core_type = #tpu.core_type<tc>, window_params = [{transform_indices = @transform_0, window_bounds = array<i64: 2, 256, 32>}, {pipeline_mode = #tpu.pipeline_mode<synchronous>, transform_indices = @transform_1, window_bounds = array<i64: 2, 32, 8>}, {pipeline_mode = #tpu.pipeline_mode<synchronous>, transform_indices = @transform_2, window_bounds = array<i64: 3, 32, 32>}, {pipeline_mode = #tpu.pipeline_mode<synchronous>, transform_indices = @transform_3, window_bounds = array<i64: 32, 512>}, {pipeline_mode = #tpu.pipeline_mode<synchronous>, transform_indices = @transform_4, window_bounds = array<i64: 42, 256>}, {pipeline_mode = #tpu.pipeline_mode<synchronous>, transform_indices = @transform_5, window_bounds = array<i64: 512, 2>}, {pipeline_mode = #tpu.pipeline_mode<synchronous>, transform_indices = @transform_6, window_bounds = array<i64: 256, 32>}, {pipeline_mode = #tpu.pipeline_mode<synchronous>, transform_indices = @transform_7, window_bounds = array<i64: 256, 8>}, {pipeline_mode = #tpu.pipeline_mode<synchronous>, transform_indices = @transform_8, window_bounds = array<i64: 268, 32>}, {transform_indices = @transform_9, window_bounds = array<i64: 2, 64, 128>}]} {
    %c0 = arith.constant 0 : index
    %c0_0 = arith.constant 0 : index
    %c0_1 = arith.constant 0 : index
    %0 = vector.load %arg1[%c0, %c0_0, %c0_1] : memref<2x256x32xf32, #tpu.memory_space<vmem>>, vector<2x256x32xf32>
    %1 = vector.shape_cast %0 : vector<2x256x32xf32> to vector<512x32xf32>
    %2 = arith.truncf %1 : vector<512x32xf32> to vector<512x32xbf16>
    %c0_2 = arith.constant 0 : index
    %c0_3 = arith.constant 0 : index
    %3 = vector.load %arg4[%c0_2, %c0_3] : memref<32x512xbf16, #tpu.memory_space<vmem>>, vector<32x512xbf16>
    %cst = arith.constant dense<0.000000e+00> : vector<32x32xf32>
    %4 = tpu.matmul %3, %2, %cst {dimension_numbers = #tpu.dot_dimension_numbers<[1], [0], [0], [1], [0, 0, 1, 1], [], []>} : vector<32x512xbf16>, vector<512x32xbf16>, vector<32x32xf32> -> vector<32x32xf32>
    %c264 = arith.constant 264 : index
    %c0_4 = arith.constant 0 : index
    %5 = vector.load %arg9[%c264, %c0_4] : memref<268x32xf32, #tpu.memory_space<vmem>>, vector<1x32xf32>
    %c265 = arith.constant 265 : index
    %c0_5 = arith.constant 0 : index
    %6 = vector.load %arg9[%c265, %c0_5] : memref<268x32xf32, #tpu.memory_space<vmem>>, vector<1x32xf32>
    %c266 = arith.constant 266 : index
    %c0_6 = arith.constant 0 : index
    %7 = vector.load %arg9[%c266, %c0_6] : memref<268x32xf32, #tpu.memory_space<vmem>>, vector<1x32xf32>
    %c267 = arith.constant 267 : index
    %c0_7 = arith.constant 0 : index
    %8 = vector.load %arg9[%c267, %c0_7] : memref<268x32xf32, #tpu.memory_space<vmem>>, vector<1x32xf32>
    %9 = arith.truncf %4 : vector<32x32xf32> to vector<32x32xbf16>
    %c0_8 = arith.constant 0 : index
    %c0_9 = arith.constant 0 : index
    %c0_10 = arith.constant 0 : index
    %10 = vector.load %arg3[%c0_8, %c0_9, %c0_10] : memref<3x32x32xbf16, #tpu.memory_space<vmem>>, vector<1x32x32xbf16>
    %11 = vector.shape_cast %10 : vector<1x32x32xbf16> to vector<32x32xbf16>
    %cst_11 = arith.constant dense<0.000000e+00> : vector<32x32xf32>
    %12 = tpu.matmul %9, %11, %cst_11 {dimension_numbers = #tpu.dot_dimension_numbers<[1], [0], [0], [1], [0, 0, 1, 1], [], []>} : vector<32x32xbf16>, vector<32x32xbf16>, vector<32x32xf32> -> vector<32x32xf32>
    %13 = vector.broadcast %5 : vector<1x32xf32> to vector<32x32xf32>
    %14 = arith.addf %12, %13 : vector<32x32xf32>
    %cst_12 = arith.constant dense<0.000000e+00> : vector<32xf32>
    %15 = vector.multi_reduction <add>, %14, %cst_12 [1] : vector<32x32xf32> to vector<32xf32>
    %16 = vector.shape_cast %15 : vector<32xf32> to vector<32x1xf32>
    %cst_13 = arith.constant 3.200000e+01 : f32
    %17 = vector.broadcast %cst_13 : f32 to vector<32x1xf32>
    %18 = arith.divf %16, %17 : vector<32x1xf32>
    %19 = vector.broadcast %18 : vector<32x1xf32> to vector<32x32xf32>
    %20 = arith.subf %14, %19 : vector<32x32xf32>
    %21 = arith.mulf %20, %20 : vector<32x32xf32>
    %cst_14 = arith.constant dense<0.000000e+00> : vector<32xf32>
    %22 = vector.multi_reduction <add>, %21, %cst_14 [1] : vector<32x32xf32> to vector<32xf32>
    %23 = vector.shape_cast %22 : vector<32xf32> to vector<32x1xf32>
    %cst_15 = arith.constant 3.200000e+01 : f32
    %24 = vector.broadcast %cst_15 : f32 to vector<32x1xf32>
    %25 = arith.divf %23, %24 : vector<32x1xf32>
    %26 = vector.broadcast %18 : vector<32x1xf32> to vector<32x32xf32>
    %27 = arith.subf %14, %26 : vector<32x32xf32>
    %cst_16 = arith.constant 9.99999974E-6 : f32
    %28 = vector.broadcast %cst_16 : f32 to vector<32x1xf32>
    %29 = arith.addf %25, %28 : vector<32x1xf32>
    %30 = math.rsqrt %29 : vector<32x1xf32>
    %31 = vector.broadcast %30 : vector<32x1xf32> to vector<32x32xf32>
    %32 = arith.mulf %27, %31 : vector<32x32xf32>
    %33 = vector.broadcast %6 : vector<1x32xf32> to vector<32x32xf32>
    %34 = arith.mulf %32, %33 : vector<32x32xf32>
    %35 = vector.broadcast %7 : vector<1x32xf32> to vector<32x32xf32>
    %36 = arith.addf %34, %35 : vector<32x32xf32>
    %cst_17 = arith.constant 5.000000e-01 : f32
    %37 = vector.broadcast %cst_17 : f32 to vector<32x32xf32>
    %38 = arith.mulf %37, %36 : vector<32x32xf32>
    %cst_18 = arith.constant 0.707106769 : f32
    %39 = vector.broadcast %cst_18 : f32 to vector<32x32xf32>
    %40 = arith.mulf %36, %39 : vector<32x32xf32>
    %41 = math.erf %40 : vector<32x32xf32>
    %cst_19 = arith.constant 1.000000e+00 : f32
    %42 = vector.broadcast %cst_19 : f32 to vector<32x32xf32>
    %43 = arith.addf %42, %41 : vector<32x32xf32>
    %44 = arith.mulf %38, %43 : vector<32x32xf32>
    %45 = arith.truncf %44 : vector<32x32xf32> to vector<32x32xbf16>
    %c0_20 = arith.constant 0 : index
    %c0_21 = arith.constant 0 : index
    %c0_22 = arith.constant 0 : index
    %46 = vector.load %arg2[%c0_20, %c0_21, %c0_22] : memref<2x32x8xbf16, #tpu.memory_space<vmem>>, vector<1x32x8xbf16>
    %47 = vector.shape_cast %46 : vector<1x32x8xbf16> to vector<32x8xbf16>
    %cst_23 = arith.constant dense<0.000000e+00> : vector<512x8xf32>
    %48 = tpu.matmul %2, %47, %cst_23 {dimension_numbers = #tpu.dot_dimension_numbers<[1], [0], [0], [1], [0, 0, 1, 1], [], []>} : vector<512x32xbf16>, vector<32x8xbf16>, vector<512x8xf32> -> vector<512x8xf32>
    %c1 = arith.constant 1 : index
    %c0_24 = arith.constant 0 : index
    %c0_25 = arith.constant 0 : index
    %49 = vector.load %arg2[%c1, %c0_24, %c0_25] : memref<2x32x8xbf16, #tpu.memory_space<vmem>>, vector<1x32x8xbf16>
    %50 = vector.shape_cast %49 : vector<1x32x8xbf16> to vector<32x8xbf16>
    %cst_26 = arith.constant dense<0.000000e+00> : vector<32x8xf32>
    %51 = tpu.matmul %45, %50, %cst_26 {dimension_numbers = #tpu.dot_dimension_numbers<[1], [0], [0], [1], [0, 0, 1, 1], [], []>} : vector<32x32xbf16>, vector<32x8xbf16>, vector<32x8xf32> -> vector<32x8xf32>
    %c1_27 = arith.constant 1 : index
    %c0_28 = arith.constant 0 : index
    %c0_29 = arith.constant 0 : index
    %52 = vector.load %arg3[%c1_27, %c0_28, %c0_29] : memref<3x32x32xbf16, #tpu.memory_space<vmem>>, vector<1x32x32xbf16>
    %53 = vector.shape_cast %52 : vector<1x32x32xbf16> to vector<32x32xbf16>
    %cst_30 = arith.constant dense<0.000000e+00> : vector<32x32xf32>
    %54 = tpu.matmul %45, %53, %cst_30 {dimension_numbers = #tpu.dot_dimension_numbers<[1], [0], [0], [1], [0, 0, 1, 1], [], []>} : vector<32x32xbf16>, vector<32x32xbf16>, vector<32x32xf32> -> vector<32x32xf32>
    %c0_31 = arith.constant 0 : index
    %c0_32 = arith.constant 0 : index
    %55 = vector.load %arg5[%c0_31, %c0_32] : memref<42x256xf32, #tpu.memory_space<vmem>>, vector<32x256xf32>
    %c32 = arith.constant 32 : index
    %c0_33 = arith.constant 0 : index
    %56 = vector.load %arg5[%c32, %c0_33] : memref<42x256xf32, #tpu.memory_space<vmem>>, vector<8x256xf32>
    %c32_34 = arith.constant 32 : index
    %c0_35 = arith.constant 0 : index
    %57 = vector.load %arg5[%c32_34, %c0_35] : memref<42x256xf32, #tpu.memory_space<vmem>>, vector<10x256xf32>
    %58 = tpu.transpose %51, [1, 0] : vector<32x8xf32> -> vector<8x32xf32>
    %cst_36 = arith.constant dense<0.000000e+00> : vector<8x256xf32>
    %59 = tpu.matmul %58, %55, %cst_36 {dimension_numbers = #tpu.dot_dimension_numbers<[1], [0], [0], [1], [0, 0, 1, 1], [], []>} : vector<8x32xf32>, vector<32x256xf32>, vector<8x256xf32> -> vector<8x256xf32>
    %60 = arith.mulf %59, %56 : vector<8x256xf32>
    %cst_37 = arith.constant dense<0xFF800000> : vector<8xf32>
    %61 = vector.multi_reduction <maximumf>, %51, %cst_37 [0] : vector<32x8xf32> to vector<8xf32>
    %62 = vector.shape_cast %61 : vector<8xf32> to vector<1x8xf32>
    %cst_38 = arith.constant dense<0x7F800000> : vector<8xf32>
    %63 = vector.multi_reduction <minimumf>, %51, %cst_38 [0] : vector<32x8xf32> to vector<8xf32>
    %64 = vector.shape_cast %63 : vector<8xf32> to vector<1x8xf32>
    %65 = vector.broadcast %62 : vector<1x8xf32> to vector<512x8xf32>
    %66 = arith.mulf %48, %65 : vector<512x8xf32>
    %67 = vector.broadcast %64 : vector<1x8xf32> to vector<512x8xf32>
    %68 = arith.mulf %48, %67 : vector<512x8xf32>
    %69 = arith.maximumf %66, %68 : vector<512x8xf32>
    %cst_39 = arith.constant 0.000000e+00 : f32
    %70 = vector.broadcast %cst_39 : f32 to vector<512x8xf32>
    %71 = arith.subf %70, %69 : vector<512x8xf32>
    %c0_40 = arith.constant 0 : index
    %c0_41 = arith.constant 0 : index
    %72 = vector.load %arg6[%c0_40, %c0_41] : memref<512x2xf32, #tpu.memory_space<vmem>>, vector<512x2xf32>
    %73 = tpu.concatenate %48, %71, %72 in 1 : vector<512x8xf32>, vector<512x8xf32>, vector<512x2xf32> -> vector<512x18xf32>
    %74 = tpu.concatenate %60, %57 in 0 : vector<8x256xf32>, vector<10x256xf32> -> vector<18x256xf32>
    %cst_42 = arith.constant dense<0.000000e+00> : vector<512x256xf32>
    %75 = tpu.matmul %73, %74, %cst_42 {dimension_numbers = #tpu.dot_dimension_numbers<[1], [0], [0], [1], [0, 0, 1, 1], [], []>} : vector<512x18xf32>, vector<18x256xf32>, vector<512x256xf32> -> vector<512x256xf32>
    %76 = math.exp %75 : vector<512x256xf32>
    %77 = arith.truncf %76 : vector<512x256xf32> to vector<512x256xbf16>
    %c0_43 = arith.constant 0 : index
    %c0_44 = arith.constant 0 : index
    %78 = vector.load %arg8[%c0_43, %c0_44] : memref<256x8xbf16, #tpu.memory_space<vmem>>, vector<256x8xbf16>
    %cst_45 = arith.constant dense<0.000000e+00> : vector<512x8xf32>
    %79 = tpu.matmul %77, %78, %cst_45 {dimension_numbers = #tpu.dot_dimension_numbers<[1], [0], [0], [1], [0, 0, 1, 1], [], []>} : vector<512x256xbf16>, vector<256x8xbf16>, vector<512x8xf32> -> vector<512x8xf32>
    %80 = tpu.reciprocal %79 {approx = true} : vector<512x8xf32> -> vector<512x8xf32>
    %c0_46 = arith.constant 0 : index
    %c0_47 = arith.constant 0 : index
    %81 = vector.load %arg9[%c0_46, %c0_47] : memref<268x32xf32, #tpu.memory_space<vmem>>, vector<256x32xf32>
    %c256 = arith.constant 256 : index
    %c0_48 = arith.constant 0 : index
    %82 = vector.load %arg9[%c256, %c0_48] : memref<268x32xf32, #tpu.memory_space<vmem>>, vector<8x32xf32>
    %c0_49 = arith.constant 0 : index
    %c0_50 = arith.constant 0 : index
    %83 = vector.load %arg7[%c0_49, %c0_50] : memref<256x32xbf16, #tpu.memory_space<vmem>>, vector<256x32xbf16>
    %84 = arith.truncf %54 : vector<32x32xf32> to vector<32x32xbf16>
    %cst_51 = arith.constant dense<0.000000e+00> : vector<256x32xf32>
    %85 = tpu.matmul %83, %84, %cst_51 {dimension_numbers = #tpu.dot_dimension_numbers<[1], [0], [0], [1], [0, 0, 1, 1], [], []>} : vector<256x32xbf16>, vector<32x32xbf16>, vector<256x32xf32> -> vector<256x32xf32>
    %86 = arith.mulf %85, %81 : vector<256x32xf32>
    %87 = arith.truncf %86 : vector<256x32xf32> to vector<256x32xbf16>
    %cst_52 = arith.constant dense<0.000000e+00> : vector<512x32xf32>
    %88 = tpu.matmul %77, %87, %cst_52 {dimension_numbers = #tpu.dot_dimension_numbers<[1], [0], [0], [1], [0, 0, 1, 1], [], []>} : vector<512x256xbf16>, vector<256x32xbf16>, vector<512x32xf32> -> vector<512x32xf32>
    %cst_53 = arith.constant dense<0.000000e+00> : vector<512x32xf32>
    %89 = tpu.matmul %80, %82, %cst_53 {dimension_numbers = #tpu.dot_dimension_numbers<[1], [0], [0], [1], [0, 0, 1, 1], [], []>} : vector<512x8xf32>, vector<8x32xf32>, vector<512x32xf32> -> vector<512x32xf32>
    %90 = arith.mulf %88, %89 : vector<512x32xf32>
    %91 = arith.truncf %90 : vector<512x32xf32> to vector<512x32xbf16>
    %c2 = arith.constant 2 : index
    %c0_54 = arith.constant 0 : index
    %c0_55 = arith.constant 0 : index
    %92 = vector.load %arg3[%c2, %c0_54, %c0_55] : memref<3x32x32xbf16, #tpu.memory_space<vmem>>, vector<1x32x32xbf16>
    %93 = vector.shape_cast %92 : vector<1x32x32xbf16> to vector<32x32xbf16>
    %cst_56 = arith.constant dense<0.000000e+00> : vector<512x32xf32>
    %94 = tpu.matmul %91, %93, %cst_56 {dimension_numbers = #tpu.dot_dimension_numbers<[1], [0], [0], [1], [0, 0, 1, 1], [], []>} : vector<512x32xbf16>, vector<32x32xbf16>, vector<512x32xf32> -> vector<512x32xf32>
    %95 = vector.broadcast %8 : vector<1x32xf32> to vector<512x32xf32>
    %96 = arith.addf %94, %95 : vector<512x32xf32>
    %c0_57 = arith.constant 0 : index
    %c0_58 = arith.constant 0 : index
    %97 = vector.load %arg11[%c0_57, %c0_58] : memref<512x32xf32, #tpu.memory_space<vmem>>, vector<512x32xf32>
    tpu.vector_store %arg11[%c0_57, %c0_58], %96 {strides = array<i32>} : memref<512x32xf32, #tpu.memory_space<vmem>>, vector<512x32xf32>,
    %c0_59 = arith.constant 0 : index
    %c0_60 = arith.constant 0 : index
    %98 = tpu.strided_load %arg11[%c0_59, %c0_60] {strides = array<i32: 4, 1>} : memref<512x32xf32, #tpu.memory_space<vmem>>, vector<128x32xf32>
    %c1_61 = arith.constant 1 : index
    %c0_62 = arith.constant 0 : index
    %99 = tpu.strided_load %arg11[%c1_61, %c0_62] {strides = array<i32: 4, 1>} : memref<512x32xf32, #tpu.memory_space<vmem>>, vector<128x32xf32>
    %c2_63 = arith.constant 2 : index
    %c0_64 = arith.constant 0 : index
    %100 = tpu.strided_load %arg11[%c2_63, %c0_64] {strides = array<i32: 4, 1>} : memref<512x32xf32, #tpu.memory_space<vmem>>, vector<128x32xf32>
    %c3 = arith.constant 3 : index
    %c0_65 = arith.constant 0 : index
    %101 = tpu.strided_load %arg11[%c3, %c0_65] {strides = array<i32: 4, 1>} : memref<512x32xf32, #tpu.memory_space<vmem>>, vector<128x32xf32>
    %102 = tpu.concatenate %98, %99, %100, %101 in 1 : vector<128x32xf32>, vector<128x32xf32>, vector<128x32xf32>, vector<128x32xf32> -> vector<128x128xf32>
    %103 = vector.shape_cast %102 : vector<128x128xf32> to vector<2x64x128xf32>
    %c0_66 = arith.constant 0 : index
    %c0_67 = arith.constant 0 : index
    %c0_68 = arith.constant 0 : index
    %104 = vector.load %arg10[%c0_66, %c0_67, %c0_68] : memref<2x64x128xf32, #tpu.memory_space<vmem>>, vector<2x64x128xf32>
    tpu.vector_store %arg10[%c0_66, %c0_67, %c0_68], %103 {strides = array<i32>} : memref<2x64x128xf32, #tpu.memory_space<vmem>>, vector<2x64x128xf32>,
    return
  }
  func.func @transform_0(%arg0: i32) -> (i32, i32, i32) {
    %c0_i32 = arith.constant 0 : i32
    %c0_i32_0 = arith.constant 0 : i32
    %c0_i32_1 = arith.constant 0 : i32
    return %arg0, %c0_i32, %c0_i32_0 : i32, i32, i32
  }
  func.func @transform_1(%arg0: i32) -> (i32, i32, i32) {
    %c0_i32 = arith.constant 0 : i32
    %c0_i32_0 = arith.constant 0 : i32
    %c0_i32_1 = arith.constant 0 : i32
    %c0_i32_2 = arith.constant 0 : i32
    return %c0_i32, %c0_i32_0, %c0_i32_1 : i32, i32, i32
  }
  func.func @transform_2(%arg0: i32) -> (i32, i32, i32) {
    %c0_i32 = arith.constant 0 : i32
    %c0_i32_0 = arith.constant 0 : i32
    %c0_i32_1 = arith.constant 0 : i32
    %c0_i32_2 = arith.constant 0 : i32
    return %c0_i32, %c0_i32_0, %c0_i32_1 : i32, i32, i32
  }
  func.func @transform_3(%arg0: i32) -> (i32, i32) {
    %c0_i32 = arith.constant 0 : i32
    %c0_i32_0 = arith.constant 0 : i32
    %c0_i32_1 = arith.constant 0 : i32
    return %c0_i32, %c0_i32_0 : i32, i32
  }
  func.func @transform_4(%arg0: i32) -> (i32, i32) {
    %c0_i32 = arith.constant 0 : i32
    %c0_i32_0 = arith.constant 0 : i32
    %c0_i32_1 = arith.constant 0 : i32
    return %c0_i32, %c0_i32_0 : i32, i32
  }
  func.func @transform_5(%arg0: i32) -> (i32, i32) {
    %c0_i32 = arith.constant 0 : i32
    %c0_i32_0 = arith.constant 0 : i32
    %c0_i32_1 = arith.constant 0 : i32
    return %c0_i32, %c0_i32_0 : i32, i32
  }
  func.func @transform_6(%arg0: i32) -> (i32, i32) {
    %c0_i32 = arith.constant 0 : i32
    %c0_i32_0 = arith.constant 0 : i32
    %c0_i32_1 = arith.constant 0 : i32
    return %c0_i32, %c0_i32_0 : i32, i32
  }
  func.func @transform_7(%arg0: i32) -> (i32, i32) {
    %c0_i32 = arith.constant 0 : i32
    %c0_i32_0 = arith.constant 0 : i32
    %c0_i32_1 = arith.constant 0 : i32
    return %c0_i32, %c0_i32_0 : i32, i32
  }
  func.func @transform_8(%arg0: i32) -> (i32, i32) {
    %c0_i32 = arith.constant 0 : i32
    %c0_i32_0 = arith.constant 0 : i32
    %c0_i32_1 = arith.constant 0 : i32
    return %c0_i32, %c0_i32_0 : i32, i32
  }
  func.func @transform_9(%arg0: i32) -> (i32, i32, i32) {
    %c0_i32 = arith.constant 0 : i32
    %c0_i32_0 = arith.constant 0 : i32
    %c0_i32_1 = arith.constant 0 : i32
    return %arg0, %c0_i32, %c0_i32_0 : i32, i32, i32
  }
}

</mosaic_0001>

<bundles_post_ra>
// kernel: tpu_custom_call.1
= control target key start
LH: loop header
LB: loop body
LE: loop exit
PB: predicated region body
PF: predicated region fallthrough
CT: control target
= control target key end

     0   :  { %14 = vsyncpa [#allocation4], 0  ;;  %s10938_s0 = inlined_call_operand.vmem [shape: f32[4,256,32], index: 0, kind: input, shape index: {}]   ;;  %s10939_s1 = inlined_call_operand.vmem [shape: bf16[2,32,8], index: 1, kind: input, shape index: {}]   ;;  %s10940_s2 = inlined_call_operand.vmem [shape: bf16[3,32,32], index: 2, kind: input, shape index: {}]   ;;  %s10941_s3 = inlined_call_operand.vmem [shape: bf16[32,512], index: 3, kind: input, shape index: {}]   ;;  %s10942_s4 = inlined_call_operand.vmem [shape: f32[42,256], index: 4, kind: input, shape index: {}]   ;;  %s10943_s5 = inlined_call_operand.vmem [shape: f32[512,2], index: 5, kind: input, shape index: {}]   ;;  %s10944_s6 = inlined_call_operand.vmem [shape: bf16[256,32], index: 6, kind: input, shape index: {}]   ;;  %s10945_s7 = inlined_call_operand.vmem [shape: bf16[256,8], index: 7, kind: input, shape index: {}]   ;;  %s10946_s8 = inlined_call_operand.vmem [shape: f32[268,32], index: 8, kind: input, shape index: {}]   ;;  %s10947_s9 = inlined_call_operand.hbm [shape: f32[4,64,128], index: 9, kind: output, shape index: {}]  }
   0x1   :  { %16 = vsyncpa [#allocation4 + $0x1], 0  ;;  %s7601_s30 = smov 0   ;;  %s7603_s10 = smov 0  }
   0x2   :  { %s7605_s11 = smov 0   ;;  %s7607_s12 = smov 0  }
   0x3 LB: > { %s7622_s13 = sadd.s32 4294967295, %s7540_s12   ;;  %s6148_s14 = sadd.s32 4294967294, %s7540_s12   ;;  %s7540_s12 = sphi %s7607_s12, %s11547_s12   ;;  %s7536_s11 = sphi %s7605_s11, %s11546_s11   ;;  %s7532_s10 = sphi %s7603_s10, %s11545_s10   ;;  %s7528_s30 = sphi %s7601_s30, %s11544_s30  }
   0x4   : > { %s7626_s15 = sadd.s32 1, %s7540_s12   ;;  %s223_s16 = sadd.s32 1, %s7536_s11 }
   0x5   : > { %s220_s17 = ssub.s32 %s7540_s12, %s7626_s15  ;;  %p233_p0 = scmp.ne.s32.totalorder %s7536_s11, %s7532_s10 }
   0x6   : > { %p221_p1 = scmp.eq.s32.totalorder %s220_s17, 0  ;;  %p234_p2 = scmp.eq.s32.totalorder %s7622_s13, 1 }
   0x7   : > { %p239_p3 = scmp.ne.s32.totalorder %s7532_s10, %s7528_s30  ;;  %p240_p4 = scmp.eq.s32.totalorder %s6148_s14, 1 }
   0x8   : > { %s7637_s18 = scalar_select %p221_p1, %s7536_s11, %s223_s16  }
   0x9   : > { %p7639_p5 = por %p234_p2, %p233_p0  ;;  %p7643_p6 = por %p240_p4, %p239_p3 }
   0xa   : > { %p6151_p7 = scmp.ge.s32.totalorder %s7540_s12, 1  ;;  %p292_p8 = scmp.lt.s32.totalorder %s7540_s12, 3 }
   0xc   : > { %p293_p9 = pnand %p6151_p7, %p292_p8 }
   0xe   : > { %296 = sbr.rel (%p293_p9) target bundleno = 2782 (0xade), region = 56 }
  0x15   : > { %s6153_s21 = sshll.u32 %s7622_s13, 1  ;;  %v7026_v0 = vld [vmem:[%s10941_s3 + $0x4] ss:$16 sps:$4 sm:$0xff]   ;;  %v7029_v1 = vld [vmem:[%s10941_s3 + $0xc] ss:$16 sps:$4 sm:$0xff]   ;;  %vm606_vm0 = vcmask 261120  }
  0x16   : > { %p330_p10 = scmp.lt.s32.totalorder %s6153_s21, 3  ;;  %514 = vmatprep.mubr.bf16.mxu0 %v7026_v0  ;;  %563 = vmatprep.mubr.bf16.mxu1 %v7029_v1  ;;  %s7542_s24 = smov 16   ;;  %vm1412_vm1 = vcmask 64512   ;;  %vm2593_vm2 = vcmask 1041408   ;;  %vm2335_vm3 = vcmask 130048   ;;  %vm2400_vm4 = vcmask 146432  }
  0x17   : > { %s7544_s17 = smov 8   ;;  %s7546_s14 = smov 32   ;;  %vm6021_vm5 = vcmask 523264   ;;  %vm6038_vm6 = vcmask 785408  }
  0x18   : > { %s11549_s21 = smov (!%p330_p10, %s6153_s21), 3  ;;  %s7547_s16 = smov 64  }
  0x19   : > { %s6445_s26 = sshll.u32 %s11549_s21, 8  ;;  %s7548_s21 = smov 96  }
  0x1a   : > { %s7659_s29 = scalar_lea.vmem %s10938_s0, %s6445_s26  ;;  %s326_s22 = sand.u32 1, %s7532_s10  }
  0x1b   : > { %v354_v2 = vld [vmem:[%s7659_s29 + $0x80] sm:$0xff]  ;;  %v355_v3 = vld [vmem:[%s7659_s29 + $0x88] sm:$0xff]  ;;  %v356_v13 = vld [vmem:[%s7659_s29 + $0x90] sm:$0xff]  ;;  %s6152_s23 = sshll.u32 %s326_s22, 7  ;;  %s6447_s26 = sshll.u32 %s7622_s13, 11 }
  0x1c   : > { %v386_v4 = vld [vmem:[%s7659_s29 + $0x180] sm:$0xff]  ;;  %v7664_v5 = vpack.c.bf16 %v355_v3, %v354_v2  ;;  %v387_v6 = vld [vmem:[%s7659_s29 + $0x188] sm:$0xff]  ;;  %v357_v15 = vld [vmem:[%s7659_s29 + $0x98] sm:$0xff]  ;;  %s10742_s25 = scalar_lea.vmem [#allocation3], %s6152_s23  ;;  %s10896_s13 = scalar_lea.sflag [#allocation4], %s326_s22 }
  0x1d   : > { %v338_v7 = vld [vmem:[%s7659_s29] sm:$0xff]  ;;  %v339_v8 = vld [vmem:[%s7659_s29 + $0x8] sm:$0xff]  ;;  %v7669_v9 = vpack.c.bf16 %v387_v6, %v386_v4  ;;  %v388_v16 = vld [vmem:[%s7659_s29 + $0x190] sm:$0xff]  ;;  %v7684_v18 = vpack.c.bf16 %v357_v15, %v356_v13  ;;  %s6086_s27 = sshll.u32 %s10742_s25, 4  ;;  %s10890_s27 = int_to_ptr.vmem [resolvable:$true] %s6086_s27 }
  0x1e   : > { %v7671_v10 = vpack.c.bf16 %v339_v8, %v338_v7  ;;  %v370_v11 = vld [vmem:[%s7659_s29 + $0x100] sm:$0xff]  ;;  %v371_v12 = vld [vmem:[%s7659_s29 + $0x108] sm:$0xff]  ;;  %6448 = vmatprep.subr.bf16.mxu0 %v7664_v5  ;;  %v389_v17 = vld [vmem:[%s7659_s29 + $0x198] sm:$0xff] }
  0x1f   : > { %v7677_v14 = vpack.c.bf16 %v371_v12, %v370_v11  ;;  %6476 = vmatprep.subr.bf16.mxu1 %v7669_v9  ;;  %v7686_v19 = vpack.c.bf16 %v389_v17, %v388_v16  ;;  %v340_v20 = vld [vmem:[%s7659_s29 + $0x10] sm:$0xff]  ;;  %v341_v21 = vld [vmem:[%s7659_s29 + $0x18] sm:$0xff]  ;;  %v358_v25 = vld [vmem:[%s7659_s29 + $0xa0] sm:$0xff] }
  0x20   : > { %6449 = vmatpush3.bf16.msra.mxu0 %v7671_v10  ;;  %v372_v22 = vld [vmem:[%s7659_s29 + $0x110] sm:$0xff]  ;;  %v7692_v23 = vpack.c.bf16 %v341_v21, %v340_v20  ;;  %v373_v24 = vld [vmem:[%s7659_s29 + $0x118] sm:$0xff]  ;;  %v359_v26 = vld [vmem:[%s7659_s29 + $0xa8] sm:$0xff] }
  0x21   : > { %6477 = vmatpush3.bf16.msra.mxu1 %v7677_v14  ;;  %6450 = vmatprep.subr.bf16.mxu0 %v7684_v18  ;;  %v7699_v27 = vpack.c.bf16 %v373_v24, %v372_v22  ;;  %v7701_v28 = vpack.c.bf16 %v359_v26, %v358_v25  ;;  %v390_v29 = vld [vmem:[%s7659_s29 + $0x1a0] sm:$0xff]  ;;  %v391_v30 = vld [vmem:[%s7659_s29 + $0x1a8] sm:$0xff]  ;;  %v360_v37 = vld [vmem:[%s7659_s29 + $0xb0] sm:$0xff] }
  0x22   : > { %6478 = vmatprep.subr.bf16.mxu1 %v7686_v19  ;;  %v342_v31 = vld [vmem:[%s7659_s29 + $0x20] sm:$0xff]  ;;  %v7706_v32 = vpack.c.bf16 %v391_v30, %v390_v29  ;;  %v343_v33 = vld [vmem:[%s7659_s29 + $0x28] sm:$0xff]  ;;  %v361_v38 = vld [vmem:[%s7659_s29 + $0xb8] sm:$0xff] }
  0x23   : > { %v374_v34 = vld [vmem:[%s7659_s29 + $0x120] sm:$0xff]  ;;  %v375_v35 = vld [vmem:[%s7659_s29 + $0x128] sm:$0xff]  ;;  %v7712_v36 = vpack.c.bf16 %v343_v33, %v342_v31  ;;  %v392_v39 = vld [vmem:[%s7659_s29 + $0x1b0] sm:$0xff]  ;;  %v7721_v41 = vpack.c.bf16 %v361_v38, %v360_v37 }
  0x24   : > { %6451 = vmatpush3.bf16.msra.mxu0 %v7692_v23  ;;  %v7719_v40 = vpack.c.bf16 %v375_v35, %v374_v34  ;;  %v393_v42 = vld [vmem:[%s7659_s29 + $0x1b8] sm:$0xff]  ;;  %v344_v43 = vld [vmem:[%s7659_s29 + $0x30] sm:$0xff]  ;;  %v362_v48 = vld [vmem:[%s7659_s29 + $0xc0] sm:$0xff] }
  0x25   : > { %6479 = vmatpush3.bf16.msra.mxu1 %v7699_v27  ;;  %6452 = vmatprep.subr.bf16.mxu0 %v7701_v28  ;;  %v345_v44 = vld [vmem:[%s7659_s29 + $0x38] sm:$0xff]  ;;  %v7727_v45 = vpack.c.bf16 %v393_v42, %v392_v39  ;;  %v376_v46 = vld [vmem:[%s7659_s29 + $0x130] sm:$0xff]  ;;  %v363_v49 = vld [vmem:[%s7659_s29 + $0xc8] sm:$0xff] }
  0x26   : > { %6480 = vmatprep.subr.bf16.mxu1 %v7706_v32  ;;  %v377_v47 = vld [vmem:[%s7659_s29 + $0x138] sm:$0xff]  ;;  %v394_v50 = vld [vmem:[%s7659_s29 + $0x1c0] sm:$0xff]  ;;  %v395_v51 = vld [vmem:[%s7659_s29 + $0x1c8] sm:$0xff]  ;;  %v7736_v52 = vpack.c.bf16 %v345_v44, %v344_v43  ;;  %v7742_v54 = vpack.c.bf16 %v363_v49, %v362_v48 }
  0x27   : > { %v7740_v53 = vpack.c.bf16 %v377_v47, %v376_v46  ;;  %v346_v55 = vld [vmem:[%s7659_s29 + $0x40] sm:$0xff]  ;;  %v347_v56 = vld [vmem:[%s7659_s29 + $0x48] sm:$0xff]  ;;  %v7748_v58 = vpack.c.bf16 %v395_v51, %v394_v50  ;;  %v364_v60 = vld [vmem:[%s7659_s29 + $0xd0] sm:$0xff] }
  0x28   : > { %6453 = vmatpush3.bf16.msra.mxu0 %v7712_v36  ;;  %v378_v57 = vld [vmem:[%s7659_s29 + $0x140] sm:$0xff]  ;;  %v379_v59 = vld [vmem:[%s7659_s29 + $0x148] sm:$0xff]  ;;  %v365_v61 = vld [vmem:[%s7659_s29 + $0xd8] sm:$0xff]  ;;  %v7756_v0 = vpack.c.bf16 %v347_v56, %v346_v55 }
  0x29   : > { %6481 = vmatpush3.bf16.msra.mxu1 %v7719_v40  ;;  %6454 = vmatprep.subr.bf16.mxu0 %v7721_v41  ;;  %v396_v62 = vld [vmem:[%s7659_s29 + $0x1d0] sm:$0xff]  ;;  %v397_v63 = vld [vmem:[%s7659_s29 + $0x1d8] sm:$0xff]  ;;  %v7761_v2 = vpack.c.bf16 %v379_v59, %v378_v57  ;;  %v7763_v3 = vpack.c.bf16 %v365_v61, %v364_v60  ;;  %v366_v11 = vld [vmem:[%s7659_s29 + $0xe0] sm:$0xff] }
  0x2a   : > { %6482 = vmatprep.subr.bf16.mxu1 %v7727_v45  ;;  %v348_v1 = vld [vmem:[%s7659_s29 + $0x50] sm:$0xff]  ;;  %v349_v4 = vld [vmem:[%s7659_s29 + $0x58] sm:$0xff]  ;;  %v7769_v8 = vpack.c.bf16 %v397_v63, %v396_v62  ;;  %v367_v12 = vld [vmem:[%s7659_s29 + $0xe8] sm:$0xff] }
  0x2b   : > { %v380_v6 = vld [vmem:[%s7659_s29 + $0x150] sm:$0xff]  ;;  %v381_v7 = vld [vmem:[%s7659_s29 + $0x158] sm:$0xff]  ;;  %v398_v13 = vld [vmem:[%s7659_s29 + $0x1e0] sm:$0xff]  ;;  %v7778_v20 = vpack.c.bf16 %v349_v4, %v348_v1  ;;  %v7788_v29 = vpack.c.bf16 %v367_v12, %v366_v11 }
  0x2c   : > { %6455 = vmatpush3.bf16.msra.mxu0 %v7736_v52  ;;  %v399_v15 = vld [vmem:[%s7659_s29 + $0x1e8] sm:$0xff]  ;;  %v350_v16 = vld [vmem:[%s7659_s29 + $0x60] sm:$0xff]  ;;  %v368_v24 = vld [vmem:[%s7659_s29 + $0xf0] sm:$0xff]  ;;  %v7786_v26 = vpack.c.bf16 %v381_v7, %v380_v6 }
  0x2d   : > { %6483 = vmatpush3.bf16.msra.mxu1 %v7740_v53  ;;  %6456 = vmatprep.subr.bf16.mxu0 %v7742_v54  ;;  %v351_v17 = vld [vmem:[%s7659_s29 + $0x68] sm:$0xff]  ;;  %v382_v21 = vld [vmem:[%s7659_s29 + $0x160] sm:$0xff]  ;;  %v369_v25 = vld [vmem:[%s7659_s29 + $0xf8] sm:$0xff]  ;;  %v7793_v33 = vpack.c.bf16 %v399_v15, %v398_v13 }
  0x2e   : > { %6484 = vmatprep.subr.bf16.mxu1 %v7748_v58  ;;  %v383_v22 = vld [vmem:[%s7659_s29 + $0x168] sm:$0xff]  ;;  %v400_v30 = vld [vmem:[%s7659_s29 + $0x1f0] sm:$0xff]  ;;  %v401_v31 = vld [vmem:[%s7659_s29 + $0x1f8] sm:$0xff]  ;;  %v7798_v37 = vpack.c.bf16 %v351_v17, %v350_v16  ;;  %v7806_v43 = vpack.c.bf16 %v369_v25, %v368_v24 }
  0x2f   : > { %v352_v34 = vld [vmem:[%s7659_s29 + $0x70] sm:$0xff]  ;;  %v353_v35 = vld [vmem:[%s7659_s29 + $0x78] sm:$0xff]  ;;  %v7804_v42 = vpack.c.bf16 %v383_v22, %v382_v21  ;;  %v7809_v44 = vpack.c.bf16 %v401_v31, %v400_v30  ;;  %v7036_v57 = vld [vmem:[%s10940_s2] sm:$0xff]  }
  0x30   : > { %6457 = vmatpush3.bf16.msra.mxu0 %v7756_v0  ;;  %v384_v38 = vld [vmem:[%s7659_s29 + $0x170] sm:$0xff]  ;;  %v385_v39 = vld [vmem:[%s7659_s29 + $0x178] sm:$0xff]  ;;  %v7812_v46 = vpack.c.bf16 %v353_v35, %v352_v34  ;;  %v7037_v59 = vld [vmem:[%s10940_s2 + $0x8] sm:$0xff]  }
  0x31   : > { %6485 = vmatpush3.bf16.msra.mxu1 %v7761_v2  ;;  %6458 = vmatprep.subr.bf16.mxu0 %v7763_v3  ;;  %v7816_v47 = vpack.c.bf16 %v385_v39, %v384_v38  ;;  %v7024_v48 = vld [vmem:[%s10941_s3] ss:$16 sps:$4 sm:$0xff]   ;;  %v7027_v49 = vld [vmem:[%s10941_s3 + $0x8] ss:$16 sps:$4 sm:$0xff]   ;;  %v7030_v50 = vld [vmem:[%s10941_s3 + $0x24] ss:$16 sps:$4 sm:$0xff]  }
  0x32   : > { %6486 = vmatprep.subr.bf16.mxu1 %v7769_v8  ;;  %v7032_v51 = vld [vmem:[%s10941_s3 + $0x2c] ss:$16 sps:$4 sm:$0xff]   ;;  %v7034_v55 = vld [vmem:[%s10941_s3 + $0x20] ss:$16 sps:$4 sm:$0xff]   ;;  %v7035_v56 = vld [vmem:[%s10941_s3 + $0x28] ss:$16 sps:$4 sm:$0xff]  }
  0x34   : > { %6459 = vmatpush3.bf16.msra.mxu0 %v7778_v20 }
  0x35   : > { %6487 = vmatpush3.bf16.msra.mxu1 %v7786_v26  ;;  %6460 = vmatprep.subr.bf16.mxu0 %v7788_v29 }
  0x36   : > { %6488 = vmatprep.subr.bf16.mxu1 %v7793_v33 }
  0x38   : > { %6461 = vmatpush3.bf16.msra.mxu0 %v7798_v37 }
  0x39   : > { %6489 = vmatpush3.bf16.msra.mxu1 %v7804_v42  ;;  %6462 = vmatprep.subr.bf16.mxu0 %v7806_v43 }
  0x3a   : > { %6490 = vmatprep.subr.bf16.mxu1 %v7809_v44 }
  0x3c   : > { %6463 = vmatpush3.bf16.msra.mxu0 %v7812_v46 }
  0x3d   : > { %6491 = vmatpush3.bf16.msra.mxu1 %v7816_v47  ;;  %6667 = vmatprep.subr.bf16.mxu0 %v7036_v57 }
  0x3f   : > { %515 = vmatmul.mubr.bf16.vlgmr.msra.gmra.mrb[0].mxu0 %v7024_v48 }
  0x40   : > { %564 = vmatmul.mubr.bf16.vlgmr.msra.gmra.mrb[0].mxu1 %v7027_v49  ;;  %522 = vmatprep.mubr.bf16.mxu0 %v7030_v50 }
  0x41   : > { %571 = vmatprep.mubr.bf16.mxu1 %v7032_v51  ;;  %6668 = vmatpush3.bf16.msra.mxu0 %v7036_v57 }
  0x42   : > { %6669 = vmatprep.subr.bf16.mxu0 %v7037_v59 }
  0x45   : > { %6670 = vmatpush3.bf16.msra.mxu0 %v7037_v59 }
  0x47   : > { %523 = vmatmul.mubr.bf16.gmra.mrb[4].mxu0 %v7034_v55 }
  0x48   : > { %572 = vmatmul.mubr.bf16.gmra.mrb[4].mxu1 %v7035_v56  ;;  %v6164_v56 = vld [vmem:[%s10946_s8 + $0x108] ss:$0 sm:$0xff] }
  0x49   : > { %6687 = vmatprep.mubr.msk.bf16.mxu1 %vm606_vm0, %v7756_v0 }
 0x112   : > { %v6464_v60 = vpop.f32.mrb[0].mxu0 }
 0x113   : > { %v6492_v61 = vpop.f32.mrb[0].mxu1  ;;  %v6465_v62 = vpop.f32.mrb[1].mxu0 }
 0x114   : > { %v6466_v63 = vadd.f32 %v6465_v62, %v6464_v60  ;;  %v6493_v1 = vpop.f32.mrb[1].mxu1  ;;  %v6467_v4 = vpop.f32.mrb[2].mxu0 }
 0x115   : > { %v6494_v6 = vadd.f32 %v6493_v1, %v6492_v61  ;;  %v6495_v7 = vpop.f32.mrb[2].mxu1  ;;  %v6468_v11 = vpop.f32.mrb[3].mxu0 }
 0x116   : > { %v6469_v12 = vadd.f32 %v6468_v11, %v6467_v4  ;;  %v6496_v13 = vpop.f32.mrb[3].mxu1 }
 0x117   : > { %v566_v15 = vadd.f32 %v6494_v6, %v6466_v63  ;;  %v6497_v16 = vadd.f32 %v6496_v13, %v6495_v7  ;;  %v7039_v13 = vld [vmem:[%s10939_s1 + $0x8] sm:$0xff]  }
 0x119   : > { %v569_v0 = vadd.f32 %v6497_v16, %v6469_v12  ;;  %v7038_v12 = vld [vmem:[%s10939_s1] sm:$0xff]  }
 0x11a   : > { %v6470_v17 = vpop.f32.mrb[4].mxu0  ;;  %6973 = vmatprep.subr.bf16.mxu1 %v7038_v12  ;;  %6675 = vmatprep.subr.bf16.mxu0 %v7038_v12 }
 0x11b   : > { %v6498_v21 = vpop.f32.mrb[4].mxu1  ;;  %v6471_v22 = vpop.f32.mrb[5].mxu0  ;;  %v584_v24 = vpack.c.bf16 %v569_v0, %v566_v15  ;;  %6975 = vmatpush3.bf16.msra.mxu1 %v7038_v12 }
 0x11c   : > { %v6472_v25 = vadd.f32 %v6471_v22, %v6470_v17  ;;  %v6499_v30 = vpop.f32.mrb[5].mxu1  ;;  %v6473_v31 = vpop.f32.mrb[6].mxu0  ;;  %6974 = vmatprep.subr.bf16.mxu1 %v7039_v13 }
 0x11d   : > { %v6500_v34 = vadd.f32 %v6499_v30, %v6498_v21  ;;  %v6501_v35 = vpop.f32.mrb[6].mxu1  ;;  %6671 = vmatprep.mubr.msk.bf16.mxu0 %vm606_vm0, %v584_v24  ;;  %v6474_v38 = vpop.f32.mrb[7].mxu0 }
 0x11e   : > { %v6475_v39 = vadd.f32 %v6474_v38, %v6473_v31  ;;  %v6502_v48 = vpop.f32.mrb[7].mxu1 }
 0x11f   : > { %v574_v49 = vadd.f32 %v6500_v34, %v6472_v25  ;;  %v6503_v50 = vadd.f32 %v6502_v48, %v6501_v35  ;;  %6976 = vmatpush3.bf16.msra.mxu1 %v7039_v13 }
 0x121   : > { %v577_v51 = vadd.f32 %v6503_v50, %v6475_v39 }
 0x122   : > { %6688 = vmatmul.mubr.msk.bf16.vlgmr.msra.gmra.mrb[8].mxu1 %vm606_vm0, %v7778_v20  ;;  %v7040_v20 = vld [vmem:[%s10939_s1 + $0x10] sm:$0xff]  }
 0x123   : > { %v585_v55 = vpack.c.bf16 %v577_v51, %v574_v49  ;;  %6691 = vmatprep.mubr.msk.bf16.mxu1 %vm606_vm0, %v7798_v37  ;;  %v1696_v37 = vld [vmem:[%s10943_s5 + $0x8] sm:$0xff] }
 0x125   : > { %6672 = vmatmul.mubr.msk.bf16.vlgmr.msra.gmra.mrb[8].mxu0 %vm606_vm0, %v585_v55 }
 0x126   : > { %6679 = vmatprep.mubr.msk.bf16.mxu0 %vm606_vm0, %v7671_v10  ;;  %6676 = vmatpush3.bf16.msra.mxu0 %v7038_v12 }
 0x127   : > { %6677 = vmatprep.subr.bf16.mxu0 %v7039_v13 }
 0x12a   : > { %6678 = vmatpush3.bf16.msra.mxu0 %v7039_v13  ;;  %6692 = vmatmul.mubr.msk.bf16.gmra.mrb[12].mxu1 %vm606_vm0, %v7812_v46 }
 0x12b   : > { %6695 = vmatprep.mubr.msk.bf16.mxu1 %vm606_vm0, %v7664_v5  ;;  %6743 = vmatprep.subr.bf16.mxu0 %v7040_v20 }
 0x12d   : > { %6680 = vmatmul.mubr.msk.bf16.vlgmr.msra.gmra.mrb[12].mxu0 %vm606_vm0, %v7692_v23 }
 0x12e   : > { %6683 = vmatprep.mubr.msk.bf16.mxu0 %vm606_vm0, %v7712_v36  ;;  %6744 = vmatpush3.bf16.msra.mxu0 %v7040_v20 }
 0x132   : > { %6696 = vmatmul.mubr.msk.bf16.gmra.mrb[16].mxu1 %vm606_vm0, %v7684_v18 }
 0x133   : > { %6699 = vmatprep.mubr.msk.bf16.mxu1 %vm606_vm0, %v7701_v28 }
 0x135   : > { %6684 = vmatmul.mubr.msk.bf16.gmra.mrb[16].mxu0 %vm606_vm0, %v7736_v52 }
 0x13a   : > { %6700 = vmatmul.mubr.msk.bf16.gmra.mrb[20].mxu1 %vm606_vm0, %v7721_v41 }
 0x13b   : > { %6703 = vmatprep.mubr.msk.bf16.mxu1 %vm606_vm0, %v7742_v54 }
 0x142   : > { %6704 = vmatmul.mubr.msk.bf16.gmra.mrb[24].mxu1 %vm606_vm0, %v7763_v3 }
 0x143   : > { %6707 = vmatprep.mubr.msk.bf16.mxu1 %vm606_vm0, %v7788_v29  ;;  %v7953_v29 = vld [vmem:[%s10940_s2 + $0x10] sm:$0xff]  }
 0x14a   : > { %6708 = vmatmul.mubr.msk.bf16.gmra.mrb[28].mxu1 %vm606_vm0, %v7806_v43  ;;  %v1698_v43 = vld [vmem:[%s10943_s5 + $0x18] sm:$0xff] }
 0x14b   : > { %6711 = vmatprep.mubr.msk.bf16.mxu1 %vm606_vm0, %v7677_v14 }
 0x152   : > { %6712 = vmatmul.mubr.msk.bf16.gmra.mrb[32].mxu1 %vm606_vm0, %v7699_v27 }
 0x153   : > { %6715 = vmatprep.mubr.msk.bf16.mxu1 %vm606_vm0, %v7719_v40 }
 0x15a   : > { %6716 = vmatmul.mubr.msk.bf16.gmra.mrb[36].mxu1 %vm606_vm0, %v7740_v53 }
 0x15b   : > { %6719 = vmatprep.mubr.msk.bf16.mxu1 %vm606_vm0, %v7761_v2 }
 0x162   : > { %6720 = vmatmul.mubr.msk.bf16.gmra.mrb[40].mxu1 %vm606_vm0, %v7786_v26  ;;  %v7041_v26 = vld [vmem:[%s10939_s1 + $0x18] sm:$0xff]  }
 0x163   : > { %6723 = vmatprep.mubr.msk.bf16.mxu1 %vm606_vm0, %v7804_v42  ;;  %6745 = vmatprep.subr.bf16.mxu0 %v7041_v26  ;;  %v1697_v42 = vld [vmem:[%s10943_s5 + $0x10] sm:$0xff] }
 0x164   : > { %6746 = vmatpush3.bf16.msra.mxu0 %v7041_v26 }
 0x165   : > { %6751 = vmatprep.subr.bf16.mxu0 %v7953_v29 }
 0x16a   : > { %6724 = vmatmul.mubr.msk.bf16.gmra.mrb[44].mxu1 %vm606_vm0, %v7816_v47 }
 0x16b   : > { %6727 = vmatprep.mubr.msk.bf16.mxu1 %vm606_vm0, %v7669_v9 }
 0x172   : > { %6728 = vmatmul.mubr.msk.bf16.gmra.mrb[48].mxu1 %vm606_vm0, %v7686_v19 }
 0x173   : > { %6731 = vmatprep.mubr.msk.bf16.mxu1 %vm606_vm0, %v7706_v32 }
 0x17a   : > { %6732 = vmatmul.mubr.msk.bf16.gmra.mrb[52].mxu1 %vm606_vm0, %v7727_v45 }
 0x17b   : > { %6735 = vmatprep.mubr.msk.bf16.mxu1 %vm606_vm0, %v7748_v58 }
 0x182   : > { %6736 = vmatmul.mubr.msk.bf16.gmra.mrb[56].mxu1 %vm606_vm0, %v7769_v8 }
 0x183   : > { %6739 = vmatprep.mubr.msk.bf16.mxu1 %vm606_vm0, %v7793_v33  ;;  %v1695_v33 = vld [vmem:[%s10943_s5] sm:$0xff] }
 0x18a   : > { %6740 = vmatmul.mubr.msk.bf16.gmra.mrb[60].mxu1 %vm606_vm0, %v7809_v44 }
 0x1f5   : > { %v7972_v44 = vpop.f32.mrb[8].mxu1 }
 0x1f6   : > { %11133 = vst [vmem:[#allocation6_spill] sm:$0xff] %v7972_v44  ;;  %v7976_v47 = vpop.f32.mrb[9].mxu1 }
 0x1f7   : > { %11135 = vst [vmem:[#allocation8_spill] sm:$0xff] %v7976_v47  ;;  %v7980_v16 = vpop.f32.mrb[10].mxu1 }
 0x1f8   : > { %v6673_v57 = vpop.f32.mrb[8].mxu0  ;;  %11137 = vst [vmem:[#allocation10_spill] sm:$0xff] %v7980_v16  ;;  %v7984_v17 = vpop.f32.mrb[11].mxu1 }
 0x1f9   : > { %v647_v59 = vpop.f32.mrb[9].mxu0  ;;  %v656_v60 = vadd.f32 %v6673_v57, %v6164_v56  ;;  %11139 = vst [vmem:[#allocation12_spill] sm:$0xff] %v7984_v17 }
 0x1fa   : > { %v6674_v61 = vpop.f32.mrb[10].mxu0  ;;  %v648_v62 = vadd.f32 %v6164_v56, %v647_v59 }
 0x1fb   : > { %v650_v63 = vpop.f32.mrb[11].mxu0  ;;  %v668_v1 = vsel %vm606_vm0, %v656_v60, 0.0  ;;  %v659_v4 = vadd.f32 %v6674_v61, %v6164_v56 }
 0x1fc   : > { %669 = vadd.xlane.f32.xlu1 %v668_v1  ;;  %v662_v6 = vsel %vm606_vm0, %v648_v62, 0.0  ;;  %v651_v7 = vadd.f32 %v6164_v56, %v650_v63 }
 0x1fd   : > { %663 = vadd.xlane.f32.xlu0 %v662_v6  ;;  %v671_v10 = vsel %vm606_vm0, %v659_v4, 0.0  ;;  %v7988_v22 = vpop.f32.mrb[12].mxu1 }
 0x1fe   : > { %v665_v11 = vsel %vm606_vm0, %v651_v7, 0.0  ;;  %11141 = vst [vmem:[#allocation14_spill] sm:$0xff] %v7988_v22  ;;  %v7992_v25 = vpop.f32.mrb[13].mxu1 }
 0x1ff   : > { %11143 = vst [vmem:[#allocation16_spill] sm:$0xff] %v7992_v25  ;;  %v7996_v31 = vpop.f32.mrb[14].mxu1 }
 0x200   : > { %672 = vadd.xlane.f32.xlu1 %v671_v10  ;;  %v7974_v46 = vpop.f32.mrb[12].mxu0  ;;  %11145 = vst [vmem:[#allocation18_spill] sm:$0xff] %v7996_v31  ;;  %v8000_v35 = vpop.f32.mrb[15].mxu1 }
 0x201   : > { %666 = vadd.xlane.f32.xlu0 %v665_v11  ;;  %11134 = vst [vmem:[#allocation7_spill] sm:$0xff] %v7974_v46  ;;  %v7978_v15 = vpop.f32.mrb[13].mxu0  ;;  %11147 = vst [vmem:[#allocation20_spill] sm:$0xff] %v8000_v35 }
 0x202   : > { %11136 = vst [vmem:[#allocation9_spill] sm:$0xff] %v7978_v15  ;;  %v7982_v0 = vpop.f32.mrb[14].mxu0 }
 0x203   : > { %11138 = vst [vmem:[#allocation11_spill] sm:$0xff] %v7982_v0  ;;  %v7986_v21 = vpop.f32.mrb[15].mxu0 }
 0x204   : > { %11140 = vst [vmem:[#allocation13_spill] sm:$0xff] %v7986_v21 }
 0x205   : > { %v8004_v39 = vpop.f32.mrb[16].mxu1 }
 0x206   : > { %11149 = vst [vmem:[#allocation22_spill] sm:$0xff] %v8004_v39  ;;  %v8006_v48 = vpop.f32.mrb[17].mxu1  ;;  %v1293_v39 = vld [vmem:[%s10942_s4 + $0x8] sm:$0xff] }
 0x207   : > { %11150 = vst [vmem:[#allocation23_spill] sm:$0xff] %v8006_v48  ;;  %v8008_v49 = vpop.f32.mrb[18].mxu1 }
 0x208   : > { %v7990_v24 = vpop.f32.mrb[16].mxu0  ;;  %11151 = vst [vmem:[#allocation24_spill] sm:$0xff] %v8008_v49  ;;  %v8010_v50 = vpop.f32.mrb[19].mxu1 }
 0x209   : > { %11142 = vst [vmem:[#allocation15_spill] sm:$0xff] %v7990_v24  ;;  %v7994_v30 = vpop.f32.mrb[17].mxu0  ;;  %11152 = vst [vmem:[#allocation25_spill] sm:$0xff] %v8010_v50 }
 0x20a   : > { %11144 = vst [vmem:[#allocation17_spill] sm:$0xff] %v7994_v30  ;;  %v7998_v34 = vpop.f32.mrb[18].mxu0 }
 0x20b   : > { %11146 = vst [vmem:[#allocation19_spill] sm:$0xff] %v7998_v34  ;;  %v8002_v38 = vpop.f32.mrb[19].mxu0 }
 0x20c   : > { %11148 = vst [vmem:[#allocation21_spill] sm:$0xff] %v8002_v38 }
 0x20d   : > { %v8012_v51 = vpop.f32.mrb[20].mxu1 }
 0x20e   : > { %11153 = vst [vmem:[#allocation26_spill] sm:$0xff] %v8012_v51  ;;  %v8014_v55 = vpop.f32.mrb[21].mxu1 }
 0x20f   : > { %11154 = vst [vmem:[#allocation27_spill] sm:$0xff] %v8014_v55  ;;  %v8016_v56 = vpop.f32.mrb[22].mxu1 }
 0x210   : > { %11155 = vst [vmem:[#allocation28_spill] sm:$0xff] %v8016_v56  ;;  %v8018_v57 = vpop.f32.mrb[23].mxu1 }
 0x211   : > { %11156 = vst [vmem:[#allocation29_spill] sm:$0xff] %v8018_v57 }
 0x215   : > { %v8020_v59 = vpop.f32.mrb[24].mxu1 }
 0x216   : > { %11157 = vst [vmem:[#allocation30_spill] sm:$0xff] %v8020_v59 }
 0x289   : > { %v670_v5 = vpop.xlane.xlu1 %669 }
 0x28a   : > { %v677_v9 = vmul.f32 0.03125, %v670_v5  ;;  %v664_v14 = vpop.xlane.xlu0 %663 }
 0x28b   : > { %v675_v18 = vmul.f32 0.03125, %v664_v14 }
 0x28c   : > { %v7924_v19 = vsub.f32 %v656_v60, %v677_v9  ;;  %v8022_v60 = vpop.f32.mrb[25].mxu1 }
 0x28d   : > { %v7926_v23 = vsub.f32 %v648_v62, %v675_v18  ;;  %v673_v27 = vpop.xlane.xlu1 %672  ;;  %11158 = vst [vmem:[#allocation31_spill] sm:$0xff] %v8022_v60  ;;  %v8024_v61 = vpop.f32.mrb[26].mxu1 }
 0x28e   : > { %v678_v28 = vmul.f32 0.03125, %v673_v27  ;;  %v667_v32 = vpop.xlane.xlu0 %666  ;;  %v685_v53 = vmul.f32 %v7924_v19, %v7924_v19  ;;  %11159 = vst [vmem:[#allocation32_spill] sm:$0xff] %v8024_v61  ;;  %v8026_v62 = vpop.f32.mrb[27].mxu1 }
 0x28f   : > { %v676_v36 = vmul.f32 0.03125, %v667_v32  ;;  %v683_v40 = vmul.f32 %v7926_v23, %v7926_v23  ;;  %11160 = vst [vmem:[#allocation33_spill] sm:$0xff] %v8026_v62  ;;  %v8028_v1 = vpop.f32.mrb[28].mxu1 }
 0x290   : > { %v7930_v41 = vsub.f32 %v659_v4, %v678_v28  ;;  %v693_v58 = vsel %vm606_vm0, %v685_v53, 0.0  ;;  %11161 = vst [vmem:[#allocation34_spill] sm:$0xff] %v8028_v1  ;;  %v8030_v6 = vpop.f32.mrb[29].mxu1 }
 0x291   : > { %v7932_v45 = vsub.f32 %v651_v7, %v676_v36  ;;  %v687_v52 = vsel %vm606_vm0, %v683_v40, 0.0  ;;  %11162 = vst [vmem:[#allocation35_spill] sm:$0xff] %v8030_v6  ;;  %v8032_v7 = vpop.f32.mrb[30].mxu1 }
 0x292   : > { %688 = vadd.xlane.f32.xlu0 %v687_v52  ;;  %v686_v3 = vmul.f32 %v7930_v41, %v7930_v41  ;;  %11163 = vst [vmem:[#allocation36_spill] sm:$0xff] %v8032_v7  ;;  %v8034_v11 = vpop.f32.mrb[31].mxu1 }
 0x293   : > { %v684_v54 = vmul.f32 %v7932_v45, %v7932_v45  ;;  %11164 = vst [vmem:[#allocation37_spill] sm:$0xff] %v8034_v11  ;;  %v8036_v28 = vpop.f32.mrb[32].mxu1 }
 0x294   : > { %v696_v8 = vsel %vm606_vm0, %v686_v3, 0.0  ;;  %11165 = vst [vmem:[#allocation38_spill] sm:$0xff] %v8036_v28  ;;  %v8038_v36 = vpop.f32.mrb[33].mxu1 }
 0x295   : > { %v690_v2 = vsel %vm606_vm0, %v684_v54, 0.0  ;;  %11166 = vst [vmem:[#allocation39_spill] sm:$0xff] %v8038_v36  ;;  %v8040_v40 = vpop.f32.mrb[34].mxu1 }
 0x296   : > { %694 = vadd.xlane.f32.xlu0 %v693_v58  ;;  %691 = vadd.xlane.f32.xlu1 %v690_v2  ;;  %11167 = vst [vmem:[#allocation40_spill] sm:$0xff] %v8040_v40  ;;  %v8042_v53 = vpop.f32.mrb[35].mxu1  ;;  %v6169_v58 = vld [vmem:[%s10946_s8 + $0x109] ss:$0 sm:$0xff] }
 0x297   : > { %11168 = vst [vmem:[#allocation41_spill] sm:$0xff] %v8042_v53  ;;  %v8048_v3 = vpop.f32.mrb[36].mxu1 }
 0x298   : > { %11169 = vst [vmem:[#allocation42_spill] sm:$0xff] %v8048_v3  ;;  %v8053_v20 = vpop.f32.mrb[37].mxu1 }
 0x299   : > { %11170 = vst [vmem:[#allocation43_spill] sm:$0xff] %v8053_v20 }
 0x29a   : > { %697 = vadd.xlane.f32.xlu1 %v696_v8  ;;  %v6170_v8 = vld [vmem:[%s10946_s8 + $0x10a] ss:$0 sm:$0xff] }
 0x2ab   : > { %2079 = vrot.lane.b32.xlu1 %v1695_v33, %s7542_s24  ;;  %v8055_v33 = vpop.f32.mrb[38].mxu1 }
 0x2ac   : > { %11171 = vst [vmem:[#allocation44_spill] sm:$0xff] %v8055_v33 }
 0x2af   : > { %2081 = vrot.lane.b32.xlu1 %v1696_v37, %s7542_s24 }
 0x2b3   : > { %2083 = vrot.lane.b32.xlu1 %v1697_v42, %s7542_s24  ;;  %v8057_v42 = vpop.f32.mrb[39].mxu1 }
 0x2b4   : > { %11172 = vst [vmem:[#allocation45_spill] sm:$0xff] %v8057_v42 }
 0x2b7   : > { %2085 = vrot.lane.b32.xlu1 %v1698_v43, %s7542_s24 }
 0x31f   : > { %v689_v63 = vpop.xlane.xlu0 %688 }
 0x320   : > { %v699_v4 = vmul.f32 0.03125, %v689_v63 }
 0x322   : > { %v703_v10 = vadd.f32 1e-05, %v699_v4 }
 0x323   : > { %v692_v12 = vpop.xlane.xlu1 %691  ;;  %v695_v13 = vpop.xlane.xlu0 %694 }
 0x324   : > { %7078 = vrsqrt.f32 %v703_v10  ;;  %v700_v5 = vmul.f32 0.03125, %v692_v12  ;;  %v701_v9 = vmul.f32 0.03125, %v695_v13 }
 0x326   : > { %v704_v14 = vadd.f32 1e-05, %v700_v5  ;;  %v705_v18 = vadd.f32 1e-05, %v701_v9 }
 0x327   : > { %v698_v27 = vpop.xlane.xlu1 %697 }
 0x328   : > { %7080 = vrsqrt.f32 %v704_v14  ;;  %v702_v32 = vmul.f32 0.03125, %v698_v27 }
 0x329   : > { %7082 = vrsqrt.f32 %v705_v18  ;;  %v8062_v18 = vpop.f32.mrb[40].mxu1 }
 0x32a   : > { %v706_v52 = vadd.f32 1e-05, %v702_v32  ;;  %11173 = vst [vmem:[#allocation46_spill] sm:$0xff] %v8062_v18  ;;  %v8064_v32 = vpop.f32.mrb[41].mxu1 }
 0x32b   : > { %11174 = vst [vmem:[#allocation47_spill] sm:$0xff] %v8064_v32 }
 0x32c   : > { %7084 = vrsqrt.f32 %v706_v52 }
 0x32e   : > { %v7079_v54 = vpop.eup %7078 }
 0x32f   : > { %v711_v2 = vmul.f32 %v7079_v54, %v7926_v23 }
 0x331   : > { %v719_v26 = vmul.f32 %v6169_v58, %v711_v2  ;;  %v8066_v2 = vpop.f32.mrb[42].mxu1 }
 0x332   : > { %v7081_v37 = vpop.eup %7080  ;;  %11175 = vst [vmem:[#allocation48_spill] sm:$0xff] %v8066_v2 }
 0x333   : > { %v7083_v43 = vpop.eup %7082  ;;  %v712_v63 = vmul.f32 %v7081_v37, %v7932_v45  ;;  %v727_v4 = vadd.f32 %v6170_v8, %v719_v26  ;;  %v8068_v26 = vpop.f32.mrb[43].mxu1 }
 0x334   : > { %v713_v23 = vmul.f32 %v7083_v43, %v7924_v19  ;;  %11176 = vst [vmem:[#allocation49_spill] sm:$0xff] %v8068_v26 }
 0x335   : > { %v720_v10 = vmul.f32 %v6169_v58, %v712_v63  ;;  %v735_v12 = vmul.f32 0.70710677, %v727_v4 }
 0x336   : > { %v7085_v13 = vpop.eup %7084  ;;  %v721_v5 = vmul.f32 %v6169_v58, %v713_v23 }
 0x337   : > { %v714_v9 = vmul.f32 %v7085_v13, %v7930_v41  ;;  %v728_v14 = vadd.f32 %v6170_v8, %v720_v10  ;;  %7086 = verf.f32 %v735_v12  ;;  %v731_v10 = vmul.f32 0.5, %v727_v4 }
 0x338   : > { %v729_v27 = vadd.f32 %v6170_v8, %v721_v5 }
 0x339   : > { %v722_v52 = vmul.f32 %v6169_v58, %v714_v9  ;;  %v736_v54 = vmul.f32 0.70710677, %v728_v14  ;;  %v732_v12 = vmul.f32 0.5, %v728_v14  ;;  %v1701_v14 = vld [vmem:[%s10943_s5 + $0x30] sm:$0xff] }
 0x33a   : > { %v737_v45 = vmul.f32 0.70710677, %v729_v27  ;;  %v733_v36 = vmul.f32 0.5, %v729_v27 }
 0x33b   : > { %v730_v19 = vadd.f32 %v6170_v8, %v722_v52  ;;  %7088 = verf.f32 %v736_v54 }
 0x33c   : > { %7090 = verf.f32 %v737_v45  ;;  %v7043_v45 = vld [vmem:[%s10940_s2 + $0x18] sm:$0xff]  }
 0x33d   : > { %v738_v37 = vmul.f32 0.70710677, %v730_v19  ;;  %v734_v7 = vmul.f32 0.5, %v730_v19 }
 0x33f   : > { %7092 = verf.f32 %v738_v37 }
 0x341   : > { %v7087_v41 = vpop.eup %7086 }
 0x342   : > { %v743_v43 = vadd.f32 1.0, %v7087_v41 }
 0x344   : > { %v747_v5 = vmul.f32 %v743_v43, %v731_v10  ;;  %v1702_v43 = vld [vmem:[%s10943_s5 + $0x38] sm:$0xff] }
 0x345   : > { %v7089_v63 = vpop.eup %7088 }
 0x346   : > { %v7091_v23 = vpop.eup %7090  ;;  %v744_v13 = vadd.f32 1.0, %v7089_v63 }
 0x347   : > { %v745_v9 = vadd.f32 1.0, %v7091_v23 }
 0x348   : > { %v748_v58 = vmul.f32 %v744_v13, %v732_v12  ;;  %v1703_v13 = vld [vmem:[%s10943_s5 + $0x40] sm:$0xff] }
 0x349   : > { %v7093_v28 = vpop.eup %7092  ;;  %v749_v8 = vmul.f32 %v745_v9, %v733_v36 }
 0x34a   : > { %v751_v53 = vpack.c.bf16 %v748_v58, %v747_v5  ;;  %v746_v1 = vadd.f32 1.0, %v7093_v28  ;;  %v8078_v28 = vpop.f32.mrb[44].mxu1 }
 0x34b   : > { %11177 = vst [vmem:[#allocation50_spill] sm:$0xff] %v8078_v28  ;;  %v8080_v4 = vpop.f32.mrb[45].mxu1 }
 0x34c   : > { %6747 = vmatprep.mubr.msk.bf16.mxu0 %vm606_vm0, %v751_v53  ;;  %v750_v52 = vmul.f32 %v746_v1, %v734_v7  ;;  %11178 = vst [vmem:[#allocation51_spill] sm:$0xff] %v8080_v4  ;;  %v1699_v1 = vld [vmem:[%s10943_s5 + $0x20] sm:$0xff]  ;;  %v8085_v7 = vpop.f32.mrb[46].mxu1 }
 0x34d   : > { %11179 = vst [vmem:[#allocation52_spill] sm:$0xff] %v8085_v7  ;;  %2087 = vrot.lane.b32.xlu1 %v1699_v1, %s7542_s24  ;;  %v8088_v36 = vpop.f32.mrb[47].mxu1  ;;  %v1705_v1 = vld [vmem:[%s10943_s5 + $0x50] sm:$0xff] }
 0x34e   : > { %v752_v54 = vpack.c.bf16 %v750_v52, %v749_v8  ;;  %11180 = vst [vmem:[#allocation53_spill] sm:$0xff] %v8088_v36  ;;  %v1704_v52 = vld [vmem:[%s10943_s5 + $0x48] sm:$0xff] }
 0x350   : > { %6748 = vmatmul.mubr.msk.bf16.vlgmr.msra.gmra.mrb[20].mxu0 %vm606_vm0, %v752_v54 }
 0x351   : > { %6752 = vmatpush3.bf16.msra.mxu0 %v7953_v29  ;;  %6755 = vmatprep.mubr.msk.bf16.mxu0 %vm606_vm0, %v751_v53  ;;  %v8090_v29 = vpop.f32.mrb[48].mxu1 }
 0x352   : > { %6753 = vmatprep.subr.bf16.mxu0 %v7043_v45  ;;  %11181 = vst [vmem:[#allocation54_spill] sm:$0xff] %v8090_v29  ;;  %v8092_v53 = vpop.f32.mrb[49].mxu1  ;;  %2091 = vrot.lane.b32.xlu1 %v1701_v14, %s7542_s24 }
 0x353   : > { %11182 = vst [vmem:[#allocation55_spill] sm:$0xff] %v8092_v53  ;;  %v8097_v27 = vpop.f32.mrb[50].mxu1 }
 0x354   : > { %11183 = vst [vmem:[#allocation56_spill] sm:$0xff] %v8097_v27  ;;  %v8100_v19 = vpop.f32.mrb[51].mxu1 }
 0x355   : > { %6754 = vmatpush3.bf16.msra.mxu0 %v7043_v45  ;;  %11184 = vst [vmem:[#allocation57_spill] sm:$0xff] %v8100_v19  ;;  %v8102_v37 = vpop.f32.mrb[52].mxu1 }
 0x356   : > { %11185 = vst [vmem:[#allocation58_spill] sm:$0xff] %v8102_v37  ;;  %v8104_v41 = vpop.f32.mrb[53].mxu1  ;;  %2093 = vrot.lane.b32.xlu1 %v1702_v43, %s7542_s24 }
 0x357   : > { %11186 = vst [vmem:[#allocation59_spill] sm:$0xff] %v8104_v41  ;;  %v8109_v63 = vpop.f32.mrb[54].mxu1 }
 0x358   : > { %6756 = vmatmul.mubr.msk.bf16.vlgmr.msra.gmra.mrb[24].mxu0 %vm606_vm0, %v752_v54  ;;  %11187 = vst [vmem:[#allocation60_spill] sm:$0xff] %v8109_v63  ;;  %v8112_v23 = vpop.f32.mrb[55].mxu1 }
 0x359   : > { %11188 = vst [vmem:[#allocation61_spill] sm:$0xff] %v8112_v23  ;;  %v8114_v10 = vpop.f32.mrb[56].mxu1 }
 0x35a   : > { %11189 = vst [vmem:[#allocation62_spill] sm:$0xff] %v8114_v10  ;;  %v8116_v12 = vpop.f32.mrb[57].mxu1  ;;  %2095 = vrot.lane.b32.xlu1 %v1703_v13, %s7542_s24 }
 0x35b   : > { %11190 = vst [vmem:[#allocation63_spill] sm:$0xff] %v8116_v12  ;;  %v8121_v5 = vpop.f32.mrb[58].mxu1 }
 0x35c   : > { %11191 = vst [vmem:[#allocation64_spill] sm:$0xff] %v8121_v5  ;;  %v8124_v58 = vpop.f32.mrb[59].mxu1 }
 0x35d   : > { %11192 = vst [vmem:[#allocation65_spill] sm:$0xff] %v8124_v58  ;;  %v8126_v9 = vpop.f32.mrb[60].mxu1 }
 0x35e   : > { %11193 = vst [vmem:[#allocation66_spill] sm:$0xff] %v8126_v9  ;;  %v8128_v8 = vpop.f32.mrb[61].mxu1  ;;  %2097 = vrot.lane.b32.xlu1 %v1704_v52, %s7542_s24 }
 0x35f   : > { %11194 = vst [vmem:[#allocation67_spill] sm:$0xff] %v8128_v8  ;;  %v8133_v54 = vpop.f32.mrb[62].mxu1 }
 0x360   : > { %11195 = vst [vmem:[#allocation68_spill] sm:$0xff] %v8133_v54  ;;  %v8136_v45 = vpop.f32.mrb[63].mxu1 }
 0x361   : > { %11196 = vst [vmem:[#allocation69_spill] sm:$0xff] %v8136_v45 }
 0x362   : > { %2099 = vrot.lane.b32.xlu1 %v1705_v1, %s7542_s24 }
 0x423   : > { %v6749_v14 = vpop.f32.mrb[20].mxu0 }
 0x424   : > { %v1211_v43 = vpop.f32.mrb[21].mxu0  ;;  %v1415_v13 = vsel %vm1412_vm1, %v6749_v14, -inf  ;;  %v1428_v11 = vsel %vm1412_vm1, %v6749_v14, inf }
 0x425   : > { %1304 = vxpose.xlu0.b32.start [1/4] (short) (narrow) %v1211_v43, 8  ;;  %v6750_v6 = vpop.f32.mrb[22].mxu0  ;;  %v1413_v61 = vsel %vm1412_vm1, %v1211_v43, -inf  ;;  %v1426_v52 = vsel %vm1412_vm1, %v1211_v43, inf  ;;  %v1295_v43 = vld [vmem:[%s10942_s4 + $0x18] sm:$0xff] }
 0x426   : > { %v1416_v59 = vsel %vm1412_vm1, %v6750_v6, -inf  ;;  %v1429_v62 = vsel %vm1412_vm1, %v6750_v6, inf  ;;  %v1214_v60 = vpop.f32.mrb[23].mxu0  ;;  %v6961_v50 = vpack.c.bf16 %v1295_v43, %v1293_v39  ;;  %v1297_v39 = vld [vmem:[%s10942_s4 + $0x28] sm:$0xff] }
 0x427   : > { %v1418_v56 = vmax.f32 %v1415_v13, %v1416_v59  ;;  %v1431_v1 = vmin.f32 %v1428_v11, %v1429_v62  ;;  %v1414_v51 = vsel %vm1412_vm1, %v1214_v60, -inf  ;;  %v1427_v57 = vsel %vm1412_vm1, %v1214_v60, inf }
 0x428   : > { %v1417_v55 = vmax.f32 %v1413_v61, %v1414_v51  ;;  %v1430_v49 = vmin.f32 %v1426_v52, %v1427_v57  ;;  %6962 = vmatprep.subr.bf16.mxu0 %v6961_v50  ;;  %v1292_v51 = vld [vmem:[%s10942_s4] sm:$0xff]  ;;  %v1294_v57 = vld [vmem:[%s10942_s4 + $0x10] sm:$0xff] }
 0x429   : > { %1305 = vxpose.xlu0.b32.cont [2/4] (short) (narrow) %v1214_v60, 8  ;;  %v6963_v52 = vpack.c.bf16 %v1294_v57, %v1292_v51  ;;  %v1296_v51 = vld [vmem:[%s10942_s4 + $0x20] sm:$0xff]  ;;  %v1298_v57 = vld [vmem:[%s10942_s4 + $0x30] sm:$0xff] }
 0x42a   : > { %v1419_v48 = vmax.f32 %v1417_v55, %v1418_v56  ;;  %v1432_v31 = vmin.f32 %v1430_v49, %v1431_v1  ;;  %v1299_v49 = vld [vmem:[%s10942_s4 + $0x38] sm:$0xff] }
 0x42b   : > { %v6757_v59 = vpop.f32.mrb[24].mxu0  ;;  %v6965_v1 = vpack.c.bf16 %v1299_v49, %v1297_v39  ;;  %6964 = vmatpush1.bf16.msra.mxu0 %v6963_v52 }
 0x42c   : > { %v1420_v62 = vrot.slane %v1419_v48, 4  ;;  %v1433_v11 = vrot.slane %v1432_v31, 4  ;;  %v1277_v13 = vpop.f32.mrb[25].mxu0 }
 0x42d   : > { %1306 = vxpose.xlu0.b32.cont [3/4] (short) (narrow) %v6749_v14, 8  ;;  %v6758_v61 = vpop.f32.mrb[26].mxu0  ;;  %6966 = vmatprep.subr.bf16.mxu0 %v6965_v1 }
 0x42e   : > { %v1421_v50 = vmax.f32 %v1419_v48, %v1420_v62  ;;  %v1434_v55 = vmin.f32 %v1432_v31, %v1433_v11  ;;  %v8168_v56 = vpack.c.bf16 %v6758_v61, %v6757_v59  ;;  %v1280_v60 = vpop.f32.mrb[27].mxu0  ;;  %v6967_v31 = vpack.c.bf16 %v1298_v57, %v1296_v51 }
 0x42f   : > { %v8170_v43 = vpack.c.bf16 %v1280_v60, %v1277_v13  ;;  %v10969_v48 = vmov 0.0  }
 0x430   : > { %11197 = vst [vmem:[#allocation70_spill] sm:$0xff] %v8168_v56  ;;  %v1422_v14 = vrot.slane %v1421_v50, 2  ;;  %v1435_v22 = vrot.slane %v1434_v55, 2  ;;  %1403 = vmatprep.mubr.f32.mxu0 %v10969_v48  ;;  %6968 = vmatpush1.bf16.msra.mxu0 %v6967_v31 }
 0x431   : > { %11198 = vst [vmem:[#allocation71_spill] sm:$0xff] %v8170_v43  ;;  %1307 = vxpose.xlu0.b32.end [4/4] (short) (narrow) %v6750_v6, 8 }
 0x432   : > { %v1423_v59 = vmax.f32 %v1421_v50, %v1422_v14  ;;  %v1436_v62 = vmin.f32 %v1434_v55, %v1435_v22 }
 0x434   : > { %v1424_v11 = vrot.slane %v1423_v59, 1  ;;  %v1437_v13 = vrot.slane %v1436_v62, 1 }
 0x436   : > { %v8179_v61 = vmax.f32 %v1423_v59, %v1424_v11  ;;  %v8181_v52 = vmin.f32 %v1436_v62, %v1437_v13 }
 0x438   : > { %v8185_v39 = vmul.f32 %v8040_v40, %v8179_v61  ;;  %v8189_v6 = vmul.f32 %v8179_v61, %v8053_v20  ;;  %v8193_v49 = vmul.f32 %v8179_v61, %v8057_v42  ;;  %v8197_v22 = vmul.f32 %v8048_v3, %v8179_v61 }
 0x439   : > { %v8201_v50 = vmul.f32 %v8055_v33, %v8179_v61  ;;  %v8205_v55 = vmul.f32 %v8179_v61, %v8064_v32  ;;  %v8209_v60 = vmul.f32 %v8179_v61, %v8068_v26  ;;  %v8213_v1 = vmul.f32 %v8062_v18, %v8179_v61 }
 0x43a   : > { %v8217_v14 = vmul.f32 %v8066_v2, %v8179_v61  ;;  %v8221_v51 = vmul.f32 %v8179_v61, %v8080_v4  ;;  %v8225_v57 = vmul.f32 %v8078_v28, %v8179_v61  ;;  %v8229_v31 = vmul.f32 %v8085_v7, %v8179_v61 }
 0x43b   : > { %v8233_v59 = vmul.f32 %v8040_v40, %v8181_v52  ;;  %v8237_v62 = vmul.f32 %v8181_v52, %v8053_v20  ;;  %v8241_v11 = vmul.f32 %v8181_v52, %v8057_v42  ;;  %v8245_v13 = vmul.f32 %v8048_v3, %v8181_v52 }
 0x43c   : > { %v8249_v48 = vmul.f32 %v8055_v33, %v8181_v52  ;;  %v8253_v40 = vmul.f32 %v8181_v52, %v8064_v32  ;;  %v8257_v20 = vmul.f32 %v8181_v52, %v8068_v26  ;;  %v8261_v42 = vmul.f32 %v8062_v18, %v8181_v52 }
 0x43d   : > { %v8265_v3 = vmul.f32 %v8066_v2, %v8181_v52  ;;  %v8269_v33 = vmul.f32 %v8181_v52, %v8080_v4  ;;  %v8273_v32 = vmul.f32 %v8078_v28, %v8181_v52  ;;  %v8277_v26 = vmul.f32 %v8085_v7, %v8181_v52 }
 0x43e   : > { %v8281_v18 = vmul.f32 %v8179_v61, %v8088_v36  ;;  %v8285_v2 = vmul.f32 %v8181_v52, %v8088_v36  ;;  %v8289_v4 = vmul.f32 %v8090_v29, %v8179_v61  ;;  %v8293_v28 = vmul.f32 %v8090_v29, %v8181_v52 }
 0x43f   : > { %v8297_v7 = vmul.f32 %v8179_v61, %v8092_v53  ;;  %v8301_v56 = vmul.f32 %v8181_v52, %v8092_v53  ;;  %v8305_v36 = vmul.f32 %v8097_v27, %v8179_v61  ;;  %v8309_v43 = vmul.f32 %v8097_v27, %v8181_v52 }
 0x440   : > { %11199 = vst [vmem:[#allocation72_spill] sm:$0xff] %v8289_v4  ;;  %11200 = vst [vmem:[#allocation73_spill] sm:$0xff] %v8293_v28  ;;  %v8313_v29 = vmul.f32 %v8179_v61, %v8100_v19  ;;  %v8317_v4 = vmul.f32 %v8181_v52, %v8100_v19  ;;  %v8321_v53 = vmul.f32 %v8102_v37, %v8179_v61 }
 0x441   : > { %11201 = vst [vmem:[#allocation74_spill] sm:$0xff] %v8305_v36  ;;  %11202 = vst [vmem:[#allocation75_spill] sm:$0xff] %v8309_v43  ;;  %v8325_v28 = vmul.f32 %v8102_v37, %v8181_v52  ;;  %v8329_v27 = vmul.f32 %v8179_v61, %v8104_v41  ;;  %v8333_v36 = vmul.f32 %v8181_v52, %v8104_v41 }
 0x442   : > { %11203 = vst [vmem:[#allocation76_spill] sm:$0xff] %v8313_v29  ;;  %11204 = vst [vmem:[#allocation77_spill] sm:$0xff] %v8317_v4  ;;  %v8337_v19 = vmul.f32 %v8109_v63, %v8179_v61  ;;  %v8341_v43 = vmul.f32 %v8109_v63, %v8181_v52  ;;  %v8345_v37 = vmul.f32 %v8179_v61, %v8112_v23 }
 0x443   : > { %11205 = vst [vmem:[#allocation78_spill] sm:$0xff] %v8321_v53  ;;  %11206 = vst [vmem:[#allocation79_spill] sm:$0xff] %v8325_v28  ;;  %v8349_v53 = vmul.f32 %v8181_v52, %v8112_v23  ;;  %v8353_v41 = vmul.f32 %v8114_v10, %v8179_v61  ;;  %v8357_v28 = vmul.f32 %v8114_v10, %v8181_v52 }
 0x444   : > { %11207 = vst [vmem:[#allocation80_spill] sm:$0xff] %v8329_v27  ;;  %11208 = vst [vmem:[#allocation81_spill] sm:$0xff] %v8333_v36  ;;  %v8361_v63 = vmul.f32 %v8179_v61, %v8116_v12  ;;  %v8369_v23 = vmul.f32 %v8121_v5, %v8179_v61  ;;  %v8377_v10 = vmul.f32 %v8179_v61, %v8124_v58 }
 0x445   : > { %11209 = vst [vmem:[#allocation82_spill] sm:$0xff] %v8337_v19  ;;  %11210 = vst [vmem:[#allocation83_spill] sm:$0xff] %v8341_v43  ;;  %v8365_v19 = vmul.f32 %v8181_v52, %v8116_v12  ;;  %v8373_v43 = vmul.f32 %v8121_v5, %v8181_v52  ;;  %v8385_v12 = vmul.f32 %v8126_v9, %v8179_v61 }
 0x446   : > { %11211 = vst [vmem:[#allocation84_spill] sm:$0xff] %v8345_v37  ;;  %11212 = vst [vmem:[#allocation85_spill] sm:$0xff] %v8349_v53  ;;  %v8393_v5 = vmul.f32 %v8179_v61, %v8128_v8 }
 0x447   : > { %11213 = vst [vmem:[#allocation86_spill] sm:$0xff] %v8353_v41  ;;  %11214 = vst [vmem:[#allocation87_spill] sm:$0xff] %v8357_v28  ;;  %v8381_v41 = vmul.f32 %v8181_v52, %v8124_v58  ;;  %v8389_v28 = vmul.f32 %v8126_v9, %v8181_v52  ;;  %v8401_v58 = vmul.f32 %v8133_v54, %v8179_v61 }
 0x448   : > { %11215 = vst [vmem:[#allocation88_spill] sm:$0xff] %v8361_v63  ;;  %11216 = vst [vmem:[#allocation89_spill] sm:$0xff] %v8365_v19  ;;  %v8409_v9 = vmul.f32 %v8179_v61, %v8136_v45 }
 0x449   : > { %11217 = vst [vmem:[#allocation90_spill] sm:$0xff] %v8369_v23  ;;  %11218 = vst [vmem:[#allocation91_spill] sm:$0xff] %v8373_v43  ;;  %v8397_v23 = vmul.f32 %v8181_v52, %v8128_v8  ;;  %v8405_v43 = vmul.f32 %v8133_v54, %v8181_v52  ;;  %v1439_v8 = vmul.f32 %v8179_v61, %v7978_v15 }
 0x44a   : > { %11219 = vst [vmem:[#allocation92_spill] sm:$0xff] %v8377_v10  ;;  %11220 = vst [vmem:[#allocation93_spill] sm:$0xff] %v8381_v41  ;;  %v1504_v54 = vmul.f32 %v8181_v52, %v7986_v21  ;;  %v8437_v41 = vmul.f32 %v8179_v61, %v8002_v38 }
 0x44b   : > { %11221 = vst [vmem:[#allocation94_spill] sm:$0xff] %v8385_v12  ;;  %11222 = vst [vmem:[#allocation95_spill] sm:$0xff] %v8389_v28  ;;  %v8413_v12 = vmul.f32 %v8181_v52, %v8136_v45  ;;  %v1503_v28 = vmul.f32 %v8181_v52, %v7978_v15  ;;  %v1443_v15 = vmul.f32 %v8179_v61, %v7994_v30 }
 0x44c   : > { %11223 = vst [vmem:[#allocation96_spill] sm:$0xff] %v8393_v5  ;;  %11224 = vst [vmem:[#allocation97_spill] sm:$0xff] %v8397_v23  ;;  %v1506_v5 = vmul.f32 %v7982_v0, %v8181_v52 }
 0x44d   : > { %11225 = vst [vmem:[#allocation98_spill] sm:$0xff] %v8401_v58  ;;  %11226 = vst [vmem:[#allocation99_spill] sm:$0xff] %v8405_v43  ;;  %v1440_v58 = vmul.f32 %v8179_v61, %v7986_v21  ;;  %v1441_v43 = vmul.f32 %v7974_v46, %v8179_v61  ;;  %v1567_v45 = vmax.f32 %v1439_v8, %v1503_v28 }
 0x44e   : > { %11227 = vst [vmem:[#allocation100_spill] sm:$0xff] %v8409_v9  ;;  %11228 = vst [vmem:[#allocation101_spill] sm:$0xff] %v8413_v12  ;;  %v1505_v9 = vmul.f32 %v7974_v46, %v8181_v52  ;;  %v1442_v12 = vmul.f32 %v7982_v0, %v8179_v61  ;;  %v1507_v21 = vmul.f32 %v8181_v52, %v7994_v30  ;;  %v11234_v30 = vld [vmem:[#allocation14_spill] sm:$0xff] }
 0x44f   : > { %v1568_v23 = vmax.f32 %v1440_v58, %v1504_v54  ;;  %v1631_v46 = vsub.f32 0.0, %v1567_v45  ;;  %v8441_v8 = vmul.f32 %v8181_v52, %v8002_v38  ;;  %v8445_v0 = vmul.f32 %v7990_v24, %v8179_v61  ;;  %v11298_v36 = vld [vmem:[#allocation88_spill] sm:$0xff] }
 0x450   : > { %v1569_v10 = vmax.f32 %v1441_v43, %v1505_v9  ;;  %v1570_v28 = vmax.f32 %v1442_v12, %v1506_v5  ;;  %v1571_v63 = vmax.f32 %v1443_v15, %v1507_v21  ;;  %v8449_v58 = vmul.f32 %v7990_v24, %v8181_v52  ;;  %v11303_v37 = vld [vmem:[#allocation91_spill] sm:$0xff]  ;;  %v11304_v4 = vld [vmem:[#allocation90_spill] sm:$0xff] }
 0x451   : > { %1823 = vrot.lane.b32.xlu1 %v1631_v46, %s7544_s17  ;;  %v8456_v12 = vmul.f32 %v7998_v34, %v8179_v61  ;;  %v8460_v5 = vmul.f32 %v7998_v34, %v8181_v52  ;;  %v8466_v21 = vmul.f32 %v8179_v61, %v7976_v47  ;;  %v8470_v46 = vmul.f32 %v8181_v52, %v7976_v47 }
 0x452   : > { %v1632_v54 = vsub.f32 0.0, %v1568_v23  ;;  %v8476_v43 = vmul.f32 %v8179_v61, %v7984_v17  ;;  %v8480_v9 = vmul.f32 %v8181_v52, %v7984_v17  ;;  %v8486_v34 = vmul.f32 %v7972_v44, %v8179_v61 }
 0x453   : > { %v8490_v23 = vmul.f32 %v7972_v44, %v8181_v52  ;;  %v8497_v17 = vmul.f32 %v7980_v16, %v8179_v61  ;;  %v8501_v15 = vmul.f32 %v7980_v16, %v8181_v52  ;;  %v8507_v44 = vmul.f32 %v8179_v61, %v7992_v25 }
 0x454   : > { %v1633_v45 = vsub.f32 0.0, %v1569_v10  ;;  %v8517_v38 = vmul.f32 %v8179_v61, %v8000_v35  ;;  %v8521_v16 = vmul.f32 %v8181_v52, %v8000_v35  ;;  %v8527_v19 = vmul.f32 %v11234_v30, %v8179_v61  ;;  %v11314_v53 = vld [vmem:[#allocation98_spill] sm:$0xff] }
 0x455   : > { %1825 = vrot.lane.b32.xlu1 %v1632_v54, %s7544_s17  ;;  %11229 = vst [vmem:[#allocation102_spill] sm:$0xff] %v8501_v15  ;;  %11230 = vst [vmem:[#allocation103_spill] sm:$0xff] %v8507_v44  ;;  %v8511_v54 = vmul.f32 %v8181_v52, %v7992_v25  ;;  %v8531_v10 = vmul.f32 %v11234_v30, %v8181_v52  ;;  %v11236_v25 = vld [vmem:[#allocation18_spill] sm:$0xff]  ;;  %v11239_v44 = vld [vmem:[#allocation23_spill] sm:$0xff]  ;;  %v1634_v24 = vsub.f32 0.0, %v1570_v28 }
 0x456   : > { %11232 = vst [vmem:[#allocation105_spill] sm:$0xff] %v8517_v38  ;;  %11233 = vst [vmem:[#allocation106_spill] sm:$0xff] %v8521_v16  ;;  %v8538_v35 = vmul.f32 %v11236_v25, %v8179_v61  ;;  %v8542_v47 = vmul.f32 %v11236_v25, %v8181_v52  ;;  %v8548_v30 = vmul.f32 %v8179_v61, %v11239_v44  ;;  %v11242_v38 = vld [vmem:[#allocation25_spill] sm:$0xff]  ;;  %v11245_v28 = vld [vmem:[#allocation22_spill] sm:$0xff] }
 0x457   : > { %11231 = vst [vmem:[#allocation104_spill] sm:$0xff] %v8511_v54  ;;  %11235 = vst [vmem:[#allocation107_spill] sm:$0xff] %v8531_v10  ;;  %v8558_v15 = vmul.f32 %v8179_v61, %v11242_v38  ;;  %v8562_v25 = vmul.f32 %v8181_v52, %v11242_v38  ;;  %v1700_v54 = vld [vmem:[%s10943_s5 + $0x28] sm:$0xff]  ;;  %v8571_v10 = vmul.f32 %v11245_v28, %v8179_v61  ;;  %v1635_v38 = vsub.f32 0.0, %v1571_v63 }
 0x458   : > { %11237 = vst [vmem:[#allocation108_spill] sm:$0xff] %v8538_v35  ;;  %11238 = vst [vmem:[#allocation109_spill] sm:$0xff] %v8542_v47  ;;  %v8575_v16 = vmul.f32 %v11245_v28, %v8181_v52  ;;  %v11247_v47 = vld [vmem:[#allocation24_spill] sm:$0xff] }
 0x459   : > { %1827 = vrot.lane.b32.xlu1 %v1633_v45, %s7544_s17  ;;  %11240 = vst [vmem:[#allocation110_spill] sm:$0xff] %v8548_v30  ;;  %v8552_v45 = vmul.f32 %v8181_v52, %v11239_v44  ;;  %11243 = vst [vmem:[#allocation112_spill] sm:$0xff] %v8558_v15  ;;  %v8582_v35 = vmul.f32 %v11247_v47, %v8179_v61  ;;  %v8586_v44 = vmul.f32 %v11247_v47, %v8181_v52  ;;  %v11250_v30 = vld [vmem:[#allocation27_spill] sm:$0xff]  ;;  %v11253_v15 = vld [vmem:[#allocation29_spill] sm:$0xff] }
 0x45a   : > { %11244 = vst [vmem:[#allocation113_spill] sm:$0xff] %v8562_v25  ;;  %11246 = vst [vmem:[#allocation114_spill] sm:$0xff] %v8575_v16  ;;  %v8592_v28 = vmul.f32 %v8179_v61, %v11250_v30  ;;  %2089 = vrot.lane.b32.xlu0 %v1700_v54, %s7542_s24  ;;  %v8603_v47 = vmul.f32 %v8179_v61, %v11253_v15  ;;  %v1706_v16 = vld [vmem:[%s10943_s5 + $0x58] sm:$0xff]  ;;  %v11256_v54 = vld [vmem:[#allocation26_spill] sm:$0xff] }
 0x45b   : > { %11241 = vst [vmem:[#allocation111_spill] sm:$0xff] %v8552_v45  ;;  %11248 = vst [vmem:[#allocation115_spill] sm:$0xff] %v8582_v35  ;;  %v8607_v45 = vmul.f32 %v8181_v52, %v11253_v15  ;;  %v8620_v25 = vmul.f32 %v11256_v54, %v8181_v52  ;;  %v11263_v15 = vmax.f32 %v8437_v41, %v8441_v8 }
 0x45c   : > { %11249 = vst [vmem:[#allocation116_spill] sm:$0xff] %v8586_v44  ;;  %11251 = vst [vmem:[#allocation117_spill] sm:$0xff] %v8592_v28  ;;  %v11258_v44 = vld [vmem:[#allocation28_spill] sm:$0xff]  ;;  %v11260_v28 = vld [vmem:[#allocation31_spill] sm:$0xff] }
 0x45d   : > { %1829 = vrot.lane.b32.xlu1 %v1634_v24, %s7544_s17  ;;  %v8596_v24 = vmul.f32 %v8181_v52, %v11250_v30  ;;  %11254 = vst [vmem:[#allocation119_spill] sm:$0xff] %v8603_v47  ;;  %11255 = vst [vmem:[#allocation120_spill] sm:$0xff] %v8607_v45  ;;  %v8616_v30 = vmul.f32 %v11256_v54, %v8179_v61  ;;  %v8627_v35 = vmul.f32 %v11258_v44, %v8179_v61  ;;  %v11264_v47 = vld [vmem:[#allocation33_spill] sm:$0xff]  ;;  %v11315_v29 = vld [vmem:[#allocation103_spill] sm:$0xff] }
 0x45e   : > { %11257 = vst [vmem:[#allocation121_spill] sm:$0xff] %v8620_v25  ;;  %v8631_v63 = vmul.f32 %v11258_v44, %v8181_v52  ;;  %v8637_v54 = vmul.f32 %v8179_v61, %v11260_v28  ;;  %v1636_v45 = vsub.f32 0.0, %v11263_v15  ;;  %2101 = vrot.lane.b32.xlu0 %v1706_v16, %s7542_s24  ;;  %v8655_v25 = vmul.f32 %v8181_v52, %v11264_v47  ;;  %v11267_v16 = vld [vmem:[#allocation30_spill] sm:$0xff] }
 0x45f   : > { %11252 = vst [vmem:[#allocation118_spill] sm:$0xff] %v8596_v24  ;;  %v8651_v24 = vmul.f32 %v8179_v61, %v11264_v47  ;;  %v8664_v8 = vmul.f32 %v11267_v16, %v8179_v61  ;;  %v8668_v15 = vmul.f32 %v11267_v16, %v8181_v52  ;;  %v11269_v47 = vld [vmem:[#allocation32_spill] sm:$0xff]  ;;  %v11275_v44 = vmax.f32 %v8445_v0, %v8449_v58 }
 0x460   : > { %11259 = vst [vmem:[#allocation122_spill] sm:$0xff] %v8631_v63  ;;  %11261 = vst [vmem:[#allocation123_spill] sm:$0xff] %v8637_v54  ;;  %v8675_v63 = vmul.f32 %v11269_v47, %v8179_v61  ;;  %v8679_v41 = vmul.f32 %v11269_v47, %v8181_v52  ;;  %v11272_v54 = vld [vmem:[#allocation35_spill] sm:$0xff]  ;;  %v11279_v47 = vld [vmem:[#allocation36_spill] sm:$0xff] }
 0x461   : > { %1831 = vrot.lane.b32.xlu1 %v1635_v38, %s7544_s17  ;;  %v8641_v38 = vmul.f32 %v8181_v52, %v11260_v28  ;;  %11265 = vst [vmem:[#allocation125_spill] sm:$0xff] %v8651_v24  ;;  %11266 = vst [vmem:[#allocation126_spill] sm:$0xff] %v8655_v25  ;;  %v1707_v28 = vld [vmem:[%s10943_s5 + $0x60] sm:$0xff]  ;;  %v8685_v16 = vmul.f32 %v8179_v61, %v11272_v54  ;;  %v1637_v25 = vsub.f32 0.0, %v11275_v44  ;;  %v11276_v24 = vld [vmem:[#allocation37_spill] sm:$0xff] }
 0x462   : > { %11268 = vst [vmem:[#allocation127_spill] sm:$0xff] %v8668_v15  ;;  %11270 = vst [vmem:[#allocation128_spill] sm:$0xff] %v8675_v63  ;;  %2103 = vrot.lane.b32.xlu0 %v1707_v28, %s7542_s24  ;;  %v1708_v15 = vld [vmem:[%s10943_s5 + $0x68] sm:$0xff]  ;;  %v8708_v0 = vmul.f32 %v8181_v52, %v11276_v24  ;;  %v11277_v44 = vld [vmem:[#allocation34_spill] sm:$0xff] }
 0x463   : > { %11262 = vst [vmem:[#allocation124_spill] sm:$0xff] %v8641_v38  ;;  %11271 = vst [vmem:[#allocation129_spill] sm:$0xff] %v8679_v41  ;;  %v8699_v38 = vmul.f32 %v8179_v61, %v11276_v24  ;;  %v8712_v58 = vmul.f32 %v11277_v44, %v8179_v61  ;;  %v8717_v28 = vmul.f32 %v11277_v44, %v8181_v52 }
 0x464   : > { %11273 = vst [vmem:[#allocation130_spill] sm:$0xff] %v8685_v16  ;;  %v8721_v41 = vmul.f32 %v11279_v47, %v8179_v61  ;;  %v11282_v24 = vmax.f32 %v8456_v12, %v8460_v5  ;;  %v11284_v5 = vld [vmem:[#allocation41_spill] sm:$0xff] }
 0x465   : > { %1833 = vrot.lane.b32.xlu1 %v1636_v45, %s7544_s17  ;;  %v8689_v45 = vmul.f32 %v8181_v52, %v11272_v54  ;;  %11278 = vst [vmem:[#allocation132_spill] sm:$0xff] %v8717_v28  ;;  %v8725_v54 = vmul.f32 %v11279_v47, %v8181_v52  ;;  %v8751_v16 = vmul.f32 %v8181_v52, %v11284_v5  ;;  %v11285_v47 = vld [vmem:[#allocation38_spill] sm:$0xff] }
 0x466   : > { %11280 = vst [vmem:[#allocation133_spill] sm:$0xff] %v8721_v41  ;;  %2105 = vrot.lane.b32.xlu0 %v1708_v15, %s7542_s24  ;;  %v8760_v28 = vmul.f32 %v11285_v47, %v8179_v61  ;;  %v8764_v12 = vmul.f32 %v11285_v47, %v8181_v52  ;;  %v1710_v41 = vld [vmem:[%s10943_s5 + $0x78] sm:$0xff]  ;;  %v11287_v15 = vmax.f32 %v8476_v43, %v8480_v9  ;;  %v11306_v43 = vld [vmem:[#allocation96_spill] sm:$0xff] }
 0x467   : > { %11274 = vst [vmem:[#allocation131_spill] sm:$0xff] %v8689_v45  ;;  %11281 = vst [vmem:[#allocation134_spill] sm:$0xff] %v8725_v54  ;;  %v1638_v45 = vsub.f32 0.0, %v11282_v24  ;;  %v8747_v24 = vmul.f32 %v8179_v61, %v11284_v5  ;;  %v11305_v9 = vld [vmem:[#allocation97_spill] sm:$0xff] }
 0x469   : > { %1835 = vrot.lane.b32.xlu1 %v1637_v25, %s7544_s17  ;;  %v11283_v25 = vld [vmem:[#allocation39_spill] sm:$0xff] }
 0x46a   : > { %v8734_v63 = vmul.f32 %v8179_v61, %v11283_v25  ;;  %v8738_v44 = vmul.f32 %v8181_v52, %v11283_v25  ;;  %v1709_v25 = vld [vmem:[%s10943_s5 + $0x70] sm:$0xff]  ;;  %v11286_v52 = vmax.f32 %v8466_v21, %v8470_v46  ;;  %v1712_v21 = vld [vmem:[%s10943_s5 + $0x88] sm:$0xff] }
 0x46b   : > { %2107 = vrot.lane.b32.xlu0 %v1709_v25, %s7542_s24  ;;  %v1711_v25 = vld [vmem:[%s10943_s5 + $0x80] sm:$0xff] }
 0x46c   : > { %v1639_v47 = vsub.f32 0.0, %v11286_v52  ;;  %v11292_v52 = vmax.f32 %v8486_v34, %v8490_v23  ;;  %v11312_v23 = vld [vmem:[#allocation94_spill] sm:$0xff]  ;;  %v11313_v34 = vld [vmem:[#allocation99_spill] sm:$0xff] }
 0x46d   : > { %1837 = vrot.lane.b32.xlu1 %v1638_v45, %s7544_s17  ;;  %v1640_v45 = vsub.f32 0.0, %v11287_v15 }
 0x46e   : > { %v1641_v5 = vsub.f32 0.0, %v11292_v52 }
 0x46f   : > { %2109 = vrot.lane.b32.xlu0 %v1710_v41, %s7542_s24  ;;  %v11309_v41 = vld [vmem:[#allocation102_spill] sm:$0xff] }
 0x470   : > { %v11310_v27 = vmax.f32 %v8497_v17, %v11309_v41  ;;  %v1714_v17 = vld [vmem:[%s10943_s5 + $0x98] sm:$0xff] }
 0x471   : > { %1839 = vrot.lane.b32.xlu1 %v1639_v47, %s7544_s17  ;;  %v11316_v47 = vld [vmem:[#allocation104_spill] sm:$0xff] }
 0x472   : > { %v1642_v46 = vsub.f32 0.0, %v11310_v27  ;;  %v11317_v15 = vmax.f32 %v11315_v29, %v11316_v47  ;;  %v11318_v27 = vld [vmem:[#allocation105_spill] sm:$0xff]  ;;  %v11321_v29 = vld [vmem:[#allocation107_spill] sm:$0xff] }
 0x473   : > { %2111 = vrot.lane.b32.xlu0 %v1711_v25, %s7542_s24  ;;  %v11302_v25 = vld [vmem:[#allocation86_spill] sm:$0xff]  ;;  %v11322_v47 = vmax.f32 %v8527_v19, %v11321_v29 }
 0x474   : > { %v1643_v54 = vsub.f32 0.0, %v11317_v15  ;;  %v11326_v19 = vld [vmem:[#allocation110_spill] sm:$0xff] }
 0x475   : > { %1841 = vrot.lane.b32.xlu1 %v1640_v45, %s7544_s17  ;;  %v1713_v45 = vld [vmem:[%s10943_s5 + $0x90] sm:$0xff]  ;;  %v1645_v15 = vsub.f32 0.0, %v11322_v47  ;;  %v1718_v47 = vld [vmem:[%s10943_s5 + $0xb8] sm:$0xff] }
 0x477   : > { %2113 = vrot.lane.b32.xlu0 %v1712_v21, %s7542_s24  ;;  %v11319_v21 = vld [vmem:[#allocation106_spill] sm:$0xff] }
 0x478   : > { %v11320_v41 = vmax.f32 %v11318_v27, %v11319_v21 }
 0x479   : > { %1843 = vrot.lane.b32.xlu1 %v1641_v5, %s7544_s17  ;;  %v11311_v5 = vld [vmem:[#allocation95_spill] sm:$0xff] }
 0x47a   : > { %v1629_v61 = vmax.f32 %v11312_v23, %v11311_v5  ;;  %v1644_v52 = vsub.f32 0.0, %v11320_v41  ;;  %v11327_v41 = vld [vmem:[#allocation111_spill] sm:$0xff] }
 0x47b   : > { %2115 = vrot.lane.b32.xlu0 %v1713_v45, %s7542_s24  ;;  %v11323_v45 = vld [vmem:[#allocation108_spill] sm:$0xff] }
 0x47d   : > { %1845 = vrot.lane.b32.xlu1 %v1642_v46, %s7544_s17  ;;  %v1715_v46 = vld [vmem:[%s10943_s5 + $0xa0] sm:$0xff] }
 0x47f   : > { %2117 = vrot.lane.b32.xlu0 %v1714_v17, %s7542_s24  ;;  %v11324_v17 = vld [vmem:[#allocation109_spill] sm:$0xff] }
 0x480   : > { %v11325_v27 = vmax.f32 %v11323_v45, %v11324_v17 }
 0x481   : > { %1847 = vrot.lane.b32.xlu1 %v1643_v54, %s7544_s17  ;;  %v1716_v54 = vld [vmem:[%s10943_s5 + $0xa8] sm:$0xff] }
 0x482   : > { %v1646_v21 = vsub.f32 0.0, %v11325_v27  ;;  %v1719_v27 = vld [vmem:[%s10943_s5 + $0xc0] sm:$0xff] }
 0x483   : > { %2119 = vrot.lane.b32.xlu0 %v1715_v46, %s7542_s24  ;;  %v11328_v46 = vmax.f32 %v11326_v19, %v11327_v41  ;;  %v1720_v41 = vld [vmem:[%s10943_s5 + $0xc8] sm:$0xff] }
 0x485   : > { %1849 = vrot.lane.b32.xlu1 %v1644_v52, %s7544_s17  ;;  %v1717_v52 = vld [vmem:[%s10943_s5 + $0xb0] sm:$0xff]  ;;  %v1647_v29 = vsub.f32 0.0, %v11328_v46  ;;  %v11334_v46 = vld [vmem:[#allocation115_spill] sm:$0xff] }
 0x487   : > { %2121 = vrot.lane.b32.xlu0 %v1716_v54, %s7542_s24  ;;  %v11330_v54 = vld [vmem:[#allocation113_spill] sm:$0xff] }
 0x489   : > { %1851 = vrot.lane.b32.xlu1 %v1645_v15, %s7544_s17  ;;  %v11329_v15 = vld [vmem:[#allocation112_spill] sm:$0xff] }
 0x48a   : > { %v11331_v45 = vmax.f32 %v11329_v15, %v11330_v54  ;;  %v1721_v54 = vld [vmem:[%s10943_s5 + $0xd0] sm:$0xff] }
 0x48b   : > { %2123 = vrot.lane.b32.xlu0 %v1717_v52, %s7542_s24 }
 0x48c   : > { %v1648_v17 = vsub.f32 0.0, %v11331_v45  ;;  %v11338_v45 = vld [vmem:[#allocation118_spill] sm:$0xff] }
 0x48d   : > { %1853 = vrot.lane.b32.xlu1 %v1646_v21, %s7544_s17  ;;  %v11332_v21 = vld [vmem:[#allocation114_spill] sm:$0xff] }
 0x48e   : > { %v11333_v52 = vmax.f32 %v8571_v10, %v11332_v21  ;;  %v11337_v10 = vld [vmem:[#allocation117_spill] sm:$0xff] }
 0x48f   : > { %2125 = vrot.lane.b32.xlu0 %v1718_v47, %s7542_s24  ;;  %v1722_v21 = vld [vmem:[%s10943_s5 + $0xd8] sm:$0xff] }
 0x490   : > { %v1649_v19 = vsub.f32 0.0, %v11333_v52  ;;  %v11340_v52 = vld [vmem:[#allocation119_spill] sm:$0xff] }
 0x491   : > { %1855 = vrot.lane.b32.xlu1 %v1647_v29, %s7544_s17  ;;  %v11335_v29 = vld [vmem:[#allocation116_spill] sm:$0xff] }
 0x492   : > { %v11336_v47 = vmax.f32 %v11334_v46, %v11335_v29  ;;  %v1723_v29 = vld [vmem:[%s10943_s5 + $0xe0] sm:$0xff] }
 0x493   : > { %2127 = vrot.lane.b32.xlu0 %v1719_v27, %s7542_s24 }
 0x494   : > { %v1650_v15 = vsub.f32 0.0, %v11336_v47  ;;  %v11343_v47 = vld [vmem:[#allocation121_spill] sm:$0xff] }
 0x495   : > { %1857 = vrot.lane.b32.xlu1 %v1648_v17, %s7544_s17  ;;  %v11339_v17 = vmax.f32 %v11337_v10, %v11338_v45  ;;  %v1724_v10 = vld [vmem:[%s10943_s5 + $0xe8] sm:$0xff] }
 0x497   : > { %2129 = vrot.lane.b32.xlu0 %v1720_v41, %s7542_s24  ;;  %v1651_v27 = vsub.f32 0.0, %v11339_v17  ;;  %v11345_v17 = vld [vmem:[#allocation122_spill] sm:$0xff] }
 0x499   : > { %1859 = vrot.lane.b32.xlu1 %v1649_v19, %s7544_s17  ;;  %v11341_v19 = vld [vmem:[#allocation120_spill] sm:$0xff] }
 0x49a   : > { %v11342_v41 = vmax.f32 %v11340_v52, %v11341_v19  ;;  %v11347_v52 = vmov 0.0   ;;  %v11348_v19 = vld [vmem:[#allocation123_spill] sm:$0xff] }
 0x49b   : > { %2131 = vrot.lane.b32.xlu0 %v1721_v54, %s7542_s24 }
 0x49c   : > { %v1652_v46 = vsub.f32 0.0, %v11342_v41  ;;  %v11349_v41 = vld [vmem:[#allocation124_spill] sm:$0xff] }
 0x49d   : > { %1861 = vrot.lane.b32.xlu1 %v1650_v15, %s7544_s17  ;;  %v11344_v15 = vmax.f32 %v8616_v30, %v11343_v47  ;;  %v1725_v30 = vld [vmem:[%s10943_s5 + $0xf0] sm:$0xff]  ;;  %v11351_v47 = vld [vmem:[#allocation125_spill] sm:$0xff] }
 0x49f   : > { %2133 = vrot.lane.b32.xlu0 %v1722_v21, %s7542_s24  ;;  %v1653_v54 = vsub.f32 0.0, %v11344_v15  ;;  %v11352_v15 = vld [vmem:[#allocation126_spill] sm:$0xff] }
 0x4a1   : > { %1863 = vrot.lane.b32.xlu1 %v1651_v27, %s7544_s17  ;;  %v11346_v27 = vmax.f32 %v8627_v35, %v11345_v17  ;;  %v1726_v35 = vld [vmem:[%s10943_s5 + $0xf8] sm:$0xff]  ;;  %v11354_v17 = vld [vmem:[#allocation127_spill] sm:$0xff] }
 0x4a3   : > { %2135 = vrot.lane.b32.xlu0 %v1723_v29, %s7542_s24  ;;  %v1654_v21 = vsub.f32 0.0, %v11346_v27  ;;  %v11355_v27 = vmax.f32 %v8664_v8, %v11354_v17  ;;  %v8990_v8 = vpop.permute.xlu1 %2079 }
 0x4a5   : > { %1865 = vrot.lane.b32.xlu1 %v1652_v46, %s7544_s17  ;;  %v1320_v45 = vpop.trf.xlu0  ;;  %v11350_v46 = vmax.f32 %v11348_v19, %v11349_v41  ;;  %v11356_v19 = vld [vmem:[#allocation128_spill] sm:$0xff]  ;;  %v11357_v41 = vld [vmem:[#allocation129_spill] sm:$0xff] }
 0x4a6   : > { %6221 = vmatmul.mubr.msk.f32.vlgmr.msra.gmra.mrb[28].mxu0 %vm606_vm0, %v1320_v45  ;;  %v1727_v45 = vld [vmem:[%s10943_s5 + $0x100] sm:$0xff] }
 0x4a7   : > { %2137 = vrot.lane.b32.xlu0 %v1724_v10, %s7542_s24  ;;  %2664 = vmatprep.mubr.f32.mxu0 %v11347_v52  ;;  %v1655_v29 = vsub.f32 0.0, %v11350_v46  ;;  %v11358_v46 = vmax.f32 %v11356_v19, %v11357_v41  ;;  %v9001_v17 = vpop.permute.xlu1 %2081  ;;  %v11363_v19 = vld [vmem:[#allocation132_spill] sm:$0xff] }
 0x4a8   : > { %v11364_v41 = vmax.f32 %v8712_v58, %v11363_v19  ;;  %v1733_v58 = vld [vmem:[%s10943_s5 + $0x130] sm:$0xff]  ;;  %v1735_v19 = vld [vmem:[%s10943_s5 + $0x140] sm:$0xff] }
 0x4a9   : > { %1867 = vrot.lane.b32.xlu1 %v1653_v54, %s7544_s17  ;;  %v11353_v54 = vmax.f32 %v11351_v47, %v11352_v15  ;;  %v11359_v47 = vld [vmem:[#allocation130_spill] sm:$0xff]  ;;  %v11360_v15 = vld [vmem:[#allocation131_spill] sm:$0xff] }
 0x4ab   : > { %2139 = vrot.lane.b32.xlu0 %v1725_v30, %s7542_s24  ;;  %v1656_v10 = vsub.f32 0.0, %v11353_v54  ;;  %v1728_v30 = vld [vmem:[%s10943_s5 + $0x108] sm:$0xff]  ;;  %v11361_v54 = vmax.f32 %v11359_v47, %v11360_v15 }
 0x4ad   : > { %1869 = vrot.lane.b32.xlu1 %v1654_v21, %s7544_s17  ;;  %v1657_v21 = vsub.f32 0.0, %v11355_v27  ;;  %v11362_v27 = vmax.f32 %v8699_v38, %v8708_v0  ;;  %v9018_v38 = vpop.permute.xlu1 %2083  ;;  %v11365_v0 = vld [vmem:[#allocation133_spill] sm:$0xff] }
 0x4af   : > { %2141 = vrot.lane.b32.xlu0 %v1726_v35, %s7542_s24  ;;  %v1729_v35 = vld [vmem:[%s10943_s5 + $0x110] sm:$0xff] }
 0x4b1   : > { %1871 = vrot.lane.b32.xlu1 %v1655_v29, %s7544_s17  ;;  %v1658_v29 = vsub.f32 0.0, %v11358_v46  ;;  %v1661_v46 = vsub.f32 0.0, %v11364_v41 }
 0x4b3   : > { %2143 = vrot.lane.b32.xlu0 %v1727_v45, %s7542_s24  ;;  %v1730_v45 = vld [vmem:[%s10943_s5 + $0x118] sm:$0xff] }
 0x4b5   : > { %1873 = vrot.lane.b32.xlu1 %v1656_v10, %s7544_s17  ;;  %v1659_v10 = vsub.f32 0.0, %v11361_v54  ;;  %v9029_v54 = vpop.permute.xlu1 %2085 }
 0x4b7   : > { %2145 = vrot.lane.b32.xlu0 %v1728_v30, %s7542_s24  ;;  %v1731_v30 = vld [vmem:[%s10943_s5 + $0x120] sm:$0xff] }
 0x4b9   : > { %1875 = vrot.lane.b32.xlu1 %v1657_v21, %s7544_s17  ;;  %v1660_v21 = vsub.f32 0.0, %v11362_v27  ;;  %v1734_v27 = vld [vmem:[%s10943_s5 + $0x138] sm:$0xff] }
 0x4bb   : > { %2147 = vrot.lane.b32.xlu0 %v1729_v35, %s7542_s24  ;;  %v11366_v35 = vld [vmem:[#allocation134_spill] sm:$0xff] }
 0x4bc   : > { %v11367_v47 = vmax.f32 %v11365_v0, %v11366_v35  ;;  %v1738_v35 = vld [vmem:[%s10943_s5 + $0x158] sm:$0xff] }
 0x4bd   : > { %1877 = vrot.lane.b32.xlu1 %v1658_v29, %s7544_s17  ;;  %v1732_v29 = vld [vmem:[%s10943_s5 + $0x128] sm:$0xff] }
 0x4be   : > { %v1662_v15 = vsub.f32 0.0, %v11367_v47 }
 0x4bf   : > { %2149 = vrot.lane.b32.xlu0 %v1730_v45, %s7542_s24 }
 0x4c1   : > { %1879 = vrot.lane.b32.xlu1 %v1659_v10, %s7544_s17  ;;  %v11368_v10 = vmax.f32 %v8734_v63, %v8738_v44  ;;  %v9046_v63 = vpop.permute.xlu1 %2087  ;;  %v11370_v44 = vmax.f32 %v8760_v28, %v8764_v12  ;;  %v1737_v28 = vld [vmem:[%s10943_s5 + $0x150] sm:$0xff]  ;;  %v11372_v12 = vmax.f32 %v8189_v6, %v8237_v62  ;;  %v1739_v6 = vld [vmem:[%s10943_s5 + $0x160] sm:$0xff] }
 0x4c3   : > { %2151 = vrot.lane.b32.xlu0 %v1731_v30, %s7542_s24  ;;  %v1663_v45 = vsub.f32 0.0, %v11368_v10  ;;  %v1665_v41 = vsub.f32 0.0, %v11370_v44  ;;  %v1667_v0 = vsub.f32 0.0, %v11372_v12  ;;  %v1744_v44 = vld [vmem:[%s10943_s5 + $0x188] sm:$0xff] }
 0x4c5   : > { %1881 = vrot.lane.b32.xlu1 %v1660_v21, %s7544_s17  ;;  %v11369_v21 = vmax.f32 %v8747_v24, %v8751_v16  ;;  %v1736_v16 = vld [vmem:[%s10943_s5 + $0x148] sm:$0xff]  ;;  %v9057_v24 = vpop.permute.xlu1 %2091 }
 0x4c7   : > { %2153 = vrot.lane.b32.xlu0 %v1732_v29, %s7542_s24  ;;  %v1664_v30 = vsub.f32 0.0, %v11369_v21  ;;  %v11377_v21 = vmax.f32 %v8209_v60, %v8257_v20  ;;  %v11379_v60 = vmax.f32 %v8217_v14, %v8265_v3  ;;  %v1746_v3 = vld [vmem:[%s10943_s5 + $0x198] sm:$0xff]  ;;  %v11381_v14 = vmax.f32 %v8281_v18, %v8285_v2  ;;  %v1748_v18 = vld [vmem:[%s10943_s5 + $0x1a8] sm:$0xff] }
 0x4c9   : > { %1883 = vrot.lane.b32.xlu1 %v1661_v46, %s7544_s17  ;;  %v11371_v46 = vmax.f32 %v8185_v39, %v8233_v59  ;;  %v9074_v39 = vpop.permute.xlu1 %2093  ;;  %v11373_v59 = vmax.f32 %v8193_v49, %v8241_v11  ;;  %v1740_v49 = vld [vmem:[%s10943_s5 + $0x168] sm:$0xff]  ;;  %v11375_v11 = vmax.f32 %v8201_v50, %v8249_v48  ;;  %v1742_v48 = vld [vmem:[%s10943_s5 + $0x178] sm:$0xff] }
 0x4cb   : > { %2155 = vrot.lane.b32.xlu0 %v1733_v58, %s7542_s24  ;;  %v1666_v29 = vsub.f32 0.0, %v11371_v46  ;;  %v1668_v47 = vsub.f32 0.0, %v11373_v59  ;;  %v1670_v10 = vsub.f32 0.0, %v11375_v11  ;;  %v11389_v11 = vld [vmem:[#allocation73_spill] sm:$0xff] }
 0x4cd   : > { %1885 = vrot.lane.b32.xlu1 %v1662_v15, %s7544_s17  ;;  %v9085_v62 = vpop.permute.xlu1 %2095  ;;  %v11374_v15 = vmax.f32 %v8197_v22, %v8245_v13  ;;  %v11376_v13 = vmax.f32 %v8205_v55, %v8253_v40  ;;  %v1743_v40 = vld [vmem:[%s10943_s5 + $0x180] sm:$0xff]  ;;  %v11378_v55 = vmax.f32 %v8213_v1, %v8261_v42  ;;  %v1745_v42 = vld [vmem:[%s10943_s5 + $0x190] sm:$0xff] }
 0x4cf   : > { %2157 = vrot.lane.b32.xlu0 %v1734_v27, %s7542_s24  ;;  %v1669_v58 = vsub.f32 0.0, %v11374_v15  ;;  %v1671_v27 = vsub.f32 0.0, %v11376_v13  ;;  %v1752_v13 = vld [vmem:[%s10943_s5 + $0x1c8] sm:$0xff] }
 0x4d1   : > { %1887 = vrot.lane.b32.xlu1 %v1663_v45, %s7544_s17  ;;  %v1741_v45 = vld [vmem:[%s10943_s5 + $0x170] sm:$0xff]  ;;  %v9102_v22 = vpop.permute.xlu1 %2097 }
 0x4d3   : > { %2159 = vrot.lane.b32.xlu0 %v1735_v19, %s7542_s24  ;;  %v1673_v19 = vsub.f32 0.0, %v11378_v55 }
 0x4d5   : > { %1889 = vrot.lane.b32.xlu1 %v1664_v30, %s7544_s17  ;;  %v9113_v50 = vpop.permute.xlu1 %2099  ;;  %v1672_v30 = vsub.f32 0.0, %v11377_v21 }
 0x4d7   : > { %2161 = vrot.lane.b32.xlu0 %v1736_v16, %s7542_s24  ;;  %v11380_v16 = vmax.f32 %v8221_v51, %v8269_v33  ;;  %v11382_v51 = vmax.f32 %v8225_v57, %v8273_v32  ;;  %v1749_v32 = vld [vmem:[%s10943_s5 + $0x1b0] sm:$0xff]  ;;  %v11384_v57 = vmax.f32 %v8297_v7, %v8301_v56  ;;  %v1751_v7 = vld [vmem:[%s10943_s5 + $0x1c0] sm:$0xff] }
 0x4d9   : > { %1891 = vrot.lane.b32.xlu1 %v1665_v41, %s7544_s17  ;;  %v9130_v20 = vpop.permute.xlu1 %1823  ;;  %v1674_v41 = vsub.f32 0.0, %v11379_v60  ;;  %v1675_v46 = vsub.f32 0.0, %v11380_v16  ;;  %v1677_v12 = vsub.f32 0.0, %v11382_v51  ;;  %v1679_v59 = vsub.f32 0.0, %v11384_v57  ;;  %v11395_v60 = vld [vmem:[#allocation81_spill] sm:$0xff] }
 0x4da   : > { %v1754_v16 = vld [vmem:[%s10943_s5 + $0x1d8] sm:$0xff] }
 0x4db   : > { %2163 = vrot.lane.b32.xlu0 %v1737_v28, %s7542_s24  ;;  %v1747_v28 = vld [vmem:[%s10943_s5 + $0x1a0] sm:$0xff] }
 0x4dd   : > { %1893 = vrot.lane.b32.xlu1 %v1666_v29, %s7544_s17  ;;  %v9141_v1 = vpop.permute.xlu1 %1825  ;;  %v1676_v29 = vsub.f32 0.0, %v11381_v14  ;;  %v11397_v14 = vld [vmem:[#allocation84_spill] sm:$0xff] }
 0x4df   : > { %2165 = vrot.lane.b32.xlu0 %v1738_v35, %s7542_s24 }
 0x4e1   : > { %1895 = vrot.lane.b32.xlu1 %v1667_v0, %s7544_s17  ;;  %v9158_v33 = vpop.permute.xlu1 %1827  ;;  %v11383_v0 = vmax.f32 %v8229_v31, %v8277_v26  ;;  %v11385_v31 = vld [vmem:[#allocation76_spill] sm:$0xff] }
 0x4e3   : > { %2167 = vrot.lane.b32.xlu0 %v1739_v6, %s7542_s24  ;;  %v1678_v35 = vsub.f32 0.0, %v11383_v0  ;;  %v11386_v6 = vld [vmem:[#allocation77_spill] sm:$0xff]  ;;  %v11400_v0 = vld [vmem:[#allocation78_spill] sm:$0xff] }
 0x4e4   : > { %v11387_v15 = vmax.f32 %v11385_v31, %v11386_v6  ;;  %v11403_v31 = vld [vmem:[#allocation82_spill] sm:$0xff]  ;;  %v11404_v6 = vld [vmem:[#allocation83_spill] sm:$0xff] }
 0x4e5   : > { %1897 = vrot.lane.b32.xlu1 %v1668_v47, %s7544_s17  ;;  %v9169_v2 = vpop.permute.xlu1 %1829  ;;  %v1750_v47 = vld [vmem:[%s10943_s5 + $0x1b8] sm:$0xff] }
 0x4e7   : > { %2169 = vrot.lane.b32.xlu0 %v1740_v49, %s7542_s24  ;;  %v11388_v49 = vld [vmem:[#allocation72_spill] sm:$0xff] }
 0x4e9   : > { %1899 = vrot.lane.b32.xlu1 %v1669_v58, %s7544_s17  ;;  %v9186_v26 = vpop.permute.xlu1 %1831  ;;  %v1680_v58 = vsub.f32 0.0, %v11387_v15  ;;  %v11405_v15 = vmax.f32 %v11403_v31, %v11404_v6 }
 0x4eb   : > { %2171 = vrot.lane.b32.xlu0 %v1741_v45, %s7542_s24 }
 0x4ed   : > { %1901 = vrot.lane.b32.xlu1 %v1670_v10, %s7544_s17  ;;  %v9197_v56 = vpop.permute.xlu1 %1833  ;;  %v11390_v10 = vmax.f32 %v11388_v49, %v11389_v11 }
 0x4ef   : > { %2173 = vrot.lane.b32.xlu0 %v1742_v48, %s7542_s24  ;;  %v1681_v45 = vsub.f32 0.0, %v11390_v10  ;;  %v11392_v48 = vld [vmem:[#allocation75_spill] sm:$0xff]  ;;  %v11406_v10 = vld [vmem:[#allocation89_spill] sm:$0xff] }
 0x4f1   : > { %1903 = vrot.lane.b32.xlu1 %v1671_v27, %s7544_s17  ;;  %v11391_v27 = vld [vmem:[#allocation74_spill] sm:$0xff]  ;;  %v9214_v55 = vpop.permute.xlu1 %1835 }
 0x4f2   : > { %v11393_v21 = vmax.f32 %v11391_v27, %v11392_v48  ;;  %v1758_v27 = vld [vmem:[%s10943_s5 + $0x1f8] sm:$0xff] }
 0x4f3   : > { %2175 = vrot.lane.b32.xlu0 %v1743_v40, %s7542_s24  ;;  %v1753_v40 = vld [vmem:[%s10943_s5 + $0x1d0] sm:$0xff] }
 0x4f5   : > { %1905 = vrot.lane.b32.xlu1 %v1672_v30, %s7544_s17  ;;  %v1682_v30 = vsub.f32 0.0, %v11393_v21  ;;  %v11408_v21 = vld [vmem:[#allocation92_spill] sm:$0xff] }
 0x4f7   : > { %2177 = vrot.lane.b32.xlu0 %v1744_v44, %s7542_s24  ;;  %v11394_v44 = vld [vmem:[#allocation80_spill] sm:$0xff] }
 0x4f9   : > { %1907 = vrot.lane.b32.xlu1 %v1673_v19, %s7544_s17  ;;  %v9216_v19 = vpop.permute.xlu0 %2089 }
 0x4fb   : > { %2179 = vrot.lane.b32.xlu0 %v1745_v42, %s7542_s24 }
 0x4fd   : > { %1909 = vrot.lane.b32.xlu1 %v1674_v41, %s7544_s17  ;;  %v11396_v41 = vmax.f32 %v11394_v44, %v11395_v60 }
 0x4ff   : > { %2181 = vrot.lane.b32.xlu0 %v1746_v3, %s7542_s24  ;;  %v1683_v42 = vsub.f32 0.0, %v11396_v41  ;;  %v9229_v3 = vpop.permute.xlu1 %1837 }
 0x501   : > { %1911 = vrot.lane.b32.xlu1 %v1675_v46, %s7544_s17  ;;  %v9226_v46 = vpop.permute.xlu0 %2101 }
 0x503   : > { %2183 = vrot.lane.b32.xlu0 %v1747_v28, %s7542_s24 }
 0x505   : > { %1913 = vrot.lane.b32.xlu1 %v1676_v29, %s7544_s17  ;;  %v11398_v29 = vld [vmem:[#allocation85_spill] sm:$0xff] }
 0x506   : > { %v11399_v28 = vmax.f32 %v11397_v14, %v11398_v29  ;;  %v11413_v14 = vmax.f32 %v11304_v4, %v11303_v37  ;;  %v1693_v4 = vsub.f32 0.0, %v1629_v61  ;;  %v11418_v37 = vmax.f32 %v11314_v53, %v11313_v34 }
 0x507   : > { %2185 = vrot.lane.b32.xlu0 %v1748_v18, %s7542_s24  ;;  %v9239_v18 = vpop.permute.xlu0 %2103 }
 0x508   : > { %v1684_v51 = vsub.f32 0.0, %v11399_v28  ;;  %v1690_v29 = vsub.f32 0.0, %v11413_v14  ;;  %v11414_v28 = vmax.f32 %v11306_v43, %v11305_v9  ;;  %v1694_v9 = vsub.f32 0.0, %v11418_v37  ;;  %v11419_v14 = vld [vmem:[#allocation9_spill] sm:$0xff]  ;;  %v11422_v37 = vld [vmem:[#allocation70_spill] sm:$0xff] }
 0x509   : > { %1915 = vrot.lane.b32.xlu1 %v1677_v12, %s7544_s17  ;;  %v1755_v12 = vld [vmem:[%s10943_s5 + $0x1e0] sm:$0xff] }
 0x50b   : > { %2187 = vrot.lane.b32.xlu0 %v1749_v32, %s7542_s24  ;;  %v9258_v49 = vpop.permute.xlu0 %2105 }
 0x50d   : > { %1917 = vrot.lane.b32.xlu1 %v1678_v35, %s7544_s17  ;;  %v11401_v35 = vld [vmem:[#allocation79_spill] sm:$0xff] }
 0x50e   : > { %v11402_v32 = vmax.f32 %v11400_v0, %v11401_v35  ;;  %v11416_v0 = vld [vmem:[#allocation101_spill] sm:$0xff] }
 0x50f   : > { %2189 = vrot.lane.b32.xlu0 %v1750_v47, %s7542_s24  ;;  %v9248_v47 = vpop.permute.xlu1 %1839  ;;  %v9271_v48 = vpop.permute.xlu0 %2107 }
 0x510   : > { %v1685_v57 = vsub.f32 0.0, %v11402_v32 }
 0x511   : > { %1919 = vrot.lane.b32.xlu1 %v1679_v59, %s7544_s17  ;;  %v1756_v59 = vld [vmem:[%s10943_s5 + $0x1e8] sm:$0xff] }
 0x513   : > { %2191 = vrot.lane.b32.xlu0 %v1751_v7, %s7542_s24  ;;  %v1757_v7 = vld [vmem:[%s10943_s5 + $0x1f0] sm:$0xff]  ;;  %v9261_v11 = vpop.permute.xlu1 %1841  ;;  %v9314_v31 = vpop.permute.xlu0 %2109 }
 0x515   : > { %1921 = vrot.lane.b32.xlu1 %v1680_v58, %s7544_s17  ;;  %v1686_v58 = vsub.f32 0.0, %v11405_v15 }
 0x517   : > { %2193 = vrot.lane.b32.xlu0 %v1752_v13, %s7542_s24  ;;  %v9277_v60 = vpop.permute.xlu1 %1843  ;;  %v9318_v15 = vpop.permute.xlu0 %2111 }
 0x519   : > { %1923 = vrot.lane.b32.xlu1 %v1681_v45, %s7544_s17  ;;  %v11407_v45 = vmax.f32 %v11298_v36, %v11406_v10  ;;  %v11411_v36 = vld [vmem:[#allocation87_spill] sm:$0xff] }
 0x51a   : > { %v11412_v41 = vmax.f32 %v11302_v25, %v11411_v36  ;;  %v11415_v25 = vld [vmem:[#allocation100_spill] sm:$0xff] }
 0x51b   : > { %2195 = vrot.lane.b32.xlu0 %v1753_v40, %s7542_s24  ;;  %v1687_v13 = vsub.f32 0.0, %v11407_v45  ;;  %v11417_v35 = vmax.f32 %v11415_v25, %v11416_v0  ;;  %v9322_v61 = vpop.permute.xlu0 %2113  ;;  %v1301_v45 = vld [vmem:[%s10942_s4 + $0x48] sm:$0xff] }
 0x51d   : > { %1925 = vrot.lane.b32.xlu1 %v1682_v30, %s7544_s17  ;;  %v11409_v30 = vld [vmem:[#allocation93_spill] sm:$0xff]  ;;  %v1692_v32 = vsub.f32 0.0, %v11417_v35 }
 0x51e   : > { %v11410_v40 = vmax.f32 %v11408_v21, %v11409_v30  ;;  %v11420_v35 = vld [vmem:[#allocation13_spill] sm:$0xff] }
 0x51f   : > { %2197 = vrot.lane.b32.xlu0 %v1754_v16, %s7542_s24  ;;  %v9284_v16 = vpop.permute.xlu1 %1845  ;;  %v9326_v53 = vpop.permute.xlu0 %2115 }
 0x520   : > { %v1688_v44 = vsub.f32 0.0, %v11410_v40 }
 0x521   : > { %1927 = vrot.lane.b32.xlu1 %v1683_v42, %s7544_s17  ;;  %v1689_v42 = vsub.f32 0.0, %v11412_v41 }
 0x523   : > { %2199 = vrot.lane.b32.xlu0 %v1755_v12, %s7542_s24  ;;  %v9293_v12 = vpop.permute.xlu1 %1847 }
 0x525   : > { %1929 = vrot.lane.b32.xlu1 %v1684_v51, %s7544_s17  ;;  %v1691_v51 = vsub.f32 0.0, %v11414_v28 }
 0x527   : > { %2201 = vrot.lane.b32.xlu0 %v1756_v59, %s7542_s24 }
 0x529   : > { %1931 = vrot.lane.b32.xlu1 %v1685_v57, %s7544_s17  ;;  %v9300_v57 = vpop.permute.xlu1 %1849 }
 0x52b   : > { %2203 = vrot.lane.b32.xlu0 %v1757_v7, %s7542_s24  ;;  %v1300_v7 = vld [vmem:[%s10942_s4 + $0x40] sm:$0xff] }
 0x52d   : > { %1933 = vrot.lane.b32.xlu1 %v1686_v58, %s7544_s17  ;;  %v9309_v43 = vpop.permute.xlu1 %1851  ;;  %v9330_v58 = vpop.permute.xlu0 %2117 }
 0x52f   : > { %2205 = vrot.lane.b32.xlu0 %v1758_v27, %s7542_s24  ;;  %s10887_s24 = scalar_lea.hbm %s10947_s9, %s6447_s26 }
 0x531   : > { %1935 = vrot.lane.b32.xlu1 %v1687_v13, %s7544_s17  ;;  %v9312_v59 = vpop.permute.xlu1 %1853  ;;  %v9340_v30 = vpop.permute.xlu0 %2119 }
 0x535   : > { %1937 = vrot.lane.b32.xlu1 %v1688_v44, %s7544_s17  ;;  %v9316_v6 = vpop.permute.xlu1 %1855  ;;  %v9350_v28 = vpop.permute.xlu0 %2121 }
 0x539   : > { %1939 = vrot.lane.b32.xlu1 %v1689_v42, %s7544_s17  ;;  %v9320_v23 = vpop.permute.xlu1 %1857  ;;  %v1303_v42 = vld [vmem:[%s10942_s4 + $0x58] sm:$0x3] }
 0x53d   : > { %1941 = vrot.lane.b32.xlu1 %v1690_v29, %s7544_s17  ;;  %v9324_v5 = vpop.permute.xlu1 %1859  ;;  %v2271_v29 = vsel %vm1412_vm1, %v11419_v14, %v9130_v20  ;;  %v11421_v20 = vld [vmem:[#allocation71_spill] sm:$0xff] }
 0x53e   : > { %v2336_v25 = vsel %vm2335_vm3, %v2271_v29, %v8990_v8  ;;  %v11427_v14 = vld [vmem:[#allocation15_spill] sm:$0xff] }
 0x53f   : > { %v2277_v29 = vsel %vm1412_vm1, %v11427_v14, %v9214_v55 }
 0x541   : > { %1943 = vrot.lane.b32.xlu1 %v1691_v51, %s7544_s17  ;;  %v9328_v34 = vpop.permute.xlu1 %1861  ;;  %v1302_v51 = vld [vmem:[%s10942_s4 + $0x50] sm:$0x3] }
 0x545   : > { %1945 = vrot.lane.b32.xlu1 %v1692_v32, %s7544_s17  ;;  %v9335_v10 = vpop.permute.xlu1 %1863  ;;  %v2272_v32 = vsel %vm1412_vm1, %v11420_v35, %v9141_v1 }
 0x546   : > { %v2337_v8 = vsel %vm2335_vm3, %v2272_v32, %v9001_v17  ;;  %v11429_v32 = vld [vmem:[#allocation8_spill] sm:$0xff] }
 0x549   : > { %1947 = vrot.lane.b32.xlu1 %v1693_v4, %s7544_s17  ;;  %v9342_v36 = vpop.permute.xlu1 %1865  ;;  %v9366_v4 = vpop.permute.xlu0 %2123 }
 0x54d   : > { %1949 = vrot.lane.b32.xlu1 %v1694_v9, %s7544_s17  ;;  %v9357_v0 = vpop.permute.xlu1 %1867  ;;  %v11423_v9 = vld [vmem:[#allocation7_spill] sm:$0xff]  ;;  %v9384_v17 = vpop.permute.xlu0 %2125 }
 0x551   : > { %v9375_v1 = vpop.permute.xlu1 %1869 }
 0x579   : > { %v1405_v13 = vpop.f32.mrb[28].mxu0 }
 0x57a   : > { %v1410_v27 = vmul.f32 %v1405_v13, %v1300_v7  ;;  %v1407_v21 = vpop.f32.mrb[29].mxu0  ;;  %v11424_v13 = vld [vmem:[#allocation11_spill] sm:$0xff] }
 0x57b   : > { %v1411_v40 = vmul.f32 %v1407_v21, %v1301_v45 }
 0x57c   : > { %v6971_v41 = vpack.c.bf16 %v1300_v7, %v1410_v27  ;;  %v2273_v7 = vsel %vm1412_vm1, %v11423_v9, %v9158_v33  ;;  %v2274_v27 = vsel %vm1412_vm1, %v11424_v13, %v9169_v2  ;;  %v9388_v33 = vpop.permute.xlu1 %1871  ;;  %v11432_v13 = vld [vmem:[#allocation10_spill] sm:$0xff] }
 0x57d   : > { %v6969_v44 = vpack.c.bf16 %v1301_v45, %v1411_v40  ;;  %v2338_v45 = vsel %vm2335_vm3, %v2273_v7, %v9018_v38  ;;  %v2339_v21 = vsel %vm2335_vm3, %v2274_v27, %v9029_v54  ;;  %v11425_v40 = vld [vmem:[#allocation17_spill] sm:$0xff]  ;;  %v9397_v38 = vpop.permute.xlu0 %2127  ;;  %v11431_v7 = vld [vmem:[#allocation6_spill] sm:$0xff]  ;;  %v2282_v27 = vsel %vm1412_vm1, %v11432_v13, %v9284_v16  ;;  %v11433_v16 = vld [vmem:[#allocation16_spill] sm:$0xff] }
 0x57e   : > { %v11426_v54 = vld [vmem:[#allocation21_spill] sm:$0xff] }
 0x57f   : > { %6970 = vmatprep.subr.bf16.mxu0 %v6969_v44  ;;  %v2275_v44 = vsel %vm1412_vm1, %v11425_v40, %v9186_v26  ;;  %v2283_v40 = vsel %vm1412_vm1, %v11433_v16, %v9293_v12  ;;  %v11434_v12 = vld [vmem:[#allocation20_spill] sm:$0xff]  ;;  %v7052_v16 = vld [vmem:[%s10945_s7 + $0x40] sm:$0xff]  }
 0x580   : > { %6972 = vmatpush1.bf16.msra.mxu0 %v6971_v41  ;;  %v2340_v2 = vsel %vm2335_vm3, %v2275_v44, %v9046_v63  ;;  %v9402_v41 = vpop.permute.xlu1 %1873 }
 0x581   : > { %6222 = vmatprep.subr.msk.mxu0 %vm2593_vm2, %v1303_v42  ;;  %v2276_v42 = vsel %vm1412_vm1, %v11426_v54, %v9197_v56  ;;  %v11428_v56 = vld [vmem:[#allocation19_spill] sm:$0xff] }
 0x582   : > { %v2341_v26 = vsel %vm2335_vm3, %v2276_v42, %v9216_v19  ;;  %v2278_v35 = vsel %vm1412_vm1, %v11428_v56, %v9229_v3  ;;  %v2284_v42 = vsel %vm1412_vm1, %v11434_v12, %v9300_v57 }
 0x583   : > { %v2343_v19 = vsel %vm2335_vm3, %v2278_v35, %v9074_v39  ;;  %v11436_v35 = vld [vmem:[#allocation18_spill] sm:$0xff] }
 0x584   : > { %6223 = vmatpush1.msk.msra.mxu0 %vm2593_vm2, %v1302_v51  ;;  %v9413_v51 = vpop.permute.xlu0 %2129  ;;  %v9417_v63 = vpop.permute.xlu1 %1875 }
 0x585   : > { %6224 = vmatmul.mubr.msk.f32.vlgmr.msra.gmra.mrb[30].mxu0 %vm2400_vm4, %v2336_v25  ;;  %6759 = vmatprep.subr.bf16.mxu0 %v11421_v20  ;;  %v2342_v25 = vsel %vm2335_vm3, %v2277_v29, %v9057_v24  ;;  %v11435_v29 = vld [vmem:[#allocation14_spill] sm:$0xff] }
 0x586   : > { %6760 = vmatpush3.bf16.msra.mxu0 %v11421_v20  ;;  %2670 = vmatprep.mubr.f32.mxu0 %v11347_v52  ;;  %v2279_v20 = vsel %vm1412_vm1, %v11429_v32, %v9248_v47  ;;  %v2285_v57 = vsel %vm1412_vm1, %v11435_v29, %v9309_v43  ;;  %v2286_v43 = vsel %vm1412_vm1, %v11436_v35, %v9312_v59  ;;  %v7048_v32 = vld [vmem:[%s10945_s7 + $0x20] sm:$0xff]   ;;  %v11437_v59 = vld [vmem:[#allocation23_spill] sm:$0xff]  ;;  %v11444_v35 = vld [vmem:[#allocation28_spill] sm:$0xff] }
 0x587   : > { %6761 = vmatprep.subr.bf16.mxu0 %v11422_v37  ;;  %v2344_v3 = vsel %vm2335_vm3, %v2279_v20, %v9085_v62 }
 0x588   : > { %v9426_v55 = vpop.permute.xlu0 %2131  ;;  %v9434_v24 = vpop.permute.xlu1 %1877 }
 0x589   : > { %6225 = vmatmul.mubr.msk.f32.gmra.mrb[32].mxu0 %vm2400_vm4, %v2337_v8 }
 0x58a   : > { %6762 = vmatpush3.bf16.msra.mxu0 %v11422_v37  ;;  %2676 = vmatprep.mubr.f32.mxu0 %v11347_v52  ;;  %v11430_v37 = vld [vmem:[#allocation12_spill] sm:$0xff] }
 0x58b   : > { %v2280_v8 = vsel %vm1412_vm1, %v11430_v37, %v9261_v11  ;;  %v7049_v37 = vld [vmem:[%s10945_s7 + $0x28] sm:$0xff]  }
 0x58c   : > { %v9442_v9 = vpop.permute.xlu0 %2133  ;;  %v9446_v39 = vpop.permute.xlu1 %1879  ;;  %v2345_v47 = vsel %vm2335_vm3, %v2280_v8, %v9102_v22  ;;  %v7044_v22 = vld [vmem:[%s10945_s7] sm:$0xff]  }
 0x58d   : > { %6226 = vmatmul.mubr.msk.f32.gmra.mrb[34].mxu0 %vm2400_vm4, %v2338_v45  ;;  %v2281_v45 = vsel %vm1412_vm1, %v11431_v7, %v9277_v60  ;;  %v7050_v7 = vld [vmem:[%s10945_s7 + $0x30] sm:$0xff]  }
 0x58e   : > { %2682 = vmatprep.mubr.f32.mxu0 %v11347_v52  ;;  %v2346_v11 = vsel %vm2335_vm3, %v2281_v45, %v9113_v50  ;;  %v2347_v50 = vsel %vm2335_vm3, %v2282_v27, %v9226_v46  ;;  %v2348_v46 = vsel %vm2335_vm3, %v2283_v40, %v9239_v18  ;;  %v2349_v18 = vsel %vm2335_vm3, %v2284_v42, %v9258_v49  ;;  %v7051_v27 = vld [vmem:[%s10945_s7 + $0x38] sm:$0xff]  }
 0x58f   : > { %v2350_v49 = vsel %vm2335_vm3, %v2285_v57, %v9271_v48  ;;  %v2351_v48 = vsel %vm2335_vm3, %v2286_v43, %v9314_v31  ;;  %v11442_v42 = vld [vmem:[#allocation29_spill] sm:$0xff]  ;;  %v2294_v43 = vsel %vm1412_vm1, %v11444_v35, %v9375_v1 }
 0x590   : > { %v9455_v62 = vpop.permute.xlu0 %2135  ;;  %v9466_v60 = vpop.permute.xlu1 %1881 }
 0x591   : > { %6227 = vmatmul.mubr.msk.f32.gmra.mrb[36].mxu0 %vm2400_vm4, %v2339_v21  ;;  %v11100_v21 = vmov 0  }
 0x592   : > { %2688 = vmatprep.mubr.f32.mxu0 %v11347_v52  ;;  %3497 = vmatprep.subr.bf16.mxu1 %v11100_v21 }
 0x593   : > { %3498 = vmatpush1.bf16.msra.mxu1 %v7044_v22  ;;  %4254 = vmatprep.subr.bf16.mxu0 %v11100_v21 }
 0x594   : > { %3499 = vmatprep.subr.bf16.mxu1 %v11100_v21  ;;  %v9477_v44 = vpop.permute.xlu0 %2137  ;;  %v9486_v54 = vpop.permute.xlu1 %1883 }
 0x595   : > { %6228 = vmatmul.mubr.msk.f32.gmra.mrb[38].mxu0 %vm2400_vm4, %v2340_v2  ;;  %v7045_v2 = vld [vmem:[%s10945_s7 + $0x8] sm:$0xff]  }
 0x596   : > { %2694 = vmatprep.mubr.f32.mxu0 %v11347_v52 }
 0x597   : > { %3500 = vmatpush1.bf16.msra.mxu1 %v7045_v2  ;;  %v11441_v2 = vld [vmem:[#allocation27_spill] sm:$0xff] }
 0x598   : > { %3501 = vmatprep.subr.bf16.mxu1 %v11100_v21  ;;  %v9497_v14 = vpop.permute.xlu0 %2139  ;;  %v9509_v56 = vpop.permute.xlu1 %1885 }
 0x599   : > { %6229 = vmatmul.mubr.msk.f32.gmra.mrb[40].mxu0 %vm2400_vm4, %v2341_v26  ;;  %v7046_v26 = vld [vmem:[%s10945_s7 + $0x10] sm:$0xff]  }
 0x59a   : > { %2700 = vmatprep.mubr.f32.mxu0 %v11347_v52 }
 0x59b   : > { %3502 = vmatpush1.bf16.msra.mxu1 %v7046_v26 }
 0x59c   : > { %3503 = vmatprep.subr.bf16.mxu1 %v11100_v21  ;;  %v9527_v20 = vpop.permute.xlu1 %1887 }
 0x59d   : > { %6230 = vmatmul.mubr.msk.f32.gmra.mrb[42].mxu0 %vm2400_vm4, %v2342_v25  ;;  %v7047_v25 = vld [vmem:[%s10945_s7 + $0x18] sm:$0xff]  }
 0x59e   : > { %2706 = vmatprep.mubr.f32.mxu0 %v11347_v52 }
 0x59f   : > { %3504 = vmatpush1.bf16.msra.mxu1 %v7047_v25 }
 0x5a0   : > { %3505 = vmatprep.subr.bf16.mxu1 %v11100_v21  ;;  %v9550_v45 = vpop.permute.xlu1 %1889 }
 0x5a1   : > { %6231 = vmatmul.mubr.msk.f32.gmra.mrb[44].mxu0 %vm2400_vm4, %v2343_v19  ;;  %v9518_v19 = vpop.permute.xlu0 %2141 }
 0x5a2   : > { %2712 = vmatprep.mubr.f32.mxu0 %v11347_v52 }
 0x5a3   : > { %3506 = vmatpush1.bf16.msra.mxu1 %v7048_v32  ;;  %v7056_v32 = vld [vmem:[%s10945_s7 + $0x60] sm:$0xff]  }
 0x5a4   : > { %3507 = vmatprep.subr.bf16.mxu1 %v11100_v21  ;;  %v9568_v22 = vpop.permute.xlu1 %1891 }
 0x5a5   : > { %6232 = vmatmul.mubr.msk.f32.gmra.mrb[46].mxu0 %vm2400_vm4, %v2344_v3  ;;  %v2287_v3 = vsel %vm1412_vm1, %v11437_v59, %v9316_v6  ;;  %v9538_v8 = vpop.permute.xlu0 %2143 }
 0x5a6   : > { %2718 = vmatprep.mubr.f32.mxu0 %v11347_v52  ;;  %v2352_v31 = vsel %vm2335_vm3, %v2287_v3, %v9318_v15 }
 0x5a7   : > { %3508 = vmatpush1.bf16.msra.mxu1 %v7049_v37  ;;  %v7057_v37 = vld [vmem:[%s10945_s7 + $0x68] sm:$0xff]  }
 0x5a8   : > { %3509 = vmatprep.subr.bf16.mxu1 %v11100_v21  ;;  %v9591_v12 = vpop.permute.xlu1 %1893 }
 0x5a9   : > { %6233 = vmatmul.mubr.msk.f32.gmra.mrb[48].mxu0 %vm2400_vm4, %v2345_v47  ;;  %v11438_v47 = vld [vmem:[#allocation25_spill] sm:$0xff]  ;;  %v9559_v13 = vpop.permute.xlu0 %2145 }
 0x5aa   : > { %2724 = vmatprep.mubr.f32.mxu0 %v11347_v52  ;;  %v2288_v6 = vsel %vm1412_vm1, %v11438_v47, %v9320_v23 }
 0x5ab   : > { %3510 = vmatpush1.bf16.msra.mxu1 %v7050_v7  ;;  %v2353_v15 = vsel %vm2335_vm3, %v2288_v6, %v9322_v61  ;;  %v7058_v6 = vld [vmem:[%s10945_s7 + $0x70] sm:$0xff]   ;;  %v11447_v7 = vld [vmem:[#allocation30_spill] sm:$0xff] }
 0x5ac   : > { %3511 = vmatprep.subr.bf16.mxu1 %v11100_v21  ;;  %v9609_v29 = vpop.permute.xlu1 %1895 }
 0x5ad   : > { %6234 = vmatmul.mubr.msk.f32.gmra.mrb[50].mxu0 %vm2400_vm4, %v2346_v11  ;;  %v11439_v11 = vld [vmem:[#allocation22_spill] sm:$0xff]  ;;  %v9579_v40 = vpop.permute.xlu0 %2147 }
 0x5ae   : > { %2730 = vmatprep.mubr.f32.mxu0 %v11347_v52  ;;  %v2289_v23 = vsel %vm1412_vm1, %v11439_v11, %v9324_v5  ;;  %v11440_v5 = vld [vmem:[#allocation24_spill] sm:$0xff]  ;;  %v7059_v11 = vld [vmem:[%s10945_s7 + $0x78] sm:$0xff]  }
 0x5af   : > { %3512 = vmatpush1.bf16.msra.mxu1 %v7051_v27  ;;  %v2354_v61 = vsel %vm2335_vm3, %v2289_v23, %v9326_v53  ;;  %v11448_v23 = vld [vmem:[#allocation32_spill] sm:$0xff] }
 0x5b0   : > { %3513 = vmatprep.subr.bf16.mxu1 %v11100_v21 }
 0x5b1   : > { %6235 = vmatmul.mubr.msk.f32.gmra.mrb[52].mxu0 %vm2400_vm4, %v2347_v50  ;;  %v2290_v50 = vsel %vm1412_vm1, %v11440_v5, %v9328_v34  ;;  %v2291_v34 = vsel %vm1412_vm1, %v11441_v2, %v9335_v10  ;;  %v2292_v10 = vsel %vm1412_vm1, %v11442_v42, %v9342_v36  ;;  %v9600_v26 = vpop.permute.xlu0 %2149  ;;  %v11443_v36 = vld [vmem:[#allocation26_spill] sm:$0xff]  ;;  %v11452_v42 = vld [vmem:[#allocation36_spill] sm:$0xff] }
 0x5b2   : > { %2736 = vmatprep.mubr.f32.mxu0 %v11347_v52  ;;  %v2355_v53 = vsel %vm2335_vm3, %v2290_v50, %v9330_v58  ;;  %v2356_v58 = vsel %vm2335_vm3, %v2291_v34, %v9340_v30  ;;  %v2357_v30 = vsel %vm2335_vm3, %v2292_v10, %v9350_v28  ;;  %v2293_v57 = vsel %vm1412_vm1, %v11443_v36, %v9357_v0  ;;  %v7055_v28 = vld [vmem:[%s10945_s7 + $0x58] sm:$0xff]   ;;  %v9628_v0 = vpop.permute.xlu1 %1897  ;;  %v11451_v34 = vld [vmem:[#allocation34_spill] sm:$0xff] }
 0x5b3   : > { %3514 = vmatpush1.bf16.msra.mxu1 %v7052_v16  ;;  %v2302_v10 = vsel %vm1412_vm1, %v11452_v42, %v9509_v56  ;;  %v11454_v36 = vld [vmem:[#allocation41_spill] sm:$0xff] }
 0x5b4   : > { %3515 = vmatprep.subr.bf16.mxu1 %v11100_v21 }
 0x5b5   : > { %6236 = vmatmul.mubr.msk.f32.gmra.mrb[54].mxu0 %vm2400_vm4, %v2348_v46  ;;  %v7053_v46 = vld [vmem:[%s10945_s7 + $0x48] sm:$0xff]   ;;  %v9617_v25 = vpop.permute.xlu0 %2151 }
 0x5b6   : > { %2742 = vmatprep.mubr.f32.mxu0 %v11347_v52  ;;  %v9647_v3 = vpop.permute.xlu1 %1899 }
 0x5b7   : > { %3516 = vmatpush1.bf16.msra.mxu1 %v7053_v46  ;;  %v2301_v46 = vsel %vm1412_vm1, %v11451_v34, %v9486_v54  ;;  %v2367_v54 = vsel %vm2335_vm3, %v2302_v10, %v9518_v19 }
 0x5b8   : > { %3517 = vmatprep.subr.bf16.mxu1 %v11100_v21 }
 0x5b9   : > { %6237 = vmatmul.mubr.msk.f32.gmra.mrb[56].mxu0 %vm2400_vm4, %v2349_v18  ;;  %v7054_v18 = vld [vmem:[%s10945_s7 + $0x50] sm:$0xff]   ;;  %v9640_v59 = vpop.permute.xlu0 %2153 }
 0x5ba   : > { %2748 = vmatprep.mubr.f32.mxu0 %v11347_v52 }
 0x5bb   : > { %3518 = vmatpush1.bf16.msra.mxu1 %v7054_v18  ;;  %v11453_v18 = vld [vmem:[#allocation39_spill] sm:$0xff] }
 0x5bc   : > { %3519 = vmatprep.subr.bf16.mxu1 %v11100_v21 }
 0x5bd   : > { %6238 = vmatmul.mubr.msk.f32.gmra.mrb[58].mxu0 %vm2400_vm4, %v2350_v49  ;;  %v2358_v49 = vsel %vm2335_vm3, %v2293_v57, %v9366_v4  ;;  %v2359_v4 = vsel %vm2335_vm3, %v2294_v43, %v9384_v17  ;;  %v9657_v47 = vpop.permute.xlu0 %2155  ;;  %v2304_v57 = vsel %vm1412_vm1, %v11454_v36, %v9550_v45  ;;  %v11456_v43 = vld [vmem:[#allocation40_spill] sm:$0xff] }
 0x5be   : > { %2754 = vmatprep.mubr.f32.mxu0 %v11347_v52  ;;  %v2369_v19 = vsel %vm2335_vm3, %v2304_v57, %v9559_v13 }
 0x5bf   : > { %3520 = vmatpush1.bf16.msra.mxu1 %v7055_v28  ;;  %v11455_v28 = vld [vmem:[#allocation38_spill] sm:$0xff] }
 0x5c0   : > { %3521 = vmatprep.subr.bf16.mxu1 %v11100_v21  ;;  %v2305_v35 = vsel %vm1412_vm1, %v11455_v28, %v9568_v22 }
 0x5c1   : > { %6239 = vmatmul.mubr.msk.f32.gmra.mrb[60].mxu0 %vm2400_vm4, %v2351_v48  ;;  %v11445_v48 = vld [vmem:[#allocation31_spill] sm:$0xff]  ;;  %v9681_v27 = vpop.permute.xlu0 %2157  ;;  %v2370_v45 = vsel %vm2335_vm3, %v2305_v35, %v9579_v40 }
 0x5c2   : > { %2760 = vmatprep.mubr.f32.mxu0 %v11347_v52  ;;  %v2295_v1 = vsel %vm1412_vm1, %v11445_v48, %v9388_v33  ;;  %v11446_v33 = vld [vmem:[#allocation33_spill] sm:$0xff] }
 0x5c3   : > { %3522 = vmatpush1.bf16.msra.mxu1 %v7056_v32  ;;  %v2360_v17 = vsel %vm2335_vm3, %v2295_v1, %v9397_v38  ;;  %v11457_v32 = vld [vmem:[#allocation43_spill] sm:$0xff] }
 0x5c4   : > { %3523 = vmatprep.subr.bf16.mxu1 %v11100_v21  ;;  %v2307_v48 = vsel %vm1412_vm1, %v11457_v32, %v9609_v29 }
 0x5c5   : > { %6240 = vmatmul.mubr.msk.f32.gmra.mrb[62].mxu0 %vm2400_vm4, %v2352_v31  ;;  %v2296_v31 = vsel %vm1412_vm1, %v11446_v33, %v9402_v41  ;;  %v2297_v41 = vsel %vm1412_vm1, %v11447_v7, %v9417_v63  ;;  %v2298_v63 = vsel %vm1412_vm1, %v11448_v23, %v9434_v24  ;;  %v9694_v24 = vpop.permute.xlu0 %2159  ;;  %v2372_v40 = vsel %vm2335_vm3, %v2307_v48, %v9617_v25  ;;  %v11459_v33 = vld [vmem:[#allocation42_spill] sm:$0xff] }
 0x5c6   : > { %2766 = vmatprep.mubr.f32.mxu0 %v11347_v52  ;;  %v2361_v38 = vsel %vm2335_vm3, %v2296_v31, %v9413_v51  ;;  %v2362_v51 = vsel %vm2335_vm3, %v2297_v41, %v9426_v55  ;;  %v11449_v55 = vld [vmem:[#allocation35_spill] sm:$0xff]  ;;  %v2309_v31 = vsel %vm1412_vm1, %v11459_v33, %v9647_v3 }
 0x5c7   : > { %3524 = vmatpush1.bf16.msra.mxu1 %v7057_v37  ;;  %v2299_v50 = vsel %vm1412_vm1, %v11449_v55, %v9446_v39  ;;  %v11461_v41 = vld [vmem:[#allocation47_spill] sm:$0xff] }
 0x5c8   : > { %3525 = vmatprep.subr.bf16.mxu1 %v11100_v21  ;;  %v2364_v16 = vsel %vm2335_vm3, %v2299_v50, %v9455_v62  ;;  %v2366_v62 = vsel %vm2335_vm3, %v2301_v46, %v9497_v14 }
 0x5c9   : > { %6241 = vmatmul.mubr.msk.f32.gmra.mrb[64].mxu0 %vm2400_vm4, %v2353_v15  ;;  %v9669_v15 = vpop.permute.xlu1 %1901 }
 0x5ca   : > { %2772 = vmatprep.mubr.f32.mxu0 %v11347_v52 }
 0x5cb   : > { %3526 = vmatpush1.bf16.msra.mxu1 %v7058_v6 }
 0x5cc   : > { %3527 = vmatprep.subr.bf16.mxu1 %v11100_v21 }
 0x5cd   : > { %6242 = vmatmul.mubr.msk.f32.gmra.mrb[66].mxu0 %vm2400_vm4, %v2354_v61  ;;  %v2363_v61 = vsel %vm2335_vm3, %v2298_v63, %v9442_v9  ;;  %v9687_v5 = vpop.permute.xlu1 %1903 }
 0x5ce   : > { %2778 = vmatprep.mubr.f32.mxu0 %v11347_v52 }
 0x5cf   : > { %3528 = vmatpush1.bf16.msra.mxu1 %v7059_v11  ;;  %v11462_v11 = vld [vmem:[#allocation49_spill] sm:$0xff] }
 0x5d1   : > { %6243 = vmatmul.mubr.msk.f32.gmra.mrb[68].mxu0 %vm2400_vm4, %v2355_v53  ;;  %v11450_v53 = vld [vmem:[#allocation37_spill] sm:$0xff]  ;;  %v9702_v9 = vpop.permute.xlu1 %1905 }
 0x5d2   : > { %2784 = vmatprep.mubr.f32.mxu0 %v11347_v52  ;;  %v2300_v2 = vsel %vm1412_vm1, %v11450_v53, %v9466_v60  ;;  %v2312_v23 = vsel %vm1412_vm1, %v11462_v11, %v9702_v9 }
 0x5d3   : > { %v2365_v39 = vsel %vm2335_vm3, %v2300_v2, %v9477_v44 }
 0x5d5   : > { %6244 = vmatmul.mubr.msk.f32.gmra.mrb[70].mxu0 %vm2400_vm4, %v2356_v58  ;;  %v9710_v58 = vpop.permute.xlu0 %2161  ;;  %v1908_v60 = vpop.permute.xlu1 %1907 }
 0x5d6   : > { %2790 = vmatprep.mubr.f32.mxu0 %v11347_v52 }
 0x5d9   : > { %6245 = vmatmul.mubr.msk.f32.gmra.mrb[72].mxu0 %vm2400_vm4, %v2357_v30  ;;  %v2164_v44 = vpop.permute.xlu0 %2163  ;;  %v2303_v30 = vsel %vm1412_vm1, %v11453_v18, %v9527_v20  ;;  %v1910_v14 = vpop.permute.xlu1 %1909 }
 0x5da   : > { %2796 = vmatprep.mubr.f32.mxu0 %v11347_v52  ;;  %v2368_v56 = vsel %vm2335_vm3, %v2303_v30, %v9538_v8 }
 0x5dd   : > { %6246 = vmatmul.mubr.msk.f32.gmra.mrb[74].mxu0 %vm2400_vm4, %v2358_v49  ;;  %v2166_v49 = vpop.permute.xlu0 %2165  ;;  %v1912_v20 = vpop.permute.xlu1 %1911 }
 0x5de   : > { %2802 = vmatprep.mubr.f32.mxu0 %v11347_v52 }
 0x5e1   : > { %6247 = vmatmul.mubr.msk.f32.gmra.mrb[76].mxu0 %vm2400_vm4, %v2359_v4  ;;  %v2168_v8 = vpop.permute.xlu0 %2167  ;;  %v2306_v4 = vsel %vm1412_vm1, %v11456_v43, %v9591_v12  ;;  %v1914_v13 = vpop.permute.xlu1 %1913 }
 0x5e2   : > { %2808 = vmatprep.mubr.f32.mxu0 %v11347_v52  ;;  %v2371_v22 = vsel %vm2335_vm3, %v2306_v4, %v9600_v26 }
 0x5e5   : > { %6248 = vmatmul.mubr.msk.f32.gmra.mrb[78].mxu0 %vm2400_vm4, %v2360_v17  ;;  %v2170_v1 = vpop.permute.xlu0 %2169  ;;  %v1916_v12 = vpop.permute.xlu1 %1915  ;;  %v11458_v17 = vld [vmem:[#allocation45_spill] sm:$0xff] }
 0x5e6   : > { %2814 = vmatprep.mubr.f32.mxu0 %v11347_v52  ;;  %v2308_v37 = vsel %vm1412_vm1, %v11458_v17, %v9628_v0  ;;  %v2374_v0 = vsel %vm2335_vm3, %v2309_v31, %v9657_v47 }
 0x5e7   : > { %v2373_v29 = vsel %vm2335_vm3, %v2308_v37, %v9640_v59 }
 0x5e9   : > { %6249 = vmatmul.mubr.msk.f32.gmra.mrb[80].mxu0 %vm2400_vm4, %v2361_v38  ;;  %v2172_v26 = vpop.permute.xlu0 %2171  ;;  %v1918_v25 = vpop.permute.xlu1 %1917  ;;  %v11460_v38 = vld [vmem:[#allocation44_spill] sm:$0xff] }
 0x5ea   : > { %2820 = vmatprep.mubr.f32.mxu0 %v11347_v52  ;;  %v2310_v6 = vsel %vm1412_vm1, %v11460_v38, %v9669_v15 }
 0x5eb   : > { %v2375_v59 = vsel %vm2335_vm3, %v2310_v6, %v9681_v27  ;;  %v2377_v27 = vsel %vm2335_vm3, %v2312_v23, %v9710_v58 }
 0x5ed   : > { %6250 = vmatmul.mubr.msk.f32.gmra.mrb[82].mxu0 %vm2400_vm4, %v2362_v51  ;;  %v2174_v7 = vpop.permute.xlu0 %2173  ;;  %v1920_v3 = vpop.permute.xlu1 %1919  ;;  %v2311_v51 = vsel %vm1412_vm1, %v11461_v41, %v9687_v5 }
 0x5ee   : > { %2826 = vmatprep.mubr.f32.mxu0 %v11347_v52  ;;  %v2376_v15 = vsel %vm2335_vm3, %v2311_v51, %v9694_v24 }
 0x5f1   : > { %6251 = vmatmul.mubr.msk.f32.gmra.mrb[84].mxu0 %vm2400_vm4, %v2363_v61  ;;  %v2176_v47 = vpop.permute.xlu0 %2175  ;;  %v1922_v63 = vpop.permute.xlu1 %1921  ;;  %v11463_v61 = vld [vmem:[#allocation46_spill] sm:$0xff] }
 0x5f2   : > { %2832 = vmatprep.mubr.f32.mxu0 %v11347_v52  ;;  %v2313_v5 = vsel %vm1412_vm1, %v11463_v61, %v1908_v60  ;;  %v11476_v61 = vld [vmem:[#allocation60_spill] sm:$0xff] }
 0x5f3   : > { %v2378_v50 = vsel %vm2335_vm3, %v2313_v5, %v2164_v44 }
 0x5f5   : > { %6252 = vmatmul.mubr.msk.f32.gmra.mrb[86].mxu0 %vm2400_vm4, %v2364_v16  ;;  %v2178_v55 = vpop.permute.xlu0 %2177  ;;  %v1924_v24 = vpop.permute.xlu1 %1923  ;;  %v11464_v16 = vld [vmem:[#allocation48_spill] sm:$0xff] }
 0x5f6   : > { %2838 = vmatprep.mubr.f32.mxu0 %v11347_v52  ;;  %v2314_v53 = vsel %vm1412_vm1, %v11464_v16, %v1910_v14 }
 0x5f7   : > { %v2379_v9 = vsel %vm2335_vm3, %v2314_v53, %v2166_v49 }
 0x5f9   : > { %6253 = vmatmul.mubr.msk.f32.gmra.mrb[88].mxu0 %vm2400_vm4, %v2365_v39  ;;  %v2180_v2 = vpop.permute.xlu0 %2179  ;;  %v11465_v39 = vld [vmem:[#allocation51_spill] sm:$0xff]  ;;  %v1926_v46 = vpop.permute.xlu1 %1925 }
 0x5fa   : > { %2844 = vmatprep.mubr.f32.mxu0 %v11347_v52  ;;  %v2315_v34 = vsel %vm1412_vm1, %v11465_v39, %v1912_v20 }
 0x5fb   : > { %v2380_v58 = vsel %vm2335_vm3, %v2315_v34, %v2168_v8 }
 0x5fd   : > { %6254 = vmatmul.mubr.msk.f32.gmra.mrb[90].mxu0 %vm2400_vm4, %v2366_v62  ;;  %v11466_v62 = vld [vmem:[#allocation53_spill] sm:$0xff]  ;;  %v2182_v42 = vpop.permute.xlu0 %2181  ;;  %v1928_v44 = vpop.permute.xlu1 %1927 }
 0x5fe   : > { %2850 = vmatprep.mubr.f32.mxu0 %v11347_v52  ;;  %v2316_v60 = vsel %vm1412_vm1, %v11466_v62, %v1914_v13 }
 0x5ff   : > { %v2381_v10 = vsel %vm2335_vm3, %v2316_v60, %v2170_v1 }
 0x601   : > { %6255 = vmatmul.mubr.msk.f32.gmra.mrb[92].mxu0 %vm2400_vm4, %v2367_v54  ;;  %v11467_v54 = vld [vmem:[#allocation50_spill] sm:$0xff]  ;;  %v2184_v30 = vpop.permute.xlu0 %2183  ;;  %v1930_v57 = vpop.permute.xlu1 %1929 }
 0x602   : > { %2856 = vmatprep.mubr.f32.mxu0 %v11347_v52  ;;  %v2317_v18 = vsel %vm1412_vm1, %v11467_v54, %v1916_v12 }
 0x603   : > { %v2382_v14 = vsel %vm2335_vm3, %v2317_v18, %v2172_v26 }
 0x605   : > { %6256 = vmatmul.mubr.msk.f32.gmra.mrb[94].mxu0 %vm2400_vm4, %v2368_v56  ;;  %v11468_v56 = vld [vmem:[#allocation52_spill] sm:$0xff]  ;;  %v2186_v28 = vpop.permute.xlu0 %2185  ;;  %v1932_v8 = vpop.permute.xlu1 %1931 }
 0x606   : > { %2862 = vmatprep.mubr.f32.mxu0 %v11347_v52  ;;  %v2318_v36 = vsel %vm1412_vm1, %v11468_v56, %v1918_v25 }
 0x607   : > { %v2383_v49 = vsel %vm2335_vm3, %v2318_v36, %v2174_v7 }
 0x609   : > { %6257 = vmatmul.mubr.msk.f32.gmra.mrb[96].mxu0 %vm2400_vm4, %v2369_v19  ;;  %v11469_v19 = vld [vmem:[#allocation55_spill] sm:$0xff]  ;;  %v2188_v4 = vpop.permute.xlu0 %2187  ;;  %v1934_v48 = vpop.permute.xlu1 %1933 }
 0x60a   : > { %2868 = vmatprep.mubr.f32.mxu0 %v11347_v52  ;;  %v2319_v20 = vsel %vm1412_vm1, %v11469_v19, %v1920_v3  ;;  %v11475_v3 = vld [vmem:[#allocation58_spill] sm:$0xff]  ;;  %v2326_v5 = vsel %vm1412_vm1, %v11476_v61, %v1934_v48  ;;  %v11482_v61 = vld [vmem:[#allocation69_spill] sm:$0xff] }
 0x60b   : > { %v2384_v35 = vsel %vm2335_vm3, %v2319_v20, %v2176_v47  ;;  %v2325_v41 = vsel %vm1412_vm1, %v11475_v3, %v1932_v8 }
 0x60c   : > { %v2390_v23 = vsel %vm2335_vm3, %v2325_v41, %v2188_v4 }
 0x60d   : > { %6258 = vmatmul.mubr.msk.f32.gmra.mrb[98].mxu0 %vm2400_vm4, %v2370_v45  ;;  %v11470_v45 = vld [vmem:[#allocation57_spill] sm:$0xff]  ;;  %v2190_v17 = vpop.permute.xlu0 %2189  ;;  %v1936_v26 = vpop.permute.xlu1 %1935 }
 0x60e   : > { %2874 = vmatprep.mubr.f32.mxu0 %v11347_v52  ;;  %v2320_v43 = vsel %vm1412_vm1, %v11470_v45, %v1922_v63  ;;  %v2391_v53 = vsel %vm2335_vm3, %v2326_v5, %v2190_v17 }
 0x60f   : > { %v2385_v13 = vsel %vm2335_vm3, %v2320_v43, %v2178_v55 }
 0x611   : > { %6259 = vmatmul.mubr.msk.f32.gmra.mrb[100].mxu0 %vm2400_vm4, %v2371_v22  ;;  %v11471_v22 = vld [vmem:[#allocation54_spill] sm:$0xff]  ;;  %v2192_v31 = vpop.permute.xlu0 %2191  ;;  %v1938_v6 = vpop.permute.xlu1 %1937 }
 0x612   : > { %2880 = vmatprep.mubr.f32.mxu0 %v11347_v52  ;;  %v2321_v32 = vsel %vm1412_vm1, %v11471_v22, %v1924_v24 }
 0x613   : > { %v2386_v1 = vsel %vm2335_vm3, %v2321_v32, %v2180_v2 }
 0x615   : > { %6260 = vmatmul.mubr.msk.f32.gmra.mrb[102].mxu0 %vm2400_vm4, %v2372_v40  ;;  %v11472_v40 = vld [vmem:[#allocation56_spill] sm:$0xff]  ;;  %v2194_v51 = vpop.permute.xlu0 %2193  ;;  %v1940_v63 = vpop.permute.xlu1 %1939 }
 0x616   : > { %2886 = vmatprep.mubr.f32.mxu0 %v11347_v52  ;;  %v2322_v12 = vsel %vm1412_vm1, %v11472_v40, %v1926_v46  ;;  %v11480_v40 = vld [vmem:[#allocation64_spill] sm:$0xff] }
 0x617   : > { %v2387_v37 = vsel %vm2335_vm3, %v2322_v12, %v2182_v42 }
 0x619   : > { %6261 = vmatmul.mubr.msk.f32.gmra.mrb[104].mxu0 %vm2400_vm4, %v2373_v29  ;;  %v11473_v29 = vld [vmem:[#allocation59_spill] sm:$0xff]  ;;  %v2196_v16 = vpop.permute.xlu0 %2195 }
 0x61a   : > { %2892 = vmatprep.mubr.f32.mxu0 %v11347_v52  ;;  %v2323_v33 = vsel %vm1412_vm1, %v11473_v29, %v1928_v44 }
 0x61b   : > { %v2388_v25 = vsel %vm2335_vm3, %v2323_v33, %v2184_v30 }
 0x61d   : > { %6262 = vmatmul.mubr.msk.f32.gmra.mrb[106].mxu0 %vm2400_vm4, %v2374_v0  ;;  %v11474_v0 = vld [vmem:[#allocation61_spill] sm:$0xff]  ;;  %v2198_v54 = vpop.permute.xlu0 %2197 }
 0x61e   : > { %2898 = vmatprep.mubr.f32.mxu0 %v11347_v52  ;;  %v2324_v38 = vsel %vm1412_vm1, %v11474_v0, %v1930_v57 }
 0x61f   : > { %v2389_v7 = vsel %vm2335_vm3, %v2324_v38, %v2186_v28  ;;  %v11479_v28 = vld [vmem:[#allocation62_spill] sm:$0xff] }
 0x621   : > { %6263 = vmatmul.mubr.msk.f32.gmra.mrb[108].mxu0 %vm2400_vm4, %v2375_v59  ;;  %v2200_v22 = vpop.permute.xlu0 %2199 }
 0x622   : > { %2904 = vmatprep.mubr.f32.mxu0 %v11347_v52 }
 0x625   : > { %6264 = vmatmul.mubr.msk.f32.gmra.mrb[110].mxu0 %vm2400_vm4, %v2376_v15 }
 0x626   : > { %2910 = vmatprep.mubr.f32.mxu0 %v11347_v52 }
 0x629   : > { %6265 = vmatmul.mubr.msk.f32.gmra.mrb[112].mxu0 %vm2400_vm4, %v2377_v27 }
 0x62a   : > { %2916 = vmatprep.mubr.f32.mxu0 %v11347_v52 }
 0x62d   : > { %6266 = vmatmul.mubr.msk.f32.gmra.mrb[114].mxu0 %vm2400_vm4, %v2378_v50 }
 0x62e   : > { %2922 = vmatprep.mubr.f32.mxu0 %v11347_v52 }
 0x631   : > { %6267 = vmatmul.mubr.msk.f32.gmra.mrb[116].mxu0 %vm2400_vm4, %v2379_v9  ;;  %v11477_v9 = vld [vmem:[#allocation63_spill] sm:$0xff] }
 0x632   : > { %2928 = vmatprep.mubr.f32.mxu0 %v11347_v52  ;;  %v2327_v39 = vsel %vm1412_vm1, %v11477_v9, %v1936_v26 }
 0x633   : > { %v2392_v60 = vsel %vm2335_vm3, %v2327_v39, %v2192_v31 }
 0x635   : > { %6268 = vmatmul.mubr.msk.f32.gmra.mrb[118].mxu0 %vm2400_vm4, %v2380_v58  ;;  %v1942_v58 = vpop.permute.xlu1 %1941 }
 0x636   : > { %2934 = vmatprep.mubr.f32.mxu0 %v11347_v52  ;;  %v2330_v12 = vsel %vm1412_vm1, %v11480_v40, %v1942_v58 }
 0x639   : > { %6269 = vmatmul.mubr.msk.f32.gmra.mrb[120].mxu0 %vm2400_vm4, %v2381_v10  ;;  %v11478_v10 = vld [vmem:[#allocation65_spill] sm:$0xff] }
 0x63a   : > { %2940 = vmatprep.mubr.f32.mxu0 %v11347_v52  ;;  %v2328_v44 = vsel %vm1412_vm1, %v11478_v10, %v1938_v6  ;;  %v11481_v6 = vld [vmem:[#allocation67_spill] sm:$0xff] }
 0x63b   : > { %v2393_v57 = vsel %vm2335_vm3, %v2328_v44, %v2194_v51 }
 0x63d   : > { %6270 = vmatmul.mubr.msk.f32.gmra.mrb[122].mxu0 %vm2400_vm4, %v2382_v14 }
 0x63e   : > { %2946 = vmatprep.mubr.f32.mxu0 %v11347_v52 }
 0x641   : > { %6271 = vmatmul.mubr.msk.f32.gmra.mrb[124].mxu0 %vm2400_vm4, %v2383_v49  ;;  %v1944_v49 = vpop.permute.xlu1 %1943 }
 0x642   : > { %2952 = vmatprep.mubr.f32.mxu0 %v11347_v52 }
 0x645   : > { %6272 = vmatmul.mubr.msk.f32.gmra.mrb[126].mxu0 %vm2400_vm4, %v2384_v35  ;;  %v2329_v35 = vsel %vm1412_vm1, %v11479_v28, %v1940_v63  ;;  %v1946_v26 = vpop.permute.xlu1 %1945  ;;  %v7060_v28 = vld [vmem:[%s10944_s6] sm:$0xff]  }
 0x646   : > { %2958 = vmatprep.mubr.f32.mxu0 %v11347_v52  ;;  %v2394_v48 = vsel %vm2335_vm3, %v2329_v35, %v2196_v16  ;;  %v2332_v5 = vsel %vm1412_vm1, %v11482_v61, %v1946_v26 }
 0x649   : > { %6273 = vmatmul.mubr.msk.f32.gmra.mrb[128].mxu0 %vm2400_vm4, %v2385_v13  ;;  %v1948_v63 = vpop.permute.xlu1 %1947 }
 0x64a   : > { %2964 = vmatprep.mubr.f32.mxu0 %v11347_v52 }
 0x64d   : > { %6274 = vmatmul.mubr.msk.f32.gmra.mrb[130].mxu0 %vm2400_vm4, %v2386_v1  ;;  %v1950_v10 = vpop.permute.xlu1 %1949 }
 0x64e   : > { %2970 = vmatprep.mubr.f32.mxu0 %v11347_v52 }
 0x651   : > { %6275 = vmatmul.mubr.msk.f32.gmra.mrb[132].mxu0 %vm2400_vm4, %v2387_v37 }
 0x652   : > { %2976 = vmatprep.mubr.f32.mxu0 %v11347_v52 }
 0x655   : > { %6276 = vmatmul.mubr.msk.f32.gmra.mrb[134].mxu0 %vm2400_vm4, %v2388_v25  ;;  %v2395_v25 = vsel %vm2335_vm3, %v2330_v12, %v2198_v54 }
 0x656   : > { %2982 = vmatprep.mubr.f32.mxu0 %v11347_v52 }
 0x658   : > { %v2666_v59 = vpop.f32.mrb[30].mxu0 }
 0x659   : > { %v3049_v47 = vmul.f32 1.442695, %v2666_v59  ;;  %v2668_v15 = vpop.f32.mrb[31].mxu0  ;;  %6277 = vmatmul.mubr.msk.f32.gmra.mrb[136].mxu0 %vm2400_vm4, %v2389_v7  ;;  %v2331_v7 = vsel %vm1412_vm1, %v11481_v6, %v1944_v49  ;;  %v2202_v59 = vpop.permute.xlu0 %2201 }
 0x65a   : > { %v3051_v11 = vmul.f32 1.442695, %v2668_v15  ;;  %2988 = vmatprep.mubr.f32.mxu0 %v11347_v52  ;;  %v2397_v9 = vsel %vm2335_vm3, %v2332_v5, %v2202_v59 }
 0x65b   : > { %7094 = vpow2.f32 %v3049_v47 }
 0x65c   : > { %v2672_v27 = vpop.f32.mrb[32].mxu0  ;;  %7096 = vpow2.f32 %v3051_v11 }
 0x65d   : > { %v3053_v55 = vmul.f32 1.442695, %v2672_v27  ;;  %v2674_v50 = vpop.f32.mrb[33].mxu0  ;;  %6278 = vmatmul.mubr.msk.f32.gmra.mrb[138].mxu0 %vm2400_vm4, %v2390_v23  ;;  %v2396_v23 = vsel %vm2335_vm3, %v2331_v7, %v2200_v22 }
 0x65e   : > { %v3055_v24 = vmul.f32 1.442695, %v2674_v50  ;;  %2994 = vmatprep.mubr.f32.mxu0 %v11347_v52 }
 0x65f   : > { %7098 = vpow2.f32 %v3053_v55 }
 0x660   : > { %7100 = vpow2.f32 %v3055_v24  ;;  %v2678_v2 = vpop.f32.mrb[34].mxu0 }
 0x661   : > { %v3057_v34 = vmul.f32 1.442695, %v2678_v2  ;;  %v2680_v46 = vpop.f32.mrb[35].mxu0  ;;  %6279 = vmatmul.mubr.msk.f32.gmra.mrb[140].mxu0 %vm2400_vm4, %v2391_v53  ;;  %v2204_v53 = vpop.permute.xlu0 %2203 }
 0x662   : > { %v3059_v62 = vmul.f32 1.442695, %v2680_v46  ;;  %3000 = vmatprep.mubr.f32.mxu0 %v11347_v52  ;;  %v11483_v46 = vld [vmem:[#allocation66_spill] sm:$0xff] }
 0x663   : > { %7102 = vpow2.f32 %v3057_v34  ;;  %v2333_v58 = vsel %vm1412_vm1, %v11483_v46, %v1948_v63 }
 0x664   : > { %v2684_v42 = vpop.f32.mrb[36].mxu0  ;;  %7104 = vpow2.f32 %v3059_v62 }
 0x665   : > { %v3061_v18 = vmul.f32 1.442695, %v2684_v42  ;;  %v2686_v30 = vpop.f32.mrb[37].mxu0  ;;  %6280 = vmatmul.mubr.msk.f32.gmra.mrb[142].mxu0 %vm2400_vm4, %v2392_v60  ;;  %v7095_v56 = vpop.eup %7094 }
 0x666   : > { %v3063_v14 = vmul.f32 1.442695, %v2686_v30  ;;  %3006 = vmatprep.mubr.f32.mxu0 %v11347_v52  ;;  %v7097_v36 = vpop.eup %7096  ;;  %v2398_v30 = vsel %vm2335_vm3, %v2333_v58, %v2204_v53 }
 0x667   : > { %7106 = vpow2.f32 %v3061_v18 }
 0x668   : > { %7108 = vpow2.f32 %v3063_v14  ;;  %v2690_v19 = vpop.f32.mrb[38].mxu0 }
 0x669   : > { %v7099_v20 = vpop.eup %7098  ;;  %v3065_v8 = vmul.f32 1.442695, %v2690_v19  ;;  %v2692_v45 = vpop.f32.mrb[39].mxu0  ;;  %6281 = vmatmul.mubr.msk.f32.gmra.mrb[144].mxu0 %vm2400_vm4, %v2393_v57 }
 0x66a   : > { %v7101_v43 = vpop.eup %7100  ;;  %v3067_v4 = vmul.f32 1.442695, %v2692_v45  ;;  %3012 = vmatprep.mubr.f32.mxu0 %v11347_v52  ;;  %v9877_v13 = vpack.c.bf16 %v7099_v20, %v7095_v56  ;;  %v11484_v56 = vld [vmem:[#allocation68_spill] sm:$0xff]  ;;  %v2206_v57 = vpop.permute.xlu0 %2205 }
 0x66b   : > { %v9879_v32 = vpack.c.bf16 %v7101_v43, %v7097_v36  ;;  %7110 = vpow2.f32 %v3065_v8  ;;  %v2334_v36 = vsel %vm1412_vm1, %v11484_v56, %v1950_v10 }
 0x66c   : > { %v2696_v1 = vpop.f32.mrb[40].mxu0  ;;  %7112 = vpow2.f32 %v3067_v4  ;;  %v2399_v45 = vsel %vm2335_vm3, %v2334_v36, %v2206_v57 }
 0x66d   : > { %v3069_v17 = vmul.f32 1.442695, %v2696_v1  ;;  %v2698_v37 = vpop.f32.mrb[41].mxu0  ;;  %6282 = vmatmul.mubr.msk.f32.gmra.mrb[146].mxu0 %vm2400_vm4, %v2394_v48  ;;  %3529 = vmatprep.mubr.bf16.mxu1 %v9879_v32  ;;  %v7103_v33 = vpop.eup %7102 }
 0x66e   : > { %v3071_v29 = vmul.f32 1.442695, %v2698_v37  ;;  %3530 = vmatmul.mubr.bf16.vlgmr.msra.gmra.mrb[64].mxu1 %v9877_v13  ;;  %3018 = vmatprep.mubr.f32.mxu0 %v11347_v52  ;;  %v7105_v31 = vpop.eup %7104 }
 0x66f   : > { %7114 = vpow2.f32 %v3069_v17  ;;  %v7062_v17 = vld [vmem:[%s10944_s6 + $0x10] sm:$0xff]  }
 0x670   : > { %7116 = vpow2.f32 %v3071_v29  ;;  %v2702_v0 = vpop.f32.mrb[42].mxu0 }
 0x671   : > { %v7107_v38 = vpop.eup %7106  ;;  %v3073_v3 = vmul.f32 1.442695, %v2702_v0  ;;  %v2704_v41 = vpop.f32.mrb[43].mxu0  ;;  %6283 = vmatmul.mubr.msk.f32.gmra.mrb[148].mxu0 %vm2400_vm4, %v2395_v25 }
 0x672   : > { %v7109_v51 = vpop.eup %7108  ;;  %v3075_v47 = vmul.f32 1.442695, %v2704_v41  ;;  %3024 = vmatprep.mubr.f32.mxu0 %v11347_v52  ;;  %v9893_v15 = vpack.c.bf16 %v7107_v38, %v7103_v33 }
 0x673   : > { %v9895_v11 = vpack.c.bf16 %v7109_v51, %v7105_v31  ;;  %7118 = vpow2.f32 %v3073_v3  ;;  %v7063_v3 = vld [vmem:[%s10944_s6 + $0x18] sm:$0xff]  }
 0x674   : > { %v2708_v27 = vpop.f32.mrb[44].mxu0  ;;  %7120 = vpow2.f32 %v3075_v47 }
 0x675   : > { %v3077_v55 = vmul.f32 1.442695, %v2708_v27  ;;  %v2710_v50 = vpop.f32.mrb[45].mxu0  ;;  %6284 = vmatmul.mubr.msk.f32.gmra.mrb[150].mxu0 %vm2400_vm4, %v2396_v23  ;;  %3537 = vmatprep.mubr.bf16.mxu1 %v9895_v11  ;;  %v7111_v16 = vpop.eup %7110  ;;  %v7064_v23 = vld [vmem:[%s10944_s6 + $0x20] sm:$0xff]  }
 0x676   : > { %v3079_v24 = vmul.f32 1.442695, %v2710_v50  ;;  %3538 = vmatmul.mubr.bf16.gmra.mrb[68].mxu1 %v9893_v15  ;;  %3030 = vmatprep.mubr.f32.mxu0 %v11347_v52  ;;  %v7113_v2 = vpop.eup %7112 }
 0x677   : > { %7122 = vpow2.f32 %v3077_v55 }
 0x678   : > { %7124 = vpow2.f32 %v3079_v24  ;;  %v2714_v39 = vpop.f32.mrb[46].mxu0 }
 0x679   : > { %v7115_v34 = vpop.eup %7114  ;;  %v3081_v62 = vmul.f32 1.442695, %v2714_v39  ;;  %v2716_v60 = vpop.f32.mrb[47].mxu0  ;;  %6285 = vmatmul.mubr.msk.f32.gmra.mrb[152].mxu0 %vm2400_vm4, %v2397_v9  ;;  %v7065_v39 = vld [vmem:[%s10944_s6 + $0x28] sm:$0xff]  }
 0x67a   : > { %v7117_v42 = vpop.eup %7116  ;;  %v3083_v44 = vmul.f32 1.442695, %v2716_v60  ;;  %3036 = vmatprep.mubr.f32.mxu0 %v11347_v52  ;;  %v9909_v54 = vpack.c.bf16 %v7115_v34, %v7111_v16 }
 0x67b   : > { %v9911_v18 = vpack.c.bf16 %v7117_v42, %v7113_v2  ;;  %7126 = vpow2.f32 %v3081_v62  ;;  %v7066_v62 = vld [vmem:[%s10944_s6 + $0x30] sm:$0xff]  }
 0x67c   : > { %v2720_v14 = vpop.f32.mrb[48].mxu0  ;;  %7128 = vpow2.f32 %v3083_v44 }
 0x67d   : > { %v3085_v49 = vmul.f32 1.442695, %v2720_v14  ;;  %v2722_v19 = vpop.f32.mrb[49].mxu0  ;;  %6286 = vmatmul.mubr.msk.f32.gmra.mrb[154].mxu0 %vm2400_vm4, %v2398_v30  ;;  %3545 = vmatprep.mubr.bf16.mxu1 %v9911_v18  ;;  %v7119_v35 = vpop.eup %7118 }
 0x67e   : > { %v3087_v20 = vmul.f32 1.442695, %v2722_v19  ;;  %3546 = vmatmul.mubr.bf16.gmra.mrb[72].mxu1 %v9909_v54  ;;  %3042 = vmatprep.mubr.f32.mxu0 %v11347_v52  ;;  %v7121_v8 = vpop.eup %7120  ;;  %v7061_v52 = vld [vmem:[%s10944_s6 + $0x8] sm:$0xff]  }
 0x67f   : > { %7130 = vpow2.f32 %v3085_v49 }
 0x680   : > { %7132 = vpow2.f32 %v3087_v20  ;;  %v2726_v43 = vpop.f32.mrb[50].mxu0  ;;  %v7067_v20 = vld [vmem:[%s10944_s6 + $0x38] sm:$0xff]  }
 0x681   : > { %v7123_v4 = vpop.eup %7122  ;;  %v3089_v22 = vmul.f32 1.442695, %v2726_v43  ;;  %v2728_v48 = vpop.f32.mrb[51].mxu0  ;;  %6287 = vmatmul.mubr.msk.f32.gmra.mrb[156].mxu0 %vm2400_vm4, %v2399_v45  ;;  %v7068_v45 = vld [vmem:[%s10944_s6 + $0x40] sm:$0xff]  }
 0x682   : > { %v7125_v1 = vpop.eup %7124  ;;  %v3091_v40 = vmul.f32 1.442695, %v2728_v48  ;;  %6763 = vmatprep.mubr.msk.bf16.mxu0 %vm606_vm0, %v7060_v28  ;;  %v9929_v12 = vpack.c.bf16 %v7123_v4, %v7119_v35 }
 0x683   : > { %v9934_v37 = vpack.c.bf16 %v7125_v1, %v7121_v8  ;;  %7134 = vpow2.f32 %v3089_v22 }
 0x684   : > { %v2732_v26 = vpop.f32.mrb[52].mxu0  ;;  %7136 = vpow2.f32 %v3091_v40  ;;  %v3882_v40 = vld [vmem:[%s10946_s8 + $0x100] sm:$0xff] }
 0x685   : > { %v3093_v29 = vmul.f32 1.442695, %v2732_v26  ;;  %v2734_v33 = vpop.f32.mrb[53].mxu0  ;;  %3553 = vmatprep.mubr.bf16.mxu1 %v9934_v37  ;;  %6764 = vmatmul.mubr.msk.bf16.vlgmr.msra.gmra.mrb[160].mxu0 %vm606_vm0, %v7061_v52  ;;  %v7127_v25 = vpop.eup %7126 }
 0x686   : > { %v3095_v31 = vmul.f32 1.442695, %v2734_v33  ;;  %3554 = vmatmul.mubr.bf16.gmra.mrb[76].mxu1 %v9929_v12  ;;  %6767 = vmatprep.mubr.msk.bf16.mxu0 %vm606_vm0, %v7062_v17  ;;  %v7129_v0 = vpop.eup %7128 }
 0x687   : > { %7138 = vpow2.f32 %v3093_v29  ;;  %6795 = vmatprep.subr.mxu1 %v3882_v40 }
 0x688   : > { %7140 = vpow2.f32 %v3095_v31  ;;  %v2738_v38 = vpop.f32.mrb[54].mxu0  ;;  %6796 = vmatpush3.msra.mxu1 %v3882_v40 }
 0x689   : > { %v7131_v6 = vpop.eup %7130  ;;  %v3097_v7 = vmul.f32 1.442695, %v2738_v38  ;;  %v2740_v59 = vpop.f32.mrb[55].mxu0 }
 0x68a   : > { %v7133_v41 = vpop.eup %7132  ;;  %v3099_v51 = vmul.f32 1.442695, %v2740_v59  ;;  %v9943_v47 = vpack.c.bf16 %v7131_v6, %v7127_v25  ;;  %v7069_v25 = vld [vmem:[%s10944_s6 + $0x48] sm:$0xff]  }
 0x68b   : > { %v9948_v63 = vpack.c.bf16 %v7133_v41, %v7129_v0  ;;  %7142 = vpow2.f32 %v3097_v7  ;;  %v7070_v7 = vld [vmem:[%s10944_s6 + $0x50] sm:$0xff]  }
 0x68c   : > { %v2744_v27 = vpop.f32.mrb[56].mxu0  ;;  %7144 = vpow2.f32 %v3099_v51 }
 0x68d   : > { %v3101_v61 = vmul.f32 1.442695, %v2744_v27  ;;  %v2746_v5 = vpop.f32.mrb[57].mxu0  ;;  %3561 = vmatprep.mubr.bf16.mxu1 %v9948_v63  ;;  %6768 = vmatmul.mubr.msk.bf16.gmra.mrb[164].mxu0 %vm606_vm0, %v7063_v3  ;;  %v7135_v50 = vpop.eup %7134 }
 0x68e   : > { %v3103_v55 = vmul.f32 1.442695, %v2746_v5  ;;  %3562 = vmatmul.mubr.bf16.gmra.mrb[80].mxu1 %v9943_v47  ;;  %6771 = vmatprep.mubr.msk.bf16.mxu0 %vm606_vm0, %v7064_v23  ;;  %v7137_v24 = vpop.eup %7136 }
 0x68f   : > { %7146 = vpow2.f32 %v3101_v61 }
 0x690   : > { %7148 = vpow2.f32 %v3103_v55  ;;  %v2750_v16 = vpop.f32.mrb[58].mxu0 }
 0x691   : > { %v7139_v53 = vpop.eup %7138  ;;  %v3105_v2 = vmul.f32 1.442695, %v2750_v16  ;;  %v2752_v9 = vpop.f32.mrb[59].mxu0  ;;  %v7071_v16 = vld [vmem:[%s10944_s6 + $0x58] sm:$0xff]  }
 0x692   : > { %v7141_v34 = vpop.eup %7140  ;;  %v3107_v46 = vmul.f32 1.442695, %v2752_v9  ;;  %v9957_v58 = vpack.c.bf16 %v7139_v53, %v7135_v50 }
 0x693   : > { %v9962_v60 = vpack.c.bf16 %v7141_v34, %v7137_v24  ;;  %7150 = vpow2.f32 %v3105_v2 }
 0x694   : > { %v2756_v42 = vpop.f32.mrb[60].mxu0  ;;  %7152 = vpow2.f32 %v3107_v46 }
 0x695   : > { %v3109_v10 = vmul.f32 1.442695, %v2756_v42  ;;  %v2758_v44 = vpop.f32.mrb[61].mxu0  ;;  %3569 = vmatprep.mubr.bf16.mxu1 %v9962_v60  ;;  %6772 = vmatmul.mubr.msk.bf16.gmra.mrb[168].mxu0 %vm606_vm0, %v7065_v39  ;;  %v7143_v14 = vpop.eup %7142  ;;  %v7072_v39 = vld [vmem:[%s10944_s6 + $0x60] sm:$0xff]  }
 0x696   : > { %v3111_v30 = vmul.f32 1.442695, %v2758_v44  ;;  %3570 = vmatmul.mubr.bf16.gmra.mrb[84].mxu1 %v9957_v58  ;;  %6775 = vmatprep.mubr.msk.bf16.mxu0 %vm606_vm0, %v7066_v62  ;;  %v7145_v56 = vpop.eup %7144 }
 0x697   : > { %7154 = vpow2.f32 %v3109_v10 }
 0x698   : > { %7156 = vpow2.f32 %v3111_v30  ;;  %v2762_v36 = vpop.f32.mrb[62].mxu0 }
 0x699   : > { %v7147_v57 = vpop.eup %7146  ;;  %v3113_v49 = vmul.f32 1.442695, %v2762_v36  ;;  %v2764_v19 = vpop.f32.mrb[63].mxu0 }
 0x69a   : > { %v7149_v28 = vpop.eup %7148  ;;  %v3115_v35 = vmul.f32 1.442695, %v2764_v19  ;;  %v9971_v8 = vpack.c.bf16 %v7147_v57, %v7143_v14 }
 0x69b   : > { %v9976_v43 = vpack.c.bf16 %v7149_v28, %v7145_v56  ;;  %7158 = vpow2.f32 %v3113_v49  ;;  %v7073_v49 = vld [vmem:[%s10944_s6 + $0x68] sm:$0xff]  }
 0x69c   : > { %v2768_v4 = vpop.f32.mrb[64].mxu0  ;;  %7160 = vpow2.f32 %v3115_v35  ;;  %v7074_v35 = vld [vmem:[%s10944_s6 + $0x70] sm:$0xff]  }
 0x69d   : > { %v3117_v22 = vmul.f32 1.442695, %v2768_v4  ;;  %v2770_v48 = vpop.f32.mrb[65].mxu0  ;;  %3577 = vmatprep.mubr.bf16.mxu1 %v9976_v43  ;;  %6776 = vmatmul.mubr.msk.bf16.gmra.mrb[172].mxu0 %vm606_vm0, %v7067_v20  ;;  %v7151_v1 = vpop.eup %7150 }
 0x69e   : > { %v3119_v52 = vmul.f32 1.442695, %v2770_v48  ;;  %3578 = vmatmul.mubr.bf16.gmra.mrb[88].mxu1 %v9971_v8  ;;  %6779 = vmatprep.mubr.msk.bf16.mxu0 %vm606_vm0, %v7068_v45  ;;  %v7153_v17 = vpop.eup %7152 }
 0x69f   : > { %7162 = vpow2.f32 %v3117_v22 }
 0x6a0   : > { %7164 = vpow2.f32 %v3119_v52  ;;  %v2774_v26 = vpop.f32.mrb[66].mxu0 }
 0x6a1   : > { %v7155_v29 = vpop.eup %7154  ;;  %v3121_v33 = vmul.f32 1.442695, %v2774_v26  ;;  %v2776_v31 = vpop.f32.mrb[67].mxu0 }
 0x6a2   : > { %v7157_v0 = vpop.eup %7156  ;;  %v3123_v38 = vmul.f32 1.442695, %v2776_v31  ;;  %v9988_v6 = vpack.c.bf16 %v7155_v29, %v7151_v1  ;;  %v7075_v31 = vld [vmem:[%s10944_s6 + $0x78] sm:$0xff]  }
 0x6a3   : > { %v9993_v59 = vpack.c.bf16 %v7157_v0, %v7153_v17  ;;  %7166 = vpow2.f32 %v3121_v33 }
 0x6a4   : > { %v2780_v3 = vpop.f32.mrb[68].mxu0  ;;  %7168 = vpow2.f32 %v3123_v38 }
 0x6a5   : > { %v3125_v41 = vmul.f32 1.442695, %v2780_v3  ;;  %v2782_v51 = vpop.f32.mrb[69].mxu0  ;;  %3585 = vmatprep.mubr.bf16.mxu1 %v9993_v59  ;;  %6780 = vmatmul.mubr.msk.bf16.gmra.mrb[176].mxu0 %vm606_vm0, %v7069_v25  ;;  %v7159_v27 = vpop.eup %7158 }
 0x6a6   : > { %v3127_v23 = vmul.f32 1.442695, %v2782_v51  ;;  %3586 = vmatmul.mubr.bf16.gmra.mrb[92].mxu1 %v9988_v6  ;;  %6783 = vmatprep.mubr.msk.bf16.mxu0 %vm606_vm0, %v7070_v7  ;;  %v7161_v61 = vpop.eup %7160 }
 0x6a7   : > { %7170 = vpow2.f32 %v3125_v41 }
 0x6a8   : > { %7172 = vpow2.f32 %v3127_v23  ;;  %v2786_v5 = vpop.f32.mrb[70].mxu0 }
 0x6a9   : > { %v7163_v55 = vpop.eup %7162  ;;  %v3129_v50 = vmul.f32 1.442695, %v2786_v5  ;;  %v2788_v24 = vpop.f32.mrb[71].mxu0 }
 0x6aa   : > { %v7165_v53 = vpop.eup %7164  ;;  %v3131_v2 = vmul.f32 1.442695, %v2788_v24  ;;  %v10002_v9 = vpack.c.bf16 %v7163_v55, %v7159_v27 }
 0x6ab   : > { %v10007_v34 = vpack.c.bf16 %v7165_v53, %v7161_v61  ;;  %7174 = vpow2.f32 %v3129_v50 }
 0x6ac   : > { %v2792_v46 = vpop.f32.mrb[72].mxu0  ;;  %7176 = vpow2.f32 %v3131_v2 }
 0x6ad   : > { %v3133_v62 = vmul.f32 1.442695, %v2792_v46  ;;  %v2794_v42 = vpop.f32.mrb[73].mxu0  ;;  %3593 = vmatprep.mubr.bf16.mxu1 %v10007_v34  ;;  %6784 = vmatmul.mubr.msk.bf16.gmra.mrb[180].mxu0 %vm606_vm0, %v7071_v16  ;;  %v7167_v44 = vpop.eup %7166 }
 0x6ae   : > { %v3135_v10 = vmul.f32 1.442695, %v2794_v42  ;;  %3594 = vmatmul.mubr.bf16.gmra.mrb[96].mxu1 %v10002_v9  ;;  %6787 = vmatprep.mubr.msk.bf16.mxu0 %vm606_vm0, %v7072_v39  ;;  %v7169_v30 = vpop.eup %7168 }
 0x6af   : > { %7178 = vpow2.f32 %v3133_v62 }
 0x6b0   : > { %7180 = vpow2.f32 %v3135_v10  ;;  %v2798_v14 = vpop.f32.mrb[74].mxu0 }
 0x6b1   : > { %v7171_v56 = vpop.eup %7170  ;;  %v3137_v36 = vmul.f32 1.442695, %v2798_v14  ;;  %v2800_v57 = vpop.f32.mrb[75].mxu0 }
 0x6b2   : > { %v7173_v19 = vpop.eup %7172  ;;  %v3139_v20 = vmul.f32 1.442695, %v2800_v57  ;;  %v10016_v28 = vpack.c.bf16 %v7171_v56, %v7167_v44 }
 0x6b3   : > { %v10021_v45 = vpack.c.bf16 %v7173_v19, %v7169_v30  ;;  %7182 = vpow2.f32 %v3137_v36 }
 0x6b4   : > { %v2804_v4 = vpop.f32.mrb[76].mxu0  ;;  %7184 = vpow2.f32 %v3139_v20 }
 0x6b5   : > { %v3141_v22 = vmul.f32 1.442695, %v2804_v4  ;;  %v2806_v48 = vpop.f32.mrb[77].mxu0  ;;  %3601 = vmatprep.mubr.bf16.mxu1 %v10021_v45  ;;  %6788 = vmatmul.mubr.msk.bf16.gmra.mrb[184].mxu0 %vm606_vm0, %v7073_v49  ;;  %v7175_v1 = vpop.eup %7174 }
 0x6b6   : > { %v3143_v52 = vmul.f32 1.442695, %v2806_v48  ;;  %3602 = vmatmul.mubr.bf16.gmra.mrb[100].mxu1 %v10016_v28  ;;  %6791 = vmatprep.mubr.msk.bf16.mxu0 %vm606_vm0, %v7074_v35  ;;  %v7177_v40 = vpop.eup %7176 }
 0x6b7   : > { %7186 = vpow2.f32 %v3141_v22 }
 0x6b8   : > { %7188 = vpow2.f32 %v3143_v52  ;;  %v2810_v17 = vpop.f32.mrb[78].mxu0 }
 0x6b9   : > { %v7179_v26 = vpop.eup %7178  ;;  %v3145_v29 = vmul.f32 1.442695, %v2810_v17  ;;  %v2812_v33 = vpop.f32.mrb[79].mxu0 }
 0x6ba   : > { %v7181_v25 = vpop.eup %7180  ;;  %v3147_v0 = vmul.f32 1.442695, %v2812_v33  ;;  %v10030_v38 = vpack.c.bf16 %v7179_v26, %v7175_v1 }
 0x6bb   : > { %v10032_v7 = vpack.c.bf16 %v7181_v25, %v7177_v40  ;;  %7190 = vpow2.f32 %v3145_v29 }
 0x6bc   : > { %v2816_v3 = vpop.f32.mrb[80].mxu0  ;;  %7192 = vpow2.f32 %v3147_v0 }
 0x6bd   : > { %v3149_v41 = vmul.f32 1.442695, %v2816_v3  ;;  %v2818_v51 = vpop.f32.mrb[81].mxu0  ;;  %3609 = vmatprep.mubr.bf16.mxu1 %v10032_v7  ;;  %6792 = vmatmul.mubr.msk.bf16.gmra.mrb[188].mxu0 %vm606_vm0, %v7075_v31  ;;  %v7183_v27 = vpop.eup %7182 }
 0x6be   : > { %v3151_v23 = vmul.f32 1.442695, %v2818_v51  ;;  %3610 = vmatmul.mubr.bf16.gmra.mrb[104].mxu1 %v10030_v38  ;;  %4286 = vmatprep.mubr.bf16.mxu0 %v9879_v32  ;;  %v7185_v61 = vpop.eup %7184 }
 0x6bf   : > { %7194 = vpow2.f32 %v3149_v41 }
 0x6c0   : > { %7196 = vpow2.f32 %v3151_v23  ;;  %v2822_v5 = vpop.f32.mrb[82].mxu0 }
 0x6c1   : > { %v7187_v55 = vpop.eup %7186  ;;  %v3153_v50 = vmul.f32 1.442695, %v2822_v5  ;;  %v2824_v24 = vpop.f32.mrb[83].mxu0 }
 0x6c2   : > { %v7189_v16 = vpop.eup %7188  ;;  %v3155_v53 = vmul.f32 1.442695, %v2824_v24  ;;  %v10038_v2 = vpack.c.bf16 %v7187_v55, %v7183_v27 }
 0x6c3   : > { %v10040_v39 = vpack.c.bf16 %v7189_v16, %v7185_v61  ;;  %7198 = vpow2.f32 %v3153_v50 }
 0x6c4   : > { %v2828_v46 = vpop.f32.mrb[84].mxu0  ;;  %7200 = vpow2.f32 %v3155_v53 }
 0x6c5   : > { %v3157_v62 = vmul.f32 1.442695, %v2828_v46  ;;  %v2830_v42 = vpop.f32.mrb[85].mxu0  ;;  %3617 = vmatprep.mubr.bf16.mxu1 %v10040_v39  ;;  %v7191_v10 = vpop.eup %7190 }
 0x6c6   : > { %v3159_v32 = vmul.f32 1.442695, %v2830_v42  ;;  %3618 = vmatmul.mubr.bf16.gmra.mrb[108].mxu1 %v10038_v2  ;;  %v7193_v44 = vpop.eup %7192 }
 0x6c7   : > { %7202 = vpow2.f32 %v3157_v62 }
 0x6c8   : > { %7204 = vpow2.f32 %v3159_v32  ;;  %v2834_v30 = vpop.f32.mrb[86].mxu0 }
 0x6c9   : > { %v7195_v14 = vpop.eup %7194  ;;  %v3161_v56 = vmul.f32 1.442695, %v2834_v30  ;;  %v2836_v36 = vpop.f32.mrb[87].mxu0 }
 0x6ca   : > { %v7197_v57 = vpop.eup %7196  ;;  %v3163_v49 = vmul.f32 1.442695, %v2836_v36  ;;  %v10044_v19 = vpack.c.bf16 %v7195_v14, %v7191_v10 }
 0x6cb   : > { %v10046_v20 = vpack.c.bf16 %v7197_v57, %v7193_v44  ;;  %7206 = vpow2.f32 %v3161_v56 }
 0x6cc   : > { %v2840_v35 = vpop.f32.mrb[88].mxu0  ;;  %7208 = vpow2.f32 %v3163_v49 }
 0x6cd   : > { %v3165_v4 = vmul.f32 1.442695, %v2840_v35  ;;  %v2842_v22 = vpop.f32.mrb[89].mxu0  ;;  %3625 = vmatprep.mubr.bf16.mxu1 %v10046_v20  ;;  %v7199_v52 = vpop.eup %7198 }
 0x6ce   : > { %v3167_v48 = vmul.f32 1.442695, %v2842_v22  ;;  %3626 = vmatmul.mubr.bf16.gmra.mrb[112].mxu1 %v10044_v19  ;;  %v7201_v1 = vpop.eup %7200 }
 0x6cf   : > { %7210 = vpow2.f32 %v3165_v4 }
 0x6d0   : > { %7212 = vpow2.f32 %v3167_v48  ;;  %v2846_v40 = vpop.f32.mrb[90].mxu0 }
 0x6d1   : > { %v7203_v17 = vpop.eup %7202  ;;  %v3169_v26 = vmul.f32 1.442695, %v2846_v40  ;;  %v2848_v29 = vpop.f32.mrb[91].mxu0 }
 0x6d2   : > { %v7205_v33 = vpop.eup %7204  ;;  %v3171_v31 = vmul.f32 1.442695, %v2848_v29  ;;  %v10050_v25 = vpack.c.bf16 %v7203_v17, %v7199_v52 }
 0x6d3   : > { %v10052_v0 = vpack.c.bf16 %v7205_v33, %v7201_v1  ;;  %7214 = vpow2.f32 %v3169_v26 }
 0x6d4   : > { %v2852_v3 = vpop.f32.mrb[92].mxu0  ;;  %7216 = vpow2.f32 %v3171_v31 }
 0x6d5   : > { %v3173_v41 = vmul.f32 1.442695, %v2852_v3  ;;  %v2854_v51 = vpop.f32.mrb[93].mxu0  ;;  %3633 = vmatprep.mubr.bf16.mxu1 %v10052_v0  ;;  %v7207_v27 = vpop.eup %7206 }
 0x6d6   : > { %v3175_v23 = vmul.f32 1.442695, %v2854_v51  ;;  %3634 = vmatmul.mubr.bf16.gmra.mrb[116].mxu1 %v10050_v25  ;;  %v7209_v61 = vpop.eup %7208 }
 0x6d7   : > { %7218 = vpow2.f32 %v3173_v41 }
 0x6d8   : > { %7220 = vpow2.f32 %v3175_v23  ;;  %v2858_v5 = vpop.f32.mrb[94].mxu0 }
 0x6d9   : > { %v7211_v55 = vpop.eup %7210  ;;  %v3177_v50 = vmul.f32 1.442695, %v2858_v5  ;;  %v2860_v24 = vpop.f32.mrb[95].mxu0 }
 0x6da   : > { %v7213_v16 = vpop.eup %7212  ;;  %v3179_v53 = vmul.f32 1.442695, %v2860_v24  ;;  %v10056_v46 = vpack.c.bf16 %v7211_v55, %v7207_v27 }
 0x6db   : > { %v10058_v62 = vpack.c.bf16 %v7213_v16, %v7209_v61  ;;  %7222 = vpow2.f32 %v3177_v50 }
 0x6dc   : > { %v2864_v42 = vpop.f32.mrb[96].mxu0  ;;  %7224 = vpow2.f32 %v3179_v53 }
 0x6dd   : > { %v3181_v32 = vmul.f32 1.442695, %v2864_v42  ;;  %v2866_v10 = vpop.f32.mrb[97].mxu0  ;;  %3641 = vmatprep.mubr.bf16.mxu1 %v10058_v62  ;;  %v7215_v30 = vpop.eup %7214 }
 0x6de   : > { %v3183_v44 = vmul.f32 1.442695, %v2866_v10  ;;  %3642 = vmatmul.mubr.bf16.gmra.mrb[120].mxu1 %v10056_v46  ;;  %v7217_v14 = vpop.eup %7216 }
 0x6df   : > { %7226 = vpow2.f32 %v3181_v32 }
 0x6e0   : > { %7228 = vpow2.f32 %v3183_v44  ;;  %v2870_v56 = vpop.f32.mrb[98].mxu0 }
 0x6e1   : > { %v7219_v36 = vpop.eup %7218  ;;  %v3185_v57 = vmul.f32 1.442695, %v2870_v56  ;;  %v2872_v49 = vpop.f32.mrb[99].mxu0 }
 0x6e2   : > { %v7221_v35 = vpop.eup %7220  ;;  %v3187_v4 = vmul.f32 1.442695, %v2872_v49  ;;  %v10062_v22 = vpack.c.bf16 %v7219_v36, %v7215_v30 }
 0x6e3   : > { %v10064_v48 = vpack.c.bf16 %v7221_v35, %v7217_v14  ;;  %7230 = vpow2.f32 %v3185_v57 }
 0x6e4   : > { %v2876_v52 = vpop.f32.mrb[100].mxu0  ;;  %7232 = vpow2.f32 %v3187_v4 }
 0x6e5   : > { %v3189_v1 = vmul.f32 1.442695, %v2876_v52  ;;  %v2878_v40 = vpop.f32.mrb[101].mxu0  ;;  %3649 = vmatprep.mubr.bf16.mxu1 %v10064_v48  ;;  %v7223_v26 = vpop.eup %7222 }
 0x6e6   : > { %v3191_v17 = vmul.f32 1.442695, %v2878_v40  ;;  %3650 = vmatmul.mubr.bf16.gmra.mrb[124].mxu1 %v10062_v22  ;;  %v7225_v29 = vpop.eup %7224 }
 0x6e7   : > { %7234 = vpow2.f32 %v3189_v1 }
 0x6e8   : > { %7236 = vpow2.f32 %v3191_v17  ;;  %v2882_v33 = vpop.f32.mrb[102].mxu0 }
 0x6e9   : > { %v7227_v31 = vpop.eup %7226  ;;  %v3193_v3 = vmul.f32 1.442695, %v2882_v33  ;;  %v2884_v41 = vpop.f32.mrb[103].mxu0 }
 0x6ea   : > { %v7229_v51 = vpop.eup %7228  ;;  %v3195_v23 = vmul.f32 1.442695, %v2884_v41  ;;  %v10068_v27 = vpack.c.bf16 %v7227_v31, %v7223_v26 }
 0x6eb   : > { %v10070_v61 = vpack.c.bf16 %v7229_v51, %v7225_v29  ;;  %7238 = vpow2.f32 %v3193_v3 }
 0x6ec   : > { %11485 = vst [vmem:[#allocation88_spill] sm:$0xff] %v10068_v27  ;;  %v2888_v5 = vpop.f32.mrb[104].mxu0  ;;  %7240 = vpow2.f32 %v3195_v23 }
 0x6ed   : > { %v3197_v55 = vmul.f32 1.442695, %v2888_v5  ;;  %v2890_v50 = vpop.f32.mrb[105].mxu0  ;;  %3657 = vmatprep.mubr.bf16.mxu1 %v10070_v61  ;;  %v7231_v16 = vpop.eup %7230 }
 0x6ee   : > { %v3199_v24 = vmul.f32 1.442695, %v2890_v50  ;;  %3658 = vmatmul.mubr.bf16.gmra.mrb[128].mxu1 %v10068_v27  ;;  %v7233_v53 = vpop.eup %7232 }
 0x6ef   : > { %7242 = vpow2.f32 %v3197_v55 }
 0x6f0   : > { %7244 = vpow2.f32 %v3199_v24  ;;  %v2894_v42 = vpop.f32.mrb[106].mxu0 }
 0x6f1   : > { %v7235_v32 = vpop.eup %7234  ;;  %v3201_v10 = vmul.f32 1.442695, %v2894_v42  ;;  %v2896_v44 = vpop.f32.mrb[107].mxu0 }
 0x6f2   : > { %v7237_v30 = vpop.eup %7236  ;;  %v3203_v14 = vmul.f32 1.442695, %v2896_v44  ;;  %v10074_v56 = vpack.c.bf16 %v7235_v32, %v7231_v16 }
 0x6f3   : > { %v10076_v36 = vpack.c.bf16 %v7237_v30, %v7233_v53  ;;  %7246 = vpow2.f32 %v3201_v10 }
 0x6f4   : > { %11486 = vst [vmem:[#allocation86_spill] sm:$0xff] %v10074_v56  ;;  %v2900_v57 = vpop.f32.mrb[108].mxu0  ;;  %7248 = vpow2.f32 %v3203_v14 }
 0x6f5   : > { %11487 = vst [vmem:[#allocation91_spill] sm:$0xff] %v10076_v36  ;;  %v3205_v49 = vmul.f32 1.442695, %v2900_v57  ;;  %v2902_v35 = vpop.f32.mrb[109].mxu0  ;;  %3665 = vmatprep.mubr.bf16.mxu1 %v10076_v36  ;;  %v7239_v52 = vpop.eup %7238 }
 0x6f6   : > { %v3207_v4 = vmul.f32 1.442695, %v2902_v35  ;;  %3666 = vmatmul.mubr.bf16.gmra.mrb[132].mxu1 %v10074_v56  ;;  %v7241_v1 = vpop.eup %7240 }
 0x6f7   : > { %7250 = vpow2.f32 %v3205_v49 }
 0x6f8   : > { %7252 = vpow2.f32 %v3207_v4  ;;  %v2906_v40 = vpop.f32.mrb[110].mxu0 }
 0x6f9   : > { %v7243_v17 = vpop.eup %7242  ;;  %v3209_v26 = vmul.f32 1.442695, %v2906_v40  ;;  %v2908_v29 = vpop.f32.mrb[111].mxu0 }
 0x6fa   : > { %v7245_v33 = vpop.eup %7244  ;;  %v3211_v31 = vmul.f32 1.442695, %v2908_v29  ;;  %v10080_v3 = vpack.c.bf16 %v7243_v17, %v7239_v52 }
 0x6fb   : > { %v10082_v41 = vpack.c.bf16 %v7245_v33, %v7241_v1  ;;  %7254 = vpow2.f32 %v3209_v26 }
 0x6fc   : > { %11488 = vst [vmem:[#allocation90_spill] sm:$0xff] %v10080_v3  ;;  %v2912_v51 = vpop.f32.mrb[112].mxu0  ;;  %7256 = vpow2.f32 %v3211_v31 }
 0x6fd   : > { %11489 = vst [vmem:[#allocation97_spill] sm:$0xff] %v10082_v41  ;;  %v3213_v23 = vmul.f32 1.442695, %v2912_v51  ;;  %v2914_v5 = vpop.f32.mrb[113].mxu0  ;;  %3673 = vmatprep.mubr.bf16.mxu1 %v10082_v41  ;;  %v7247_v50 = vpop.eup %7246 }
 0x6fe   : > { %v3215_v55 = vmul.f32 1.442695, %v2914_v5  ;;  %3674 = vmatmul.mubr.bf16.gmra.mrb[136].mxu1 %v10080_v3  ;;  %v7249_v24 = vpop.eup %7248 }
 0x6ff   : > { %7258 = vpow2.f32 %v3213_v23 }
 0x700   : > { %7260 = vpow2.f32 %v3215_v55  ;;  %v2918_v16 = vpop.f32.mrb[114].mxu0 }
 0x701   : > { %v7251_v53 = vpop.eup %7250  ;;  %v3217_v42 = vmul.f32 1.442695, %v2918_v16  ;;  %v2920_v32 = vpop.f32.mrb[115].mxu0 }
 0x702   : > { %v7253_v10 = vpop.eup %7252  ;;  %v3219_v44 = vmul.f32 1.442695, %v2920_v32  ;;  %v10086_v30 = vpack.c.bf16 %v7251_v53, %v7247_v50 }
 0x703   : > { %v10088_v14 = vpack.c.bf16 %v7253_v10, %v7249_v24  ;;  %7262 = vpow2.f32 %v3217_v42 }
 0x704   : > { %11490 = vst [vmem:[#allocation96_spill] sm:$0xff] %v10086_v30  ;;  %v2924_v57 = vpop.f32.mrb[116].mxu0  ;;  %7264 = vpow2.f32 %v3219_v44 }
 0x705   : > { %11491 = vst [vmem:[#allocation102_spill] sm:$0xff] %v10088_v14  ;;  %v3221_v49 = vmul.f32 1.442695, %v2924_v57  ;;  %v2926_v35 = vpop.f32.mrb[117].mxu0  ;;  %3681 = vmatprep.mubr.bf16.mxu1 %v10088_v14  ;;  %v7255_v52 = vpop.eup %7254 }
 0x706   : > { %v3223_v4 = vmul.f32 1.442695, %v2926_v35  ;;  %3682 = vmatmul.mubr.bf16.gmra.mrb[140].mxu1 %v10086_v30  ;;  %v7257_v1 = vpop.eup %7256 }
 0x707   : > { %7266 = vpow2.f32 %v3221_v49 }
 0x708   : > { %7268 = vpow2.f32 %v3223_v4  ;;  %v2930_v40 = vpop.f32.mrb[118].mxu0 }
 0x709   : > { %v7259_v17 = vpop.eup %7258  ;;  %v3225_v26 = vmul.f32 1.442695, %v2930_v40  ;;  %v2932_v29 = vpop.f32.mrb[119].mxu0 }
 0x70a   : > { %v7261_v33 = vpop.eup %7260  ;;  %v3227_v31 = vmul.f32 1.442695, %v2932_v29  ;;  %v10092_v51 = vpack.c.bf16 %v7259_v17, %v7255_v52 }
 0x70b   : > { %v10094_v23 = vpack.c.bf16 %v7261_v33, %v7257_v1  ;;  %7270 = vpow2.f32 %v3225_v26 }
 0x70c   : > { %11492 = vst [vmem:[#allocation95_spill] sm:$0xff] %v10092_v51  ;;  %v2936_v5 = vpop.f32.mrb[120].mxu0  ;;  %7272 = vpow2.f32 %v3227_v31 }
 0x70d   : > { %11493 = vst [vmem:[#allocation94_spill] sm:$0xff] %v10094_v23  ;;  %v3229_v55 = vmul.f32 1.442695, %v2936_v5  ;;  %v2938_v50 = vpop.f32.mrb[121].mxu0  ;;  %3689 = vmatprep.mubr.bf16.mxu1 %v10094_v23  ;;  %v7263_v16 = vpop.eup %7262 }
 0x70e   : > { %v3231_v24 = vmul.f32 1.442695, %v2938_v50  ;;  %3690 = vmatmul.mubr.bf16.gmra.mrb[144].mxu1 %v10092_v51  ;;  %v7265_v53 = vpop.eup %7264 }
 0x70f   : > { %7274 = vpow2.f32 %v3229_v55 }
 0x710   : > { %7276 = vpow2.f32 %v3231_v24  ;;  %v2942_v42 = vpop.f32.mrb[122].mxu0 }
 0x711   : > { %v7267_v32 = vpop.eup %7266  ;;  %v3233_v10 = vmul.f32 1.442695, %v2942_v42  ;;  %v2944_v44 = vpop.f32.mrb[123].mxu0 }
 0x712   : > { %v7269_v57 = vpop.eup %7268  ;;  %v3235_v49 = vmul.f32 1.442695, %v2944_v44  ;;  %v10098_v35 = vpack.c.bf16 %v7267_v32, %v7263_v16 }
 0x713   : > { %v10100_v4 = vpack.c.bf16 %v7269_v57, %v7265_v53  ;;  %7278 = vpow2.f32 %v3233_v10 }
 0x714   : > { %11494 = vst [vmem:[#allocation99_spill] sm:$0xff] %v10098_v35  ;;  %v2948_v52 = vpop.f32.mrb[124].mxu0  ;;  %7280 = vpow2.f32 %v3235_v49 }
 0x715   : > { %11495 = vst [vmem:[#allocation98_spill] sm:$0xff] %v10100_v4  ;;  %v3237_v1 = vmul.f32 1.442695, %v2948_v52  ;;  %v2950_v40 = vpop.f32.mrb[125].mxu0  ;;  %3697 = vmatprep.mubr.bf16.mxu1 %v10100_v4  ;;  %v7271_v26 = vpop.eup %7270 }
 0x716   : > { %v3239_v17 = vmul.f32 1.442695, %v2950_v40  ;;  %3698 = vmatmul.mubr.bf16.gmra.mrb[148].mxu1 %v10098_v35  ;;  %v7273_v29 = vpop.eup %7272 }
 0x717   : > { %7282 = vpow2.f32 %v3237_v1 }
 0x718   : > { %7284 = vpow2.f32 %v3239_v17  ;;  %v2954_v33 = vpop.f32.mrb[126].mxu0 }
 0x719   : > { %v7275_v31 = vpop.eup %7274  ;;  %v3241_v5 = vmul.f32 1.442695, %v2954_v33  ;;  %v2956_v55 = vpop.f32.mrb[127].mxu0 }
 0x71a   : > { %v7277_v50 = vpop.eup %7276  ;;  %v3243_v24 = vmul.f32 1.442695, %v2956_v55  ;;  %v10104_v16 = vpack.c.bf16 %v7275_v31, %v7271_v26 }
 0x71b   : > { %v10106_v53 = vpack.c.bf16 %v7277_v50, %v7273_v29  ;;  %7286 = vpow2.f32 %v3241_v5 }
 0x71c   : > { %11496 = vst [vmem:[#allocation103_spill] sm:$0xff] %v10104_v16  ;;  %v2960_v42 = vpop.f32.mrb[128].mxu0  ;;  %7288 = vpow2.f32 %v3243_v24 }
 0x71d   : > { %11497 = vst [vmem:[#allocation104_spill] sm:$0xff] %v10106_v53  ;;  %v3245_v32 = vmul.f32 1.442695, %v2960_v42  ;;  %v2962_v10 = vpop.f32.mrb[129].mxu0  ;;  %3705 = vmatprep.mubr.bf16.mxu1 %v10106_v53  ;;  %v7279_v57 = vpop.eup %7278 }
 0x71e   : > { %v3247_v44 = vmul.f32 1.442695, %v2962_v10  ;;  %3706 = vmatmul.mubr.bf16.gmra.mrb[152].mxu1 %v10104_v16  ;;  %v7281_v49 = vpop.eup %7280 }
 0x71f   : > { %7290 = vpow2.f32 %v3245_v32 }
 0x720   : > { %7292 = vpow2.f32 %v3247_v44  ;;  %v2966_v52 = vpop.f32.mrb[130].mxu0 }
 0x721   : > { %v7283_v1 = vpop.eup %7282  ;;  %v3249_v40 = vmul.f32 1.442695, %v2966_v52  ;;  %v2968_v17 = vpop.f32.mrb[131].mxu0 }
 0x722   : > { %v7285_v26 = vpop.eup %7284  ;;  %v3251_v29 = vmul.f32 1.442695, %v2968_v17  ;;  %v10110_v33 = vpack.c.bf16 %v7283_v1, %v7279_v57 }
 0x723   : > { %v10112_v31 = vpack.c.bf16 %v7285_v26, %v7281_v49  ;;  %7294 = vpow2.f32 %v3249_v40 }
 0x724   : > { %11498 = vst [vmem:[#allocation105_spill] sm:$0xff] %v10110_v33  ;;  %v2972_v5 = vpop.f32.mrb[132].mxu0  ;;  %7296 = vpow2.f32 %v3251_v29 }
 0x725   : > { %11499 = vst [vmem:[#allocation106_spill] sm:$0xff] %v10112_v31  ;;  %v3253_v55 = vmul.f32 1.442695, %v2972_v5  ;;  %v2974_v50 = vpop.f32.mrb[133].mxu0  ;;  %3713 = vmatprep.mubr.bf16.mxu1 %v10112_v31  ;;  %v7287_v42 = vpop.eup %7286 }
 0x726   : > { %v3255_v24 = vmul.f32 1.442695, %v2974_v50  ;;  %3714 = vmatmul.mubr.bf16.gmra.mrb[156].mxu1 %v10110_v33  ;;  %v7289_v32 = vpop.eup %7288 }
 0x727   : > { %7298 = vpow2.f32 %v3253_v55 }
 0x728   : > { %7300 = vpow2.f32 %v3255_v24  ;;  %v2978_v10 = vpop.f32.mrb[134].mxu0 }
 0x729   : > { %v7291_v44 = vpop.eup %7290  ;;  %v3257_v57 = vmul.f32 1.442695, %v2978_v10  ;;  %v2980_v52 = vpop.f32.mrb[135].mxu0 }
 0x72a   : > { %v7293_v49 = vpop.eup %7292  ;;  %v3259_v1 = vmul.f32 1.442695, %v2980_v52  ;;  %v10116_v17 = vpack.c.bf16 %v7291_v44, %v7287_v42 }
 0x72b   : > { %v10118_v40 = vpack.c.bf16 %v7293_v49, %v7289_v32  ;;  %7302 = vpow2.f32 %v3257_v57 }
 0x72c   : > { %11500 = vst [vmem:[#allocation107_spill] sm:$0xff] %v10116_v17  ;;  %v2984_v26 = vpop.f32.mrb[136].mxu0  ;;  %7304 = vpow2.f32 %v3259_v1 }
 0x72d   : > { %11501 = vst [vmem:[#allocation108_spill] sm:$0xff] %v10118_v40  ;;  %v3261_v29 = vmul.f32 1.442695, %v2984_v26  ;;  %v2986_v5 = vpop.f32.mrb[137].mxu0  ;;  %3721 = vmatprep.mubr.bf16.mxu1 %v10118_v40  ;;  %v7295_v50 = vpop.eup %7294 }
 0x72e   : > { %v3263_v55 = vmul.f32 1.442695, %v2986_v5  ;;  %3722 = vmatmul.mubr.bf16.gmra.mrb[160].mxu1 %v10116_v17  ;;  %v7297_v24 = vpop.eup %7296 }
 0x72f   : > { %7306 = vpow2.f32 %v3261_v29 }
 0x730   : > { %7308 = vpow2.f32 %v3263_v55  ;;  %v2990_v10 = vpop.f32.mrb[138].mxu0 }
 0x731   : > { %v7299_v52 = vpop.eup %7298  ;;  %v3265_v42 = vmul.f32 1.442695, %v2990_v10  ;;  %v2992_v44 = vpop.f32.mrb[139].mxu0 }
 0x732   : > { %v7301_v32 = vpop.eup %7300  ;;  %v3267_v49 = vmul.f32 1.442695, %v2992_v44  ;;  %v10122_v21 = vpack.c.bf16 %v7299_v52, %v7295_v50 }
 0x733   : > { %v10124_v57 = vpack.c.bf16 %v7301_v32, %v7297_v24  ;;  %7310 = vpow2.f32 %v3265_v42 }
 0x734   : > { %11502 = vst [vmem:[#allocation109_spill] sm:$0xff] %v10122_v21  ;;  %v2996_v26 = vpop.f32.mrb[140].mxu0  ;;  %7312 = vpow2.f32 %v3267_v49 }
 0x735   : > { %11503 = vst [vmem:[#allocation110_spill] sm:$0xff] %v10124_v57  ;;  %v3269_v1 = vmul.f32 1.442695, %v2996_v26  ;;  %v2998_v5 = vpop.f32.mrb[141].mxu0  ;;  %3729 = vmatprep.mubr.bf16.mxu1 %v10124_v57  ;;  %v7303_v55 = vpop.eup %7302 }
 0x736   : > { %v3271_v29 = vmul.f32 1.442695, %v2998_v5  ;;  %3730 = vmatmul.mubr.bf16.gmra.mrb[164].mxu1 %v10122_v21  ;;  %v7305_v10 = vpop.eup %7304 }
 0x737   : > { %7314 = vpow2.f32 %v3269_v1 }
 0x738   : > { %7316 = vpow2.f32 %v3271_v29  ;;  %v3002_v17 = vpop.f32.mrb[142].mxu0 }
 0x739   : > { %v7307_v44 = vpop.eup %7306  ;;  %v3273_v50 = vmul.f32 1.442695, %v3002_v17  ;;  %v3004_v52 = vpop.f32.mrb[143].mxu0 }
 0x73a   : > { %v7309_v24 = vpop.eup %7308  ;;  %v3275_v32 = vmul.f32 1.442695, %v3004_v52  ;;  %v10128_v40 = vpack.c.bf16 %v7307_v44, %v7303_v55 }
 0x73b   : > { %v10130_v42 = vpack.c.bf16 %v7309_v24, %v7305_v10  ;;  %7318 = vpow2.f32 %v3273_v50 }
 0x73c   : > { %11504 = vst [vmem:[#allocation111_spill] sm:$0xff] %v10128_v40  ;;  %v3008_v26 = vpop.f32.mrb[144].mxu0  ;;  %7320 = vpow2.f32 %v3275_v32 }
 0x73d   : > { %11505 = vst [vmem:[#allocation112_spill] sm:$0xff] %v10130_v42  ;;  %v3277_v49 = vmul.f32 1.442695, %v3008_v26  ;;  %v3010_v5 = vpop.f32.mrb[145].mxu0  ;;  %3737 = vmatprep.mubr.bf16.mxu1 %v10130_v42  ;;  %v7311_v29 = vpop.eup %7310 }
 0x73e   : > { %v3279_v1 = vmul.f32 1.442695, %v3010_v5  ;;  %3738 = vmatmul.mubr.bf16.gmra.mrb[168].mxu1 %v10128_v40  ;;  %v7313_v17 = vpop.eup %7312 }
 0x73f   : > { %7322 = vpow2.f32 %v3277_v49 }
 0x740   : > { %7324 = vpow2.f32 %v3279_v1  ;;  %v3014_v21 = vpop.f32.mrb[146].mxu0 }
 0x741   : > { %v7315_v52 = vpop.eup %7314  ;;  %v3281_v55 = vmul.f32 1.442695, %v3014_v21  ;;  %v3016_v44 = vpop.f32.mrb[147].mxu0 }
 0x742   : > { %v10134_v10 = vpop.f32.mrb[64].mxu1  ;;  %v7317_v24 = vpop.eup %7316  ;;  %v3283_v50 = vmul.f32 1.442695, %v3016_v44  ;;  %v10136_v57 = vpack.c.bf16 %v7315_v52, %v7311_v29 }
 0x743   : > { %v3533_v26 = vpop.f32.mrb[65].mxu1  ;;  %v10140_v32 = vpack.c.bf16 %v7317_v24, %v7313_v17  ;;  %7326 = vpow2.f32 %v3281_v55 }
 0x744   : > { %11506 = vst [vmem:[#allocation113_spill] sm:$0xff] %v10136_v57  ;;  %v10138_v42 = vpop.f32.mrb[66].mxu1  ;;  %v3020_v5 = vpop.f32.mrb[148].mxu0  ;;  %7328 = vpow2.f32 %v3283_v50 }
 0x745   : > { %11507 = vst [vmem:[#allocation114_spill] sm:$0xff] %v10140_v32  ;;  %v3536_v40 = vpop.f32.mrb[67].mxu1  ;;  %v3285_v49 = vmul.f32 1.442695, %v3020_v5  ;;  %v3022_v1 = vpop.f32.mrb[149].mxu0  ;;  %3745 = vmatprep.mubr.bf16.mxu1 %v10140_v32 }
 0x746   : > { %v3287_v21 = vmul.f32 1.442695, %v3022_v1  ;;  %3746 = vmatmul.mubr.bf16.gmra.mrb[172].mxu1 %v10136_v57  ;;  %v7319_v33 = vpop.eup %7318 }
 0x747   : > { %7330 = vpow2.f32 %v3285_v49  ;;  %v7321_v44 = vpop.eup %7320 }
 0x748   : > { %7332 = vpow2.f32 %v3287_v21  ;;  %v3026_v29 = vpop.f32.mrb[150].mxu0 }
 0x749   : > { %v7323_v52 = vpop.eup %7322  ;;  %v3289_v26 = vmul.f32 1.442695, %v3026_v29  ;;  %v3028_v17 = vpop.f32.mrb[151].mxu0 }
 0x74a   : > { %v10144_v24 = vpop.f32.mrb[68].mxu1  ;;  %v7325_v40 = vpop.eup %7324  ;;  %v3291_v55 = vmul.f32 1.442695, %v3028_v17  ;;  %v10146_v31 = vpack.c.bf16 %v7323_v52, %v7319_v33 }
 0x74b   : > { %v3541_v5 = vpop.f32.mrb[69].mxu1  ;;  %v10150_v50 = vpack.c.bf16 %v7325_v40, %v7321_v44  ;;  %7334 = vpow2.f32 %v3289_v26 }
 0x74c   : > { %11508 = vst [vmem:[#allocation115_spill] sm:$0xff] %v10146_v31  ;;  %v10148_v32 = vpop.f32.mrb[70].mxu1  ;;  %v3032_v1 = vpop.f32.mrb[152].mxu0  ;;  %7336 = vpow2.f32 %v3291_v55 }
 0x74d   : > { %11509 = vst [vmem:[#allocation116_spill] sm:$0xff] %v10150_v50  ;;  %v3544_v57 = vpop.f32.mrb[71].mxu1  ;;  %v3293_v49 = vmul.f32 1.442695, %v3032_v1  ;;  %v3034_v21 = vpop.f32.mrb[153].mxu0  ;;  %3753 = vmatprep.mubr.bf16.mxu1 %v10150_v50 }
 0x74e   : > { %v3295_v29 = vmul.f32 1.442695, %v3034_v21  ;;  %3754 = vmatmul.mubr.bf16.gmra.mrb[176].mxu1 %v10146_v31  ;;  %v7327_v16 = vpop.eup %7326 }
 0x74f   : > { %7338 = vpow2.f32 %v3293_v49  ;;  %v7329_v17 = vpop.eup %7328 }
 0x750   : > { %7340 = vpow2.f32 %v3295_v29  ;;  %v3038_v33 = vpop.f32.mrb[154].mxu0 }
 0x751   : > { %v7331_v52 = vpop.eup %7330  ;;  %v3297_v5 = vmul.f32 1.442695, %v3038_v33  ;;  %v3040_v44 = vpop.f32.mrb[155].mxu0 }
 0x752   : > { %v10154_v40 = vpop.f32.mrb[72].mxu1  ;;  %v7333_v57 = vpop.eup %7332  ;;  %v3299_v26 = vmul.f32 1.442695, %v3040_v44  ;;  %v10156_v53 = vpack.c.bf16 %v7331_v52, %v7327_v16  ;;  %v3852_v16 = vld [vmem:[%s10946_s8 + $0x10] sm:$0xff] }
 0x753   : > { %v3549_v1 = vpop.f32.mrb[73].mxu1  ;;  %v10160_v55 = vpack.c.bf16 %v7333_v57, %v7329_v17  ;;  %7342 = vpow2.f32 %v3297_v5  ;;  %v3850_v57 = vld [vmem:[%s10946_s8] sm:$0xff] }
 0x754   : > { %11510 = vst [vmem:[#allocation117_spill] sm:$0xff] %v10156_v53  ;;  %v10158_v50 = vpop.f32.mrb[74].mxu1  ;;  %v3044_v21 = vpop.f32.mrb[156].mxu0  ;;  %7344 = vpow2.f32 %v3299_v26  ;;  %v3851_v1 = vld [vmem:[%s10946_s8 + $0x8] sm:$0xff] }
 0x755   : > { %11511 = vst [vmem:[#allocation118_spill] sm:$0xff] %v10160_v55  ;;  %v3552_v31 = vpop.f32.mrb[75].mxu1  ;;  %v3301_v49 = vmul.f32 1.442695, %v3044_v21  ;;  %v3046_v29 = vpop.f32.mrb[157].mxu0  ;;  %3761 = vmatprep.mubr.bf16.mxu1 %v10160_v55 }
 0x756   : > { %v3303_v33 = vmul.f32 1.442695, %v3046_v29  ;;  %3762 = vmatmul.mubr.bf16.gmra.mrb[180].mxu1 %v10156_v53  ;;  %v7335_v35 = vpop.eup %7334  ;;  %v3853_v31 = vld [vmem:[%s10946_s8 + $0x18] sm:$0xff] }
 0x757   : > { %7346 = vpow2.f32 %v3301_v49  ;;  %v7337_v44 = vpop.eup %7336 }
 0x758   : > { %7348 = vpow2.f32 %v3303_v33  ;;  %v6765_v17 = vpop.f32.mrb[160].mxu0 }
 0x759   : > { %v7339_v52 = vpop.eup %7338  ;;  %v10170_v5 = vpop.f32.mrb[76].mxu1  ;;  %v4208_v53 = vmul.f32 %v6765_v17, %v3852_v16  ;;  %7350 = vrcp.f32 %v10134_v10  ;;  %v3856_v16 = vld [vmem:[%s10946_s8 + $0x30] sm:$0xff]  ;;  %v3857_v10 = vld [vmem:[%s10946_s8 + $0x38] sm:$0xff] }
 0x75a   : > { %v4079_v26 = vpop.f32.mrb[161].mxu0  ;;  %v7341_v21 = vpop.eup %7340  ;;  %v10178_v33 = vpack.c.bf16 %v7339_v52, %v7335_v35  ;;  %7352 = vrcp.f32 %v10138_v42  ;;  %v3861_v42 = vld [vmem:[%s10946_s8 + $0x58] sm:$0xff] }
 0x75b   : > { %v3557_v49 = vpop.f32.mrb[77].mxu1  ;;  %v6766_v29 = vpop.f32.mrb[162].mxu0  ;;  %v10182_v23 = vpack.c.bf16 %v7341_v21, %v7337_v44  ;;  %v4206_v30 = vmul.f32 %v4079_v26, %v3850_v57  ;;  %7354 = vrcp.f32 %v10144_v24 }
 0x75c   : > { %11512 = vst [vmem:[#allocation119_spill] sm:$0xff] %v10178_v33  ;;  %v4209_v55 = vmul.f32 %v6766_v29, %v3853_v31  ;;  %v10180_v4 = vpop.f32.mrb[78].mxu1  ;;  %v4082_v51 = vpop.f32.mrb[163].mxu0  ;;  %7356 = vrcp.f32 %v10148_v32 }
 0x75d   : > { %11513 = vst [vmem:[#allocation120_spill] sm:$0xff] %v10182_v23  ;;  %v4207_v14 = vmul.f32 %v4082_v51, %v3851_v1  ;;  %v3560_v3 = vpop.f32.mrb[79].mxu1  ;;  %3769 = vmatprep.mubr.bf16.mxu1 %v10182_v23  ;;  %v7343_v35 = vpop.eup %7342  ;;  %7358 = vrcp.f32 %v10154_v40  ;;  %v3859_v40 = vld [vmem:[%s10946_s8 + $0x48] sm:$0xff] }
 0x75e   : > { %v4239_v41 = vpack.c.bf16 %v4209_v55, %v4208_v53  ;;  %3770 = vmatmul.mubr.bf16.gmra.mrb[184].mxu1 %v10178_v33  ;;  %v7345_v52 = vpop.eup %7344  ;;  %v3855_v53 = vld [vmem:[%s10946_s8 + $0x28] sm:$0xff]  ;;  %v11514_v55 = vmov 0   ;;  %7360 = vrcp.f32 %v10158_v50  ;;  %v3864_v50 = vld [vmem:[%s10946_s8 + $0x70] sm:$0xff] }
 0x75f   : > { %v4238_v56 = vpack.c.bf16 %v4207_v14, %v4206_v30  ;;  %v3854_v30 = vld [vmem:[%s10946_s8 + $0x20] sm:$0xff]  ;;  %7362 = vrcp.f32 %v10170_v5 }
 0x760   : > { %v6769_v17 = vpop.f32.mrb[164].mxu0  ;;  %7364 = vrcp.f32 %v10180_v4 }
 0x761   : > { %4255 = vmatpush1.bf16.msra.mxu0 %v4238_v56  ;;  %v7347_v51 = vpop.eup %7346  ;;  %v3563_v3 = vpop.f32.mrb[80].mxu1  ;;  %v4212_v26 = vmul.f32 %v6769_v17, %v3856_v16 }
 0x762   : > { %v4095_v14 = vpop.f32.mrb[165].mxu0  ;;  %4256 = vmatprep.subr.bf16.mxu0 %v11514_v55  ;;  %v7349_v44 = vpop.eup %7348  ;;  %v10200_v57 = vpack.c.bf16 %v7347_v51, %v7343_v35  ;;  %7366 = vrcp.f32 %v3563_v3  ;;  %v3863_v3 = vld [vmem:[%s10946_s8 + $0x68] sm:$0xff] }
 0x763   : > { %v3565_v31 = vpop.f32.mrb[81].mxu1  ;;  %v6770_v56 = vpop.f32.mrb[166].mxu0  ;;  %v10203_v29 = vpack.c.bf16 %v7349_v44, %v7345_v52  ;;  %v4210_v33 = vmul.f32 %v4095_v14, %v3854_v30 }
 0x764   : > { %v4213_v1 = vmul.f32 %v6770_v56, %v3857_v10  ;;  %v3566_v21 = vpop.f32.mrb[82].mxu1  ;;  %v4098_v49 = vpop.f32.mrb[167].mxu0 }
 0x765   : > { %v4211_v23 = vmul.f32 %v4098_v49, %v3855_v53  ;;  %v3568_v36 = vpop.f32.mrb[83].mxu1  ;;  %4257 = vmatpush1.bf16.msra.mxu0 %v4239_v41  ;;  %3777 = vmatprep.mubr.bf16.mxu1 %v10203_v29  ;;  %v7351_v35 = vpop.eup %7350  ;;  %7368 = vrcp.f32 %v3566_v21  ;;  %v3868_v21 = vld [vmem:[%s10946_s8 + $0x90] sm:$0xff] }
 0x766   : > { %v4241_v27 = vpack.c.bf16 %v4213_v1, %v4212_v26  ;;  %4258 = vmatprep.subr.bf16.mxu0 %v11514_v55  ;;  %3778 = vmatmul.mubr.bf16.gmra.mrb[188].mxu1 %v10200_v57  ;;  %v3860_v36 = vld [vmem:[%s10946_s8 + $0x50] sm:$0xff]  ;;  %v7353_v31 = vpop.eup %7352 }
 0x767   : > { %v4240_v51 = vpack.c.bf16 %v4211_v23, %v4210_v33  ;;  %6797 = vmatprep.mubr.msk.f32.mxu1 %vm1412_vm1, %v7351_v35  ;;  %v3858_v23 = vld [vmem:[%s10946_s8 + $0x40] sm:$0xff]  ;;  %v7355_v26 = vpop.eup %7354 }
 0x768   : > { %v6773_v41 = vpop.f32.mrb[168].mxu0  ;;  %v7357_v49 = vpop.eup %7356 }
 0x769   : > { %4259 = vmatpush1.bf16.msra.mxu0 %v4240_v51  ;;  %v3571_v24 = vpop.f32.mrb[84].mxu1  ;;  %v4111_v32 = vpop.f32.mrb[169].mxu0  ;;  %v4216_v16 = vmul.f32 %v6773_v41, %v3860_v36  ;;  %v3862_v51 = vld [vmem:[%s10946_s8 + $0x60] sm:$0xff] }
 0x76a   : > { %4260 = vmatprep.subr.bf16.mxu0 %v11514_v55  ;;  %v3573_v33 = vpop.f32.mrb[85].mxu1  ;;  %v6774_v52 = vpop.f32.mrb[170].mxu0  ;;  %v4214_v14 = vmul.f32 %v4111_v32, %v3858_v23  ;;  %7370 = vrcp.f32 %v3571_v24 }
 0x76b   : > { %v4217_v17 = vmul.f32 %v6774_v52, %v3861_v42  ;;  %v3574_v10 = vpop.f32.mrb[86].mxu1  ;;  %v4114_v30 = vpop.f32.mrb[171].mxu0 }
 0x76c   : > { %v4215_v53 = vmul.f32 %v4114_v30, %v3859_v40  ;;  %v3576_v44 = vpop.f32.mrb[87].mxu1  ;;  %v7359_v36 = vpop.eup %7358  ;;  %7372 = vrcp.f32 %v3574_v10 }
 0x76d   : > { %4261 = vmatpush1.bf16.msra.mxu0 %v4241_v27  ;;  %v4243_v56 = vpack.c.bf16 %v4217_v17, %v4216_v16  ;;  %v3865_v27 = vld [vmem:[%s10946_s8 + $0x78] sm:$0xff]  ;;  %v7361_v30 = vpop.eup %7360 }
 0x76e   : > { %4262 = vmatprep.subr.bf16.mxu0 %v11514_v55  ;;  %v4242_v1 = vpack.c.bf16 %v4215_v53, %v4214_v14  ;;  %6798 = vmatmul.mubr.msk.f32.vlgmr.msra.gmra.mrb[192].mxu1 %vm1412_vm1, %v7353_v31  ;;  %v7363_v53 = vpop.eup %7362  ;;  %v3869_v31 = vld [vmem:[%s10946_s8 + $0x98] sm:$0xff] }
 0x76f   : > { %6800 = vmatprep.mubr.msk.f32.mxu1 %vm1412_vm1, %v7355_v26 }
 0x770   : > { %v6777_v5 = vpop.f32.mrb[172].mxu0 }
 0x771   : > { %4263 = vmatpush1.bf16.msra.mxu0 %v4242_v1  ;;  %v3579_v35 = vpop.f32.mrb[88].mxu1  ;;  %v4127_v4 = vpop.f32.mrb[173].mxu0  ;;  %v4220_v23 = vmul.f32 %v6777_v5, %v3864_v50  ;;  %v3866_v1 = vld [vmem:[%s10946_s8 + $0x80] sm:$0xff]  ;;  %v3867_v50 = vld [vmem:[%s10946_s8 + $0x88] sm:$0xff] }
 0x772   : > { %4264 = vmatprep.subr.bf16.mxu0 %v11514_v55  ;;  %v3581_v41 = vpop.f32.mrb[89].mxu1  ;;  %v6778_v42 = vpop.f32.mrb[174].mxu0  ;;  %6801 = vmatmul.mubr.msk.f32.gmra.mrb[194].mxu1 %vm1412_vm1, %v7357_v49  ;;  %v4218_v52 = vmul.f32 %v4127_v4, %v3862_v51  ;;  %7374 = vrcp.f32 %v3579_v35 }
 0x773   : > { %v4221_v32 = vmul.f32 %v6778_v42, %v3865_v27  ;;  %v3582_v40 = vpop.f32.mrb[90].mxu1  ;;  %v4130_v33 = vpop.f32.mrb[175].mxu0  ;;  %6803 = vmatprep.mubr.msk.f32.mxu1 %vm1412_vm1, %v7359_v36 }
 0x774   : > { %v4219_v16 = vmul.f32 %v4130_v33, %v3863_v3  ;;  %v3584_v17 = vpop.f32.mrb[91].mxu1  ;;  %7376 = vrcp.f32 %v3582_v40  ;;  %v3872_v40 = vld [vmem:[%s10946_s8 + $0xb0] sm:$0xff] }
 0x775   : > { %4265 = vmatpush1.bf16.msra.mxu0 %v4243_v56  ;;  %v4245_v14 = vpack.c.bf16 %v4221_v32, %v4220_v23  ;;  %v7365_v56 = vpop.eup %7364  ;;  %v3873_v17 = vld [vmem:[%s10946_s8 + $0xb8] sm:$0xff] }
 0x776   : > { %4266 = vmatprep.subr.bf16.mxu0 %v11514_v55  ;;  %v4244_v44 = vpack.c.bf16 %v4219_v16, %v4218_v52  ;;  %6804 = vmatmul.mubr.msk.f32.gmra.mrb[196].mxu1 %vm1412_vm1, %v7361_v30  ;;  %v7367_v5 = vpop.eup %7366 }
 0x777   : > { %6806 = vmatprep.mubr.msk.f32.mxu1 %vm1412_vm1, %v7363_v53  ;;  %v7369_v23 = vpop.eup %7368  ;;  %v3870_v53 = vld [vmem:[%s10946_s8 + $0xa0] sm:$0xff] }
 0x778   : > { %v6781_v24 = vpop.f32.mrb[176].mxu0  ;;  %v7371_v33 = vpop.eup %7370 }
 0x779   : > { %4267 = vmatpush1.bf16.msra.mxu0 %v4244_v44  ;;  %v3587_v26 = vpop.f32.mrb[92].mxu1  ;;  %v4143_v10 = vpop.f32.mrb[177].mxu0  ;;  %v4224_v35 = vmul.f32 %v6781_v24, %v3868_v21  ;;  %v3871_v21 = vld [vmem:[%s10946_s8 + $0xa8] sm:$0xff] }
 0x77a   : > { %4268 = vmatprep.subr.bf16.mxu0 %v11514_v55  ;;  %v3589_v27 = vpop.f32.mrb[93].mxu1  ;;  %v6782_v49 = vpop.f32.mrb[178].mxu0  ;;  %6807 = vmatmul.mubr.msk.f32.gmra.mrb[198].mxu1 %vm1412_vm1, %v7365_v56  ;;  %7378 = vrcp.f32 %v3587_v26  ;;  %v4222_v36 = vmul.f32 %v4143_v10, %v3866_v1 }
 0x77b   : > { %v4225_v51 = vmul.f32 %v6782_v49, %v3869_v31  ;;  %v3590_v4 = vpop.f32.mrb[94].mxu1  ;;  %v4146_v3 = vpop.f32.mrb[179].mxu0  ;;  %6809 = vmatprep.mubr.msk.f32.mxu1 %vm1412_vm1, %v7367_v5 }
 0x77c   : > { %v4223_v41 = vmul.f32 %v4146_v3, %v3867_v50  ;;  %v3592_v42 = vpop.f32.mrb[95].mxu1  ;;  %7380 = vrcp.f32 %v3590_v4  ;;  %v7373_v30 = vpop.eup %7372 }
 0x77d   : > { %4269 = vmatpush1.bf16.msra.mxu0 %v4245_v14  ;;  %v4247_v32 = vpack.c.bf16 %v4225_v51, %v4224_v35  ;;  %v7375_v24 = vpop.eup %7374  ;;  %v3877_v42 = vld [vmem:[%s10946_s8 + $0xd8] sm:$0xff] }
 0x77e   : > { %4270 = vmatprep.subr.bf16.mxu0 %v11514_v55  ;;  %v4246_v52 = vpack.c.bf16 %v4223_v41, %v4222_v36  ;;  %6810 = vmatmul.mubr.msk.f32.gmra.mrb[200].mxu1 %vm1412_vm1, %v7369_v23  ;;  %v7377_v35 = vpop.eup %7376  ;;  %v3876_v36 = vld [vmem:[%s10946_s8 + $0xd0] sm:$0xff] }
 0x77f   : > { %6812 = vmatprep.mubr.msk.f32.mxu1 %vm1412_vm1, %v7371_v33  ;;  %v3874_v33 = vld [vmem:[%s10946_s8 + $0xc0] sm:$0xff] }
 0x780   : > { %v6785_v16 = vpop.f32.mrb[180].mxu0 }
 0x781   : > { %4271 = vmatpush1.bf16.msra.mxu0 %v4246_v52  ;;  %v3595_v14 = vpop.f32.mrb[96].mxu1  ;;  %v4159_v44 = vpop.f32.mrb[181].mxu0  ;;  %v4228_v26 = vmul.f32 %v6785_v16, %v3872_v40  ;;  %v3875_v40 = vld [vmem:[%s10946_s8 + $0xc8] sm:$0xff] }
 0x782   : > { %4272 = vmatprep.subr.bf16.mxu0 %v11514_v55  ;;  %7382 = vrcp.f32 %v3595_v14  ;;  %v3597_v31 = vpop.f32.mrb[97].mxu1  ;;  %v6786_v56 = vpop.f32.mrb[182].mxu0  ;;  %6813 = vmatmul.mubr.msk.f32.gmra.mrb[202].mxu1 %vm1412_vm1, %v7373_v30  ;;  %v4226_v5 = vmul.f32 %v4159_v44, %v3870_v53 }
 0x783   : > { %v4229_v1 = vmul.f32 %v6786_v56, %v3873_v17  ;;  %v3598_v10 = vpop.f32.mrb[98].mxu1  ;;  %v4162_v50 = vpop.f32.mrb[183].mxu0  ;;  %6815 = vmatprep.mubr.msk.f32.mxu1 %vm1412_vm1, %v7375_v24 }
 0x784   : > { %7384 = vrcp.f32 %v3598_v10  ;;  %v4227_v27 = vmul.f32 %v4162_v50, %v3871_v21  ;;  %v3600_v49 = vpop.f32.mrb[99].mxu1  ;;  %v7379_v4 = vpop.eup %7378  ;;  %v3880_v50 = vld [vmem:[%s10946_s8 + $0xf0] sm:$0xff] }
 0x785   : > { %4273 = vmatpush1.bf16.msra.mxu0 %v4247_v32  ;;  %v4249_v51 = vpack.c.bf16 %v4229_v1, %v4228_v26 }
 0x786   : > { %4274 = vmatprep.subr.bf16.mxu0 %v11514_v55  ;;  %v4248_v3 = vpack.c.bf16 %v4227_v27, %v4226_v5  ;;  %6816 = vmatmul.mubr.msk.f32.gmra.mrb[204].mxu1 %vm1412_vm1, %v7377_v35  ;;  %v7381_v23 = vpop.eup %7380  ;;  %v3881_v27 = vld [vmem:[%s10946_s8 + $0xf8] sm:$0xff]  ;;  %v3878_v35 = vld [vmem:[%s10946_s8 + $0xe0] sm:$0xff] }
 0x787   : > { %6818 = vmatprep.mubr.msk.f32.mxu1 %vm1412_vm1, %v7379_v4  ;;  %v3879_v4 = vld [vmem:[%s10946_s8 + $0xe8] sm:$0xff] }
 0x788   : > { %v6789_v41 = vpop.f32.mrb[184].mxu0 }
 0x789   : > { %4275 = vmatpush1.bf16.msra.mxu0 %v4248_v3  ;;  %v3603_v32 = vpop.f32.mrb[100].mxu1  ;;  %v4175_v52 = vpop.f32.mrb[185].mxu0  ;;  %v4232_v30 = vmul.f32 %v6789_v41, %v3876_v36 }
 0x78a   : > { %4276 = vmatprep.subr.bf16.mxu0 %v11514_v55  ;;  %7386 = vrcp.f32 %v3603_v32  ;;  %v3605_v16 = vpop.f32.mrb[101].mxu1  ;;  %v6790_v17 = vpop.f32.mrb[186].mxu0  ;;  %6819 = vmatmul.mubr.msk.f32.gmra.mrb[206].mxu1 %vm1412_vm1, %v7381_v23  ;;  %v4230_v24 = vmul.f32 %v4175_v52, %v3874_v33 }
 0x78b   : > { %v4233_v14 = vmul.f32 %v6790_v17, %v3877_v42  ;;  %v3606_v53 = vpop.f32.mrb[102].mxu1  ;;  %v4178_v44 = vpop.f32.mrb[187].mxu0 }
 0x78c   : > { %v7383_v21 = vpop.eup %7382  ;;  %7388 = vrcp.f32 %v3606_v53  ;;  %v4231_v31 = vmul.f32 %v4178_v44, %v3875_v40  ;;  %v3608_v56 = vpop.f32.mrb[103].mxu1 }
 0x78d   : > { %4277 = vmatpush1.bf16.msra.mxu0 %v4249_v51  ;;  %v4251_v26 = vpack.c.bf16 %v4233_v14, %v4232_v30  ;;  %6821 = vmatprep.mubr.msk.f32.mxu1 %vm1412_vm1, %v7383_v21 }
 0x78e   : > { %4278 = vmatprep.subr.bf16.mxu0 %v11514_v55  ;;  %v7385_v1 = vpop.eup %7384  ;;  %v4250_v10 = vpack.c.bf16 %v4231_v31, %v4230_v24 }
 0x78f   : > { %6822 = vmatmul.mubr.msk.f32.gmra.mrb[208].mxu1 %vm1412_vm1, %v7385_v1 }
 0x790   : > { %v6793_v5 = vpop.f32.mrb[188].mxu0 }
 0x791   : > { %4279 = vmatpush1.bf16.msra.mxu0 %v4250_v10  ;;  %v3611_v49 = vpop.f32.mrb[104].mxu1  ;;  %v4191_v51 = vpop.f32.mrb[189].mxu0  ;;  %v4236_v41 = vmul.f32 %v6793_v5, %v3880_v50 }
 0x792   : > { %4280 = vmatprep.subr.bf16.mxu0 %v11514_v55  ;;  %7390 = vrcp.f32 %v3611_v49  ;;  %v3613_v3 = vpop.f32.mrb[105].mxu1  ;;  %v6794_v36 = vpop.f32.mrb[190].mxu0  ;;  %v4234_v52 = vmul.f32 %v4191_v51, %v3878_v35 }
 0x793   : > { %v4237_v42 = vmul.f32 %v6794_v36, %v3881_v27  ;;  %v3614_v23 = vpop.f32.mrb[106].mxu1  ;;  %v4194_v32 = vpop.f32.mrb[191].mxu0 }
 0x794   : > { %v7387_v33 = vpop.eup %7386  ;;  %7392 = vrcp.f32 %v3614_v23  ;;  %v4235_v40 = vmul.f32 %v4194_v32, %v3879_v4  ;;  %v3616_v16 = vpop.f32.mrb[107].mxu1 }
 0x795   : > { %4281 = vmatpush1.bf16.msra.mxu0 %v4251_v26  ;;  %v4253_v17 = vpack.c.bf16 %v4237_v42, %v4236_v41  ;;  %6824 = vmatprep.mubr.msk.f32.mxu1 %vm1412_vm1, %v7387_v33 }
 0x796   : > { %4282 = vmatprep.subr.bf16.mxu0 %v11514_v55  ;;  %v7389_v30 = vpop.eup %7388  ;;  %v4252_v14 = vpack.c.bf16 %v4235_v40, %v4234_v52 }
 0x797   : > { %6825 = vmatmul.mubr.msk.f32.gmra.mrb[210].mxu1 %vm1412_vm1, %v7389_v30 }
 0x799   : > { %4283 = vmatpush1.bf16.msra.mxu0 %v4252_v14  ;;  %v3619_v53 = vpop.f32.mrb[108].mxu1 }
 0x79a   : > { %4284 = vmatprep.subr.bf16.mxu0 %v11514_v55  ;;  %7394 = vrcp.f32 %v3619_v53  ;;  %v3621_v44 = vpop.f32.mrb[109].mxu1 }
 0x79b   : > { %v3622_v21 = vpop.f32.mrb[110].mxu1 }
 0x79c   : > { %v7391_v24 = vpop.eup %7390  ;;  %7396 = vrcp.f32 %v3622_v21  ;;  %v3624_v31 = vpop.f32.mrb[111].mxu1 }
 0x79d   : > { %4285 = vmatpush1.bf16.msra.mxu0 %v4253_v17  ;;  %6827 = vmatprep.mubr.msk.f32.mxu1 %vm1412_vm1, %v7391_v24 }
 0x79e   : > { %v7393_v56 = vpop.eup %7392 }
 0x79f   : > { %6828 = vmatmul.mubr.msk.f32.gmra.mrb[212].mxu1 %vm1412_vm1, %v7393_v56 }
 0x7a0   : > { %4287 = vmatmul.mubr.bf16.vlgmr.msra.gmra.mrb[192].mxu0 %v9877_v13 }
 0x7a1   : > { %4294 = vmatprep.mubr.bf16.mxu0 %v9895_v11  ;;  %v3627_v26 = vpop.f32.mrb[112].mxu1 }
 0x7a2   : > { %7398 = vrcp.f32 %v3627_v26  ;;  %v3629_v1 = vpop.f32.mrb[113].mxu1 }
 0x7a3   : > { %v3630_v55 = vpop.f32.mrb[114].mxu1 }
 0x7a4   : > { %v7395_v10 = vpop.eup %7394  ;;  %7400 = vrcp.f32 %v3630_v55  ;;  %v3632_v50 = vpop.f32.mrb[115].mxu1 }
 0x7a5   : > { %6830 = vmatprep.mubr.msk.f32.mxu1 %vm1412_vm1, %v7395_v10 }
 0x7a6   : > { %v7397_v5 = vpop.eup %7396 }
 0x7a7   : > { %6831 = vmatmul.mubr.msk.f32.gmra.mrb[214].mxu1 %vm1412_vm1, %v7397_v5 }
 0x7a8   : > { %4295 = vmatmul.mubr.bf16.gmra.mrb[196].mxu0 %v9893_v15 }
 0x7a9   : > { %4302 = vmatprep.mubr.bf16.mxu0 %v9911_v18  ;;  %v3635_v13 = vpop.f32.mrb[116].mxu1 }
 0x7aa   : > { %7402 = vrcp.f32 %v3635_v13  ;;  %v3637_v27 = vpop.f32.mrb[117].mxu1 }
 0x7ab   : > { %v3638_v11 = vpop.f32.mrb[118].mxu1 }
 0x7ac   : > { %v7399_v49 = vpop.eup %7398  ;;  %7404 = vrcp.f32 %v3638_v11  ;;  %v3640_v35 = vpop.f32.mrb[119].mxu1 }
 0x7ad   : > { %6833 = vmatprep.mubr.msk.f32.mxu1 %vm1412_vm1, %v7399_v49 }
 0x7ae   : > { %v7401_v51 = vpop.eup %7400 }
 0x7af   : > { %6834 = vmatmul.mubr.msk.f32.gmra.mrb[216].mxu1 %vm1412_vm1, %v7401_v51 }
 0x7b0   : > { %4303 = vmatmul.mubr.bf16.gmra.mrb[200].mxu0 %v9909_v54 }
 0x7b1   : > { %4310 = vmatprep.mubr.bf16.mxu0 %v9934_v37  ;;  %v3643_v15 = vpop.f32.mrb[120].mxu1 }
 0x7b2   : > { %7406 = vrcp.f32 %v3643_v15  ;;  %v3645_v4 = vpop.f32.mrb[121].mxu1 }
 0x7b3   : > { %v3646_v18 = vpop.f32.mrb[122].mxu1 }
 0x7b4   : > { %v7403_v3 = vpop.eup %7402  ;;  %7408 = vrcp.f32 %v3646_v18  ;;  %v3648_v36 = vpop.f32.mrb[123].mxu1 }
 0x7b5   : > { %6836 = vmatprep.mubr.msk.f32.mxu1 %vm1412_vm1, %v7403_v3 }
 0x7b6   : > { %v7405_v41 = vpop.eup %7404 }
 0x7b7   : > { %6837 = vmatmul.mubr.msk.f32.gmra.mrb[218].mxu1 %vm1412_vm1, %v7405_v41 }
 0x7b8   : > { %4311 = vmatmul.mubr.bf16.gmra.mrb[204].mxu0 %v9929_v12 }
 0x7b9   : > { %4318 = vmatprep.mubr.bf16.mxu0 %v9948_v63  ;;  %v3651_v54 = vpop.f32.mrb[124].mxu1 }
 0x7ba   : > { %7410 = vrcp.f32 %v3651_v54  ;;  %v3653_v42 = vpop.f32.mrb[125].mxu1 }
 0x7bb   : > { %v3654_v37 = vpop.f32.mrb[126].mxu1 }
 0x7bc   : > { %v7407_v23 = vpop.eup %7406  ;;  %7412 = vrcp.f32 %v3654_v37  ;;  %v3656_v32 = vpop.f32.mrb[127].mxu1 }
 0x7bd   : > { %6839 = vmatprep.mubr.msk.f32.mxu1 %vm1412_vm1, %v7407_v23 }
 0x7be   : > { %v7409_v33 = vpop.eup %7408 }
 0x7bf   : > { %6840 = vmatmul.mubr.msk.f32.gmra.mrb[220].mxu1 %vm1412_vm1, %v7409_v33 }
 0x7c0   : > { %4319 = vmatmul.mubr.bf16.gmra.mrb[208].mxu0 %v9943_v47 }
 0x7c1   : > { %4326 = vmatprep.mubr.bf16.mxu0 %v9962_v60  ;;  %v3659_v12 = vpop.f32.mrb[128].mxu1 }
 0x7c2   : > { %7414 = vrcp.f32 %v3659_v12  ;;  %v3661_v52 = vpop.f32.mrb[129].mxu1 }
 0x7c3   : > { %v3662_v63 = vpop.f32.mrb[130].mxu1 }
 0x7c4   : > { %v7411_v40 = vpop.eup %7410  ;;  %7416 = vrcp.f32 %v3662_v63  ;;  %v3664_v16 = vpop.f32.mrb[131].mxu1 }
 0x7c5   : > { %6842 = vmatprep.mubr.msk.f32.mxu1 %vm1412_vm1, %v7411_v40 }
 0x7c6   : > { %v7413_v17 = vpop.eup %7412 }
 0x7c7   : > { %6843 = vmatmul.mubr.msk.f32.gmra.mrb[222].mxu1 %vm1412_vm1, %v7413_v17 }
 0x7c8   : > { %4327 = vmatmul.mubr.bf16.gmra.mrb[212].mxu0 %v9957_v58 }
 0x7c9   : > { %4334 = vmatprep.mubr.bf16.mxu0 %v9976_v43  ;;  %v3667_v47 = vpop.f32.mrb[132].mxu1 }
 0x7ca   : > { %7418 = vrcp.f32 %v3667_v47  ;;  %v3669_v30 = vpop.f32.mrb[133].mxu1 }
 0x7cb   : > { %v3670_v60 = vpop.f32.mrb[134].mxu1 }
 0x7cc   : > { %v7415_v14 = vpop.eup %7414  ;;  %7420 = vrcp.f32 %v3670_v60  ;;  %v3672_v53 = vpop.f32.mrb[135].mxu1 }
 0x7cd   : > { %6845 = vmatprep.mubr.msk.f32.mxu1 %vm1412_vm1, %v7415_v14 }
 0x7ce   : > { %v7417_v44 = vpop.eup %7416 }
 0x7cf   : > { %6846 = vmatmul.mubr.msk.f32.gmra.mrb[224].mxu1 %vm1412_vm1, %v7417_v44 }
 0x7d0   : > { %4335 = vmatmul.mubr.bf16.gmra.mrb[216].mxu0 %v9971_v8 }
 0x7d1   : > { %4342 = vmatprep.mubr.bf16.mxu0 %v9993_v59  ;;  %v3675_v58 = vpop.f32.mrb[136].mxu1 }
 0x7d2   : > { %7422 = vrcp.f32 %v3675_v58  ;;  %v3677_v21 = vpop.f32.mrb[137].mxu1 }
 0x7d3   : > { %v3678_v43 = vpop.f32.mrb[138].mxu1 }
 0x7d4   : > { %v7419_v24 = vpop.eup %7418  ;;  %7424 = vrcp.f32 %v3678_v43  ;;  %v3680_v31 = vpop.f32.mrb[139].mxu1  ;;  %v11515_v43 = vld [vmem:[#allocation88_spill] sm:$0xff] }
 0x7d5   : > { %6848 = vmatprep.mubr.msk.f32.mxu1 %vm1412_vm1, %v7419_v24  ;;  %v11516_v24 = vld [vmem:[#allocation91_spill] sm:$0xff] }
 0x7d6   : > { %v7421_v56 = vpop.eup %7420 }
 0x7d7   : > { %6849 = vmatmul.mubr.msk.f32.gmra.mrb[226].mxu1 %vm1412_vm1, %v7421_v56 }
 0x7d8   : > { %4343 = vmatmul.mubr.bf16.gmra.mrb[220].mxu0 %v9988_v6 }
 0x7d9   : > { %4350 = vmatprep.mubr.bf16.mxu0 %v10007_v34  ;;  %v3683_v8 = vpop.f32.mrb[140].mxu1 }
 0x7da   : > { %7426 = vrcp.f32 %v3683_v8  ;;  %v3685_v26 = vpop.f32.mrb[141].mxu1 }
 0x7db   : > { %v3686_v59 = vpop.f32.mrb[142].mxu1 }
 0x7dc   : > { %v7423_v1 = vpop.eup %7422  ;;  %7428 = vrcp.f32 %v3686_v59  ;;  %v3688_v55 = vpop.f32.mrb[143].mxu1  ;;  %v11517_v59 = vld [vmem:[#allocation86_spill] sm:$0xff] }
 0x7dd   : > { %6851 = vmatprep.mubr.msk.f32.mxu1 %vm1412_vm1, %v7423_v1  ;;  %v11518_v1 = vld [vmem:[#allocation97_spill] sm:$0xff] }
 0x7de   : > { %v7425_v10 = vpop.eup %7424 }
 0x7df   : > { %6852 = vmatmul.mubr.msk.f32.gmra.mrb[228].mxu1 %vm1412_vm1, %v7425_v10 }
 0x7e0   : > { %4351 = vmatmul.mubr.bf16.gmra.mrb[224].mxu0 %v10002_v9 }
 0x7e1   : > { %4358 = vmatprep.mubr.bf16.mxu0 %v10021_v45  ;;  %v3691_v6 = vpop.f32.mrb[144].mxu1 }
 0x7e2   : > { %7430 = vrcp.f32 %v3691_v6  ;;  %v3693_v50 = vpop.f32.mrb[145].mxu1 }
 0x7e3   : > { %v3694_v34 = vpop.f32.mrb[146].mxu1 }
 0x7e4   : > { %v7427_v5 = vpop.eup %7426  ;;  %7432 = vrcp.f32 %v3694_v34  ;;  %v3696_v13 = vpop.f32.mrb[147].mxu1 }
 0x7e5   : > { %6854 = vmatprep.mubr.msk.f32.mxu1 %vm1412_vm1, %v7427_v5  ;;  %v11519_v13 = vld [vmem:[#allocation90_spill] sm:$0xff] }
 0x7e6   : > { %v7429_v27 = vpop.eup %7428 }
 0x7e7   : > { %6855 = vmatmul.mubr.msk.f32.gmra.mrb[230].mxu1 %vm1412_vm1, %v7429_v27  ;;  %v11520_v27 = vld [vmem:[#allocation102_spill] sm:$0xff] }
 0x7e8   : > { %4359 = vmatmul.mubr.bf16.gmra.mrb[228].mxu0 %v10016_v28 }
 0x7e9   : > { %4366 = vmatprep.mubr.bf16.mxu0 %v10032_v7  ;;  %v3699_v9 = vpop.f32.mrb[148].mxu1 }
 0x7ea   : > { %7434 = vrcp.f32 %v3699_v9  ;;  %v3701_v11 = vpop.f32.mrb[149].mxu1 }
 0x7eb   : > { %v3702_v45 = vpop.f32.mrb[150].mxu1 }
 0x7ec   : > { %v7431_v49 = vpop.eup %7430  ;;  %7436 = vrcp.f32 %v3702_v45  ;;  %v3704_v35 = vpop.f32.mrb[151].mxu1 }
 0x7ed   : > { %6857 = vmatprep.mubr.msk.f32.mxu1 %vm1412_vm1, %v7431_v49 }
 0x7ee   : > { %v7433_v51 = vpop.eup %7432 }
 0x7ef   : > { %6858 = vmatmul.mubr.msk.f32.gmra.mrb[232].mxu1 %vm1412_vm1, %v7433_v51 }
 0x7f0   : > { %4367 = vmatmul.mubr.bf16.gmra.mrb[232].mxu0 %v10030_v38  ;;  %v7076_v38 = vld [vmem:[%s10940_s2 + $0x20] sm:$0xff]  }
 0x7f1   : > { %4374 = vmatprep.mubr.bf16.mxu0 %v10040_v39  ;;  %v3707_v28 = vpop.f32.mrb[152].mxu1  ;;  %6893 = vmatprep.subr.bf16.mxu1 %v7076_v38 }
 0x7f2   : > { %7438 = vrcp.f32 %v3707_v28  ;;  %v3709_v15 = vpop.f32.mrb[153].mxu1  ;;  %6894 = vmatpush3.bf16.msra.mxu1 %v7076_v38  ;;  %v11521_v28 = vld [vmem:[#allocation96_spill] sm:$0xff] }
 0x7f3   : > { %v3710_v7 = vpop.f32.mrb[154].mxu1  ;;  %v11522_v15 = vld [vmem:[#allocation94_spill] sm:$0xff] }
 0x7f4   : > { %v7435_v4 = vpop.eup %7434  ;;  %7440 = vrcp.f32 %v3710_v7  ;;  %v3712_v18 = vpop.f32.mrb[155].mxu1 }
 0x7f5   : > { %6860 = vmatprep.mubr.msk.f32.mxu1 %vm1412_vm1, %v7435_v4 }
 0x7f6   : > { %v7437_v3 = vpop.eup %7436 }
 0x7f7   : > { %6861 = vmatmul.mubr.msk.f32.gmra.mrb[234].mxu1 %vm1412_vm1, %v7437_v3 }
 0x7f8   : > { %4375 = vmatmul.mubr.bf16.gmra.mrb[236].mxu0 %v10038_v2 }
 0x7f9   : > { %4382 = vmatprep.mubr.bf16.mxu0 %v10046_v20  ;;  %v3715_v39 = vpop.f32.mrb[156].mxu1  ;;  %v7077_v20 = vld [vmem:[%s10940_s2 + $0x28] sm:$0xff]  }
 0x7fa   : > { %7442 = vrcp.f32 %v3715_v39  ;;  %v3717_v36 = vpop.f32.mrb[157].mxu1  ;;  %6895 = vmatprep.subr.bf16.mxu1 %v7077_v20 }
 0x7fb   : > { %v3718_v41 = vpop.f32.mrb[158].mxu1  ;;  %6896 = vmatpush3.bf16.msra.mxu1 %v7077_v20  ;;  %v11523_v36 = vld [vmem:[#allocation95_spill] sm:$0xff] }
 0x7fc   : > { %v7439_v54 = vpop.eup %7438  ;;  %7444 = vrcp.f32 %v3718_v41  ;;  %v3720_v42 = vpop.f32.mrb[159].mxu1  ;;  %v11524_v41 = vld [vmem:[#allocation98_spill] sm:$0xff] }
 0x7fd   : > { %6863 = vmatprep.mubr.msk.f32.mxu1 %vm1412_vm1, %v7439_v54 }
 0x7fe   : > { %v7441_v2 = vpop.eup %7440 }
 0x7ff   : > { %6864 = vmatmul.mubr.msk.f32.gmra.mrb[236].mxu1 %vm1412_vm1, %v7441_v2 }
 0x800   : > { %4383 = vmatmul.mubr.bf16.gmra.mrb[240].mxu0 %v10044_v19 }
 0x801   : > { %4390 = vmatprep.mubr.bf16.mxu0 %v10052_v0  ;;  %v3723_v37 = vpop.f32.mrb[160].mxu1 }
 0x802   : > { %7446 = vrcp.f32 %v3723_v37  ;;  %v3725_v23 = vpop.f32.mrb[161].mxu1 }
 0x803   : > { %v3726_v32 = vpop.f32.mrb[162].mxu1 }
 0x804   : > { %v7443_v33 = vpop.eup %7442  ;;  %7448 = vrcp.f32 %v3726_v32  ;;  %v3728_v12 = vpop.f32.mrb[163].mxu1  ;;  %v11525_v32 = vld [vmem:[#allocation99_spill] sm:$0xff] }
 0x805   : > { %6866 = vmatprep.mubr.msk.f32.mxu1 %vm1412_vm1, %v7443_v33  ;;  %v11526_v33 = vld [vmem:[#allocation104_spill] sm:$0xff] }
 0x806   : > { %v7445_v19 = vpop.eup %7444 }
 0x807   : > { %6867 = vmatmul.mubr.msk.f32.gmra.mrb[238].mxu1 %vm1412_vm1, %v7445_v19 }
 0x808   : > { %4391 = vmatmul.mubr.bf16.gmra.mrb[244].mxu0 %v10050_v25 }
 0x809   : > { %4398 = vmatprep.mubr.bf16.mxu0 %v10058_v62  ;;  %v3731_v52 = vpop.f32.mrb[164].mxu1 }
 0x80a   : > { %7450 = vrcp.f32 %v3731_v52  ;;  %v3733_v0 = vpop.f32.mrb[165].mxu1 }
 0x80b   : > { %v3734_v63 = vpop.f32.mrb[166].mxu1 }
 0x80c   : > { %v7447_v40 = vpop.eup %7446  ;;  %7452 = vrcp.f32 %v3734_v63  ;;  %v3736_v16 = vpop.f32.mrb[167].mxu1  ;;  %v11527_v63 = vld [vmem:[#allocation103_spill] sm:$0xff] }
 0x80d   : > { %6869 = vmatprep.mubr.msk.f32.mxu1 %vm1412_vm1, %v7447_v40  ;;  %v11528_v40 = vld [vmem:[#allocation106_spill] sm:$0xff] }
 0x80e   : > { %v7449_v17 = vpop.eup %7448 }
 0x80f   : > { %6870 = vmatmul.mubr.msk.f32.gmra.mrb[240].mxu1 %vm1412_vm1, %v7449_v17 }
 0x810   : > { %4399 = vmatmul.mubr.bf16.gmra.mrb[248].mxu0 %v10056_v46 }
 0x811   : > { %4406 = vmatprep.mubr.bf16.mxu0 %v10064_v48  ;;  %v3739_v25 = vpop.f32.mrb[168].mxu1 }
 0x812   : > { %7454 = vrcp.f32 %v3739_v25  ;;  %v3741_v47 = vpop.f32.mrb[169].mxu1 }
 0x813   : > { %v3742_v62 = vpop.f32.mrb[170].mxu1 }
 0x814   : > { %v7451_v30 = vpop.eup %7450  ;;  %7456 = vrcp.f32 %v3742_v62  ;;  %v3744_v60 = vpop.f32.mrb[171].mxu1  ;;  %v11529_v62 = vld [vmem:[#allocation105_spill] sm:$0xff] }
 0x815   : > { %6872 = vmatprep.mubr.msk.f32.mxu1 %vm1412_vm1, %v7451_v30  ;;  %v11530_v30 = vld [vmem:[#allocation108_spill] sm:$0xff] }
 0x816   : > { %v7453_v14 = vpop.eup %7452 }
 0x817   : > { %6873 = vmatmul.mubr.msk.f32.gmra.mrb[242].mxu1 %vm1412_vm1, %v7453_v14 }
 0x818   : > { %4407 = vmatmul.mubr.bf16.gmra.mrb[252].mxu0 %v10062_v22 }
 0x819   : > { %4414 = vmatprep.mubr.bf16.mxu0 %v10070_v61  ;;  %v3747_v46 = vpop.f32.mrb[172].mxu1 }
 0x81a   : > { %7458 = vrcp.f32 %v3747_v46  ;;  %v3749_v53 = vpop.f32.mrb[173].mxu1 }
 0x81b   : > { %v3750_v48 = vpop.f32.mrb[174].mxu1 }
 0x81c   : > { %v7455_v44 = vpop.eup %7454  ;;  %7460 = vrcp.f32 %v3750_v48  ;;  %v3752_v58 = vpop.f32.mrb[175].mxu1  ;;  %v11531_v48 = vld [vmem:[#allocation107_spill] sm:$0xff] }
 0x81d   : > { %6875 = vmatprep.mubr.msk.f32.mxu1 %vm1412_vm1, %v7455_v44  ;;  %v11532_v44 = vld [vmem:[#allocation110_spill] sm:$0xff] }
 0x81e   : > { %v7457_v21 = vpop.eup %7456 }
 0x81f   : > { %6876 = vmatmul.mubr.msk.f32.gmra.mrb[244].mxu1 %vm1412_vm1, %v7457_v21 }
 0x820   : > { %4415 = vmatmul.mubr.bf16.gmra.mrb[0].mxu0 %v11515_v43  ;;  %v11533_v43 = vld [vmem:[#allocation109_spill] sm:$0xff] }
 0x821   : > { %4422 = vmatprep.mubr.bf16.mxu0 %v11516_v24  ;;  %v3755_v22 = vpop.f32.mrb[176].mxu1  ;;  %v11534_v24 = vld [vmem:[#allocation112_spill] sm:$0xff] }
 0x822   : > { %7462 = vrcp.f32 %v3755_v22  ;;  %v3757_v31 = vpop.f32.mrb[177].mxu1 }
 0x823   : > { %v3758_v61 = vpop.f32.mrb[178].mxu1 }
 0x824   : > { %v7459_v56 = vpop.eup %7458  ;;  %7464 = vrcp.f32 %v3758_v61  ;;  %v3760_v8 = vpop.f32.mrb[179].mxu1  ;;  %v11535_v61 = vld [vmem:[#allocation111_spill] sm:$0xff] }
 0x825   : > { %6878 = vmatprep.mubr.msk.f32.mxu1 %vm1412_vm1, %v7459_v56  ;;  %v11536_v56 = vld [vmem:[#allocation114_spill] sm:$0xff] }
 0x826   : > { %v7461_v26 = vpop.eup %7460 }
 0x827   : > { %6879 = vmatmul.mubr.msk.f32.gmra.mrb[246].mxu1 %vm1412_vm1, %v7461_v26 }
 0x828   : > { %4423 = vmatmul.mubr.bf16.gmra.mrb[4].mxu0 %v11517_v59 }
 0x829   : > { %4430 = vmatprep.mubr.bf16.mxu0 %v11518_v1  ;;  %v3763_v55 = vpop.f32.mrb[180].mxu1 }
 0x82a   : > { %7466 = vrcp.f32 %v3763_v55  ;;  %v3765_v10 = vpop.f32.mrb[181].mxu1 }
 0x82b   : > { %v3766_v6 = vpop.f32.mrb[182].mxu1 }
 0x82c   : > { %v7463_v50 = vpop.eup %7462  ;;  %7468 = vrcp.f32 %v3766_v6  ;;  %v3768_v34 = vpop.f32.mrb[183].mxu1 }
 0x82d   : > { %6881 = vmatprep.mubr.msk.f32.mxu1 %vm1412_vm1, %v7463_v50 }
 0x82e   : > { %v7465_v5 = vpop.eup %7464 }
 0x82f   : > { %6882 = vmatmul.mubr.msk.f32.gmra.mrb[248].mxu1 %vm1412_vm1, %v7465_v5  ;;  %v11537_v5 = vld [vmem:[#allocation113_spill] sm:$0xff] }
 0x830   : > { %4431 = vmatmul.mubr.bf16.gmra.mrb[8].mxu0 %v11519_v13  ;;  %v11538_v13 = vld [vmem:[#allocation116_spill] sm:$0xff] }
 0x831   : > { %4438 = vmatprep.mubr.bf16.mxu0 %v11520_v27  ;;  %v3771_v9 = vpop.f32.mrb[184].mxu1 }
 0x832   : > { %7470 = vrcp.f32 %v3771_v9  ;;  %v3773_v11 = vpop.f32.mrb[185].mxu1 }
 0x833   : > { %v3774_v45 = vpop.f32.mrb[186].mxu1 }
 0x834   : > { %v7467_v49 = vpop.eup %7466  ;;  %7472 = vrcp.f32 %v3774_v45  ;;  %v3776_v35 = vpop.f32.mrb[187].mxu1 }
 0x835   : > { %6884 = vmatprep.mubr.msk.f32.mxu1 %vm1412_vm1, %v7467_v49 }
 0x836   : > { %v7469_v51 = vpop.eup %7468 }
 0x837   : > { %6885 = vmatmul.mubr.msk.f32.gmra.mrb[250].mxu1 %vm1412_vm1, %v7469_v51 }
 0x838   : > { %4439 = vmatmul.mubr.bf16.gmra.mrb[12].mxu0 %v11521_v28 }
 0x839   : > { %4446 = vmatprep.mubr.bf16.mxu0 %v11522_v15  ;;  %v3779_v7 = vpop.f32.mrb[188].mxu1 }
 0x83a   : > { %7474 = vrcp.f32 %v3779_v7  ;;  %v3781_v4 = vpop.f32.mrb[189].mxu1  ;;  %v11539_v7 = vld [vmem:[#allocation115_spill] sm:$0xff] }
 0x83b   : > { %v3782_v18 = vpop.f32.mrb[190].mxu1  ;;  %v11540_v4 = vld [vmem:[#allocation118_spill] sm:$0xff] }
 0x83c   : > { %v7471_v3 = vpop.eup %7470  ;;  %7476 = vrcp.f32 %v3782_v18  ;;  %v3784_v38 = vpop.f32.mrb[191].mxu1 }
 0x83d   : > { %6887 = vmatprep.mubr.msk.f32.mxu1 %vm1412_vm1, %v7471_v3 }
 0x83e   : > { %v7473_v39 = vpop.eup %7472 }
 0x83f   : > { %6888 = vmatmul.mubr.msk.f32.gmra.mrb[252].mxu1 %vm1412_vm1, %v7473_v39 }
 0x840   : > { %4447 = vmatmul.mubr.bf16.gmra.mrb[16].mxu0 %v11523_v36 }
 0x841   : > { %4454 = vmatprep.mubr.bf16.mxu0 %v11524_v41  ;;  %v6799_v54 = vpop.f32.mrb[192].mxu1 }
 0x842   : > { %v4801_v42 = vpop.f32.mrb[193].mxu1 }
 0x844   : > { %v7475_v2 = vpop.eup %7474 }
 0x845   : > { %v6802_v20 = vpop.f32.mrb[194].mxu1  ;;  %6890 = vmatprep.mubr.msk.f32.mxu1 %vm1412_vm1, %v7475_v2 }
 0x846   : > { %v7477_v37 = vpop.eup %7476  ;;  %v4811_v23 = vpop.f32.mrb[195].mxu1 }
 0x847   : > { %6891 = vmatmul.mubr.msk.f32.gmra.mrb[254].mxu1 %vm1412_vm1, %v7477_v37  ;;  %v11542_v37 = vld [vmem:[#allocation120_spill] sm:$0xff] }
 0x848   : > { %4455 = vmatmul.mubr.bf16.gmra.mrb[20].mxu0 %v11525_v32 }
 0x849   : > { %4462 = vmatprep.mubr.bf16.mxu0 %v11526_v33  ;;  %v6805_v12 = vpop.f32.mrb[196].mxu1 }
 0x84a   : > { %v4821_v19 = vpop.f32.mrb[197].mxu1 }
 0x84d   : > { %v10413_v52 = vpop.f32.mrb[198].mxu1 }
 0x84e   : > { %v4831_v0 = vpop.f32.mrb[199].mxu1 }
 0x850   : > { %4463 = vmatmul.mubr.bf16.gmra.mrb[24].mxu0 %v11527_v63 }
 0x851   : > { %4470 = vmatprep.mubr.bf16.mxu0 %v11528_v40  ;;  %v10417_v16 = vpop.f32.mrb[200].mxu1 }
 0x852   : > { %v10419_v17 = vpop.f32.mrb[201].mxu1 }
 0x855   : > { %v10421_v25 = vpop.f32.mrb[202].mxu1 }
 0x856   : > { %v10423_v47 = vpop.f32.mrb[203].mxu1 }
 0x858   : > { %4471 = vmatmul.mubr.bf16.gmra.mrb[28].mxu0 %v11529_v62 }
 0x859   : > { %4478 = vmatprep.mubr.bf16.mxu0 %v11530_v30  ;;  %v10427_v60 = vpop.f32.mrb[204].mxu1 }
 0x85a   : > { %v10429_v14 = vpop.f32.mrb[205].mxu1 }
 0x85d   : > { %v10431_v46 = vpop.f32.mrb[206].mxu1 }
 0x85e   : > { %v10433_v53 = vpop.f32.mrb[207].mxu1 }
 0x860   : > { %4479 = vmatmul.mubr.bf16.gmra.mrb[32].mxu0 %v11531_v48  ;;  %v11543_v48 = vld [vmem:[#allocation119_spill] sm:$0xff] }
 0x861   : > { %4486 = vmatprep.mubr.bf16.mxu0 %v11532_v44 }
 0x862   : > { %v10437_v58 = vpop.f32.mrb[208].mxu1 }
 0x863   : > { %v10439_v21 = vpop.f32.mrb[209].mxu1 }
 0x868   : > { %4487 = vmatmul.mubr.bf16.gmra.mrb[36].mxu0 %v11533_v43 }
 0x869   : > { %4494 = vmatprep.mubr.bf16.mxu0 %v11534_v24 }
 0x86a   : > { %v10443_v22 = vpop.f32.mrb[210].mxu1 }
 0x86b   : > { %v10445_v31 = vpop.f32.mrb[211].mxu1 }
 0x870   : > { %4495 = vmatmul.mubr.bf16.gmra.mrb[40].mxu0 %v11535_v61 }
 0x871   : > { %4502 = vmatprep.mubr.bf16.mxu0 %v11536_v56 }
 0x872   : > { %v10449_v26 = vpop.f32.mrb[212].mxu1 }
 0x873   : > { %v4288_v8 = vpop.f32.mrb[192].mxu0  ;;  %v10451_v55 = vpop.f32.mrb[213].mxu1 }
 0x874   : > { %v5120_v59 = vmul.f32 %v4801_v42, %v4288_v8  ;;  %v4290_v1 = vpop.f32.mrb[193].mxu0 }
 0x875   : > { %v4291_v10 = vpop.f32.mrb[194].mxu0 }
 0x876   : > { %v5121_v6 = vmul.f32 %v6799_v54, %v4291_v10  ;;  %v4293_v50 = vpop.f32.mrb[195].mxu0 }
 0x878   : > { %v5184_v34 = vpack.c.bf16 %v5121_v6, %v5120_v59  ;;  %4503 = vmatmul.mubr.bf16.gmra.mrb[44].mxu0 %v11537_v5 }
 0x879   : > { %4510 = vmatprep.mubr.bf16.mxu0 %v11538_v13 }
 0x87a   : > { %6897 = vmatprep.mubr.msk.bf16.mxu1 %vm606_vm0, %v5184_v34  ;;  %v10456_v9 = vpop.f32.mrb[214].mxu1 }
 0x87b   : > { %v4296_v27 = vpop.f32.mrb[196].mxu0  ;;  %v10458_v49 = vpop.f32.mrb[215].mxu1 }
 0x87c   : > { %v5122_v11 = vmul.f32 %v4811_v23, %v4296_v27  ;;  %v4298_v45 = vpop.f32.mrb[197].mxu0 }
 0x87d   : > { %v4299_v35 = vpop.f32.mrb[198].mxu0 }
 0x87e   : > { %v5123_v51 = vmul.f32 %v6802_v20, %v4299_v35  ;;  %v4301_v28 = vpop.f32.mrb[199].mxu0  ;;  %v11541_v20 = vld [vmem:[#allocation117_spill] sm:$0xff] }
 0x880   : > { %v5185_v15 = vpack.c.bf16 %v5123_v51, %v5122_v11  ;;  %4511 = vmatmul.mubr.bf16.gmra.mrb[48].mxu0 %v11539_v7 }
 0x881   : > { %4518 = vmatprep.mubr.bf16.mxu0 %v11540_v4 }
 0x882   : > { %6898 = vmatmul.mubr.msk.bf16.vlgmr.msra.gmra.mrb[0].mxu1 %vm606_vm0, %v5185_v15  ;;  %v10463_v3 = vpop.f32.mrb[216].mxu1 }
 0x883   : > { %v4304_v18 = vpop.f32.mrb[200].mxu0  ;;  %v10465_v36 = vpop.f32.mrb[217].mxu1 }
 0x884   : > { %v5124_v38 = vmul.f32 %v4821_v19, %v4304_v18  ;;  %v4306_v39 = vpop.f32.mrb[201].mxu0 }
 0x885   : > { %v4307_v41 = vpop.f32.mrb[202].mxu0 }
 0x886   : > { %v5125_v54 = vmul.f32 %v6805_v12, %v4307_v41  ;;  %v4309_v42 = vpop.f32.mrb[203].mxu0 }
 0x888   : > { %v5186_v2 = vpack.c.bf16 %v5125_v54, %v5124_v38  ;;  %4519 = vmatmul.mubr.bf16.gmra.mrb[52].mxu0 %v11541_v20 }
 0x889   : > { %4526 = vmatprep.mubr.bf16.mxu0 %v11542_v37 }
 0x88a   : > { %6901 = vmatprep.mubr.msk.bf16.mxu1 %vm606_vm0, %v5186_v2  ;;  %v10470_v32 = vpop.f32.mrb[218].mxu1 }
 0x88b   : > { %v4312_v23 = vpop.f32.mrb[204].mxu0  ;;  %v10472_v40 = vpop.f32.mrb[219].mxu1 }
 0x88c   : > { %v5126_v33 = vmul.f32 %v4831_v0, %v4312_v23  ;;  %v4314_v63 = vpop.f32.mrb[205].mxu0 }
 0x88d   : > { %v4315_v19 = vpop.f32.mrb[206].mxu0 }
 0x88e   : > { %v5127_v62 = vmul.f32 %v10413_v52, %v4315_v19  ;;  %v4317_v30 = vpop.f32.mrb[207].mxu0 }
 0x890   : > { %v5187_v12 = vpack.c.bf16 %v5127_v62, %v5126_v33  ;;  %4527 = vmatmul.mubr.bf16.gmra.mrb[56].mxu0 %v11543_v48 }
 0x891   : > { %4534 = vmatprep.mubr.bf16.mxu0 %v10203_v29 }
 0x892   : > { %6902 = vmatmul.mubr.msk.bf16.gmra.mrb[4].mxu1 %vm606_vm0, %v5187_v12  ;;  %v10478_v43 = vpop.f32.mrb[220].mxu1 }
 0x893   : > { %v4320_v44 = vpop.f32.mrb[208].mxu0  ;;  %v10481_v61 = vpop.f32.mrb[221].mxu1 }
 0x894   : > { %v5128_v24 = vmul.f32 %v10419_v17, %v4320_v44  ;;  %v4322_v0 = vpop.f32.mrb[209].mxu0 }
 0x895   : > { %v4323_v56 = vpop.f32.mrb[210].mxu0 }
 0x896   : > { %v5129_v8 = vmul.f32 %v10417_v16, %v4323_v56  ;;  %v4325_v52 = vpop.f32.mrb[211].mxu0 }
 0x898   : > { %v5188_v59 = vpack.c.bf16 %v5129_v8, %v5128_v24  ;;  %4535 = vmatmul.mubr.bf16.gmra.mrb[60].mxu0 %v10200_v57 }
 0x89a   : > { %6905 = vmatprep.mubr.msk.bf16.mxu1 %vm606_vm0, %v5188_v59  ;;  %v10486_v1 = vpop.f32.mrb[222].mxu1 }
 0x89b   : > { %v4328_v29 = vpop.f32.mrb[212].mxu0  ;;  %v10489_v50 = vpop.f32.mrb[223].mxu1 }
 0x89c   : > { %v5130_v10 = vmul.f32 %v10423_v47, %v4328_v29  ;;  %v4330_v6 = vpop.f32.mrb[213].mxu0 }
 0x89d   : > { %v4331_v17 = vpop.f32.mrb[214].mxu0 }
 0x89e   : > { %v5131_v34 = vmul.f32 %v10421_v25, %v4331_v17  ;;  %v4333_v5 = vpop.f32.mrb[215].mxu0 }
 0x8a0   : > { %v5189_v13 = vpack.c.bf16 %v5131_v34, %v5130_v10 }
 0x8a2   : > { %6906 = vmatmul.mubr.msk.bf16.gmra.mrb[8].mxu1 %vm606_vm0, %v5189_v13  ;;  %v10493_v27 = vpop.f32.mrb[224].mxu1 }
 0x8a3   : > { %v4336_v16 = vpop.f32.mrb[216].mxu0  ;;  %v10496_v45 = vpop.f32.mrb[225].mxu1 }
 0x8a4   : > { %v5132_v57 = vmul.f32 %v10429_v14, %v4336_v16  ;;  %v4338_v11 = vpop.f32.mrb[217].mxu0 }
 0x8a5   : > { %v4339_v35 = vpop.f32.mrb[218].mxu0 }
 0x8a6   : > { %v5133_v47 = vmul.f32 %v10427_v60, %v4339_v35  ;;  %v4341_v51 = vpop.f32.mrb[219].mxu0 }
 0x8a8   : > { %v5190_v28 = vpack.c.bf16 %v5133_v47, %v5132_v57 }
 0x8aa   : > { %6909 = vmatprep.mubr.msk.bf16.mxu1 %vm606_vm0, %v5190_v28  ;;  %v10500_v15 = vpop.f32.mrb[226].mxu1 }
 0x8ab   : > { %v4344_v25 = vpop.f32.mrb[220].mxu0  ;;  %v10503_v18 = vpop.f32.mrb[227].mxu1 }
 0x8ac   : > { %v5134_v7 = vmul.f32 %v10433_v53, %v4344_v25  ;;  %v4346_v4 = vpop.f32.mrb[221].mxu0 }
 0x8ad   : > { %v4347_v38 = vpop.f32.mrb[222].mxu0 }
 0x8ae   : > { %v5135_v14 = vmul.f32 %v10431_v46, %v4347_v38  ;;  %v4349_v39 = vpop.f32.mrb[223].mxu0 }
 0x8b0   : > { %v5191_v41 = vpack.c.bf16 %v5135_v14, %v5134_v7 }
 0x8b2   : > { %6910 = vmatmul.mubr.msk.bf16.gmra.mrb[12].mxu1 %vm606_vm0, %v5191_v41  ;;  %v10507_v54 = vpop.f32.mrb[228].mxu1 }
 0x8b3   : > { %v4352_v60 = vpop.f32.mrb[224].mxu0  ;;  %v10510_v20 = vpop.f32.mrb[229].mxu1 }
 0x8b4   : > { %v5136_v42 = vmul.f32 %v10439_v21, %v4352_v60  ;;  %v4354_v2 = vpop.f32.mrb[225].mxu0 }
 0x8b5   : > { %v4355_v37 = vpop.f32.mrb[226].mxu0 }
 0x8b6   : > { %v5137_v53 = vmul.f32 %v10437_v58, %v4355_v37  ;;  %v4357_v23 = vpop.f32.mrb[227].mxu0 }
 0x8b8   : > { %v5192_v33 = vpack.c.bf16 %v5137_v53, %v5136_v42 }
 0x8ba   : > { %6913 = vmatprep.mubr.msk.bf16.mxu1 %vm606_vm0, %v5192_v33  ;;  %v10514_v63 = vpop.f32.mrb[230].mxu1 }
 0x8bb   : > { %v4360_v46 = vpop.f32.mrb[228].mxu0  ;;  %v10517_v30 = vpop.f32.mrb[231].mxu1 }
 0x8bc   : > { %v5138_v19 = vmul.f32 %v10445_v31, %v4360_v46  ;;  %v4362_v62 = vpop.f32.mrb[229].mxu0 }
 0x8bd   : > { %v4363_v12 = vpop.f32.mrb[230].mxu0 }
 0x8be   : > { %v5139_v21 = vmul.f32 %v10443_v22, %v4363_v12  ;;  %v4365_v48 = vpop.f32.mrb[231].mxu0 }
 0x8c0   : > { %v5193_v44 = vpack.c.bf16 %v5139_v21, %v5138_v19 }
 0x8c2   : > { %6914 = vmatmul.mubr.msk.bf16.gmra.mrb[16].mxu1 %vm606_vm0, %v5193_v44  ;;  %v10521_v24 = vpop.f32.mrb[232].mxu1 }
 0x8c3   : > { %v4368_v58 = vpop.f32.mrb[232].mxu0  ;;  %v10524_v8 = vpop.f32.mrb[233].mxu1 }
 0x8c4   : > { %v5140_v0 = vmul.f32 %v10451_v55, %v4368_v58  ;;  %v4370_v56 = vpop.f32.mrb[233].mxu0 }
 0x8c5   : > { %v4371_v52 = vpop.f32.mrb[234].mxu0 }
 0x8c6   : > { %v5141_v31 = vmul.f32 %v10449_v26, %v4371_v52  ;;  %v4373_v59 = vpop.f32.mrb[235].mxu0 }
 0x8c8   : > { %v5194_v29 = vpack.c.bf16 %v5141_v31, %v5140_v0 }
 0x8ca   : > { %6917 = vmatprep.mubr.msk.bf16.mxu1 %vm606_vm0, %v5194_v29  ;;  %v10528_v10 = vpop.f32.mrb[234].mxu1 }
 0x8cb   : > { %v4376_v22 = vpop.f32.mrb[236].mxu0  ;;  %v10531_v34 = vpop.f32.mrb[235].mxu1 }
 0x8cc   : > { %v5142_v6 = vmul.f32 %v10458_v49, %v4376_v22  ;;  %v4378_v17 = vpop.f32.mrb[237].mxu0 }
 0x8cd   : > { %v4379_v5 = vpop.f32.mrb[238].mxu0 }
 0x8ce   : > { %v5143_v55 = vmul.f32 %v10456_v9, %v4379_v5  ;;  %v4381_v13 = vpop.f32.mrb[239].mxu0 }
 0x8d0   : > { %v5195_v16 = vpack.c.bf16 %v5143_v55, %v5142_v6 }
 0x8d2   : > { %6918 = vmatmul.mubr.msk.bf16.gmra.mrb[20].mxu1 %vm606_vm0, %v5195_v16  ;;  %v10535_v57 = vpop.f32.mrb[236].mxu1 }
 0x8d3   : > { %v4384_v26 = vpop.f32.mrb[240].mxu0  ;;  %v10538_v47 = vpop.f32.mrb[237].mxu1 }
 0x8d4   : > { %v5144_v11 = vmul.f32 %v10465_v36, %v4384_v26  ;;  %v4386_v35 = vpop.f32.mrb[241].mxu0 }
 0x8d5   : > { %v4387_v51 = vpop.f32.mrb[242].mxu0 }
 0x8d6   : > { %v5145_v49 = vmul.f32 %v10463_v3, %v4387_v51  ;;  %v4389_v28 = vpop.f32.mrb[243].mxu0 }
 0x8d8   : > { %v5196_v25 = vpack.c.bf16 %v5145_v49, %v5144_v11 }
 0x8da   : > { %6921 = vmatprep.mubr.msk.bf16.mxu1 %vm606_vm0, %v5196_v25  ;;  %v10542_v7 = vpop.f32.mrb[238].mxu1 }
 0x8db   : > { %v4392_v9 = vpop.f32.mrb[244].mxu0  ;;  %v10545_v14 = vpop.f32.mrb[239].mxu1 }
 0x8dc   : > { %v5146_v4 = vmul.f32 %v10472_v40, %v4392_v9  ;;  %v4394_v38 = vpop.f32.mrb[245].mxu0 }
 0x8dd   : > { %v4395_v39 = vpop.f32.mrb[246].mxu0 }
 0x8de   : > { %v5147_v36 = vmul.f32 %v10470_v32, %v4395_v39  ;;  %v4397_v41 = vpop.f32.mrb[247].mxu0 }
 0x8e0   : > { %v5197_v60 = vpack.c.bf16 %v5147_v36, %v5146_v4 }
 0x8e2   : > { %6922 = vmatmul.mubr.msk.bf16.gmra.mrb[24].mxu1 %vm606_vm0, %v5197_v60  ;;  %v10549_v42 = vpop.f32.mrb[240].mxu1 }
 0x8e3   : > { %v4400_v3 = vpop.f32.mrb[248].mxu0  ;;  %v10552_v53 = vpop.f32.mrb[241].mxu1 }
 0x8e4   : > { %v5148_v2 = vmul.f32 %v10481_v61, %v4400_v3  ;;  %v4402_v37 = vpop.f32.mrb[249].mxu0 }
 0x8e5   : > { %v4403_v23 = vpop.f32.mrb[250].mxu0 }
 0x8e6   : > { %v5149_v40 = vmul.f32 %v10478_v43, %v4403_v23  ;;  %v4405_v33 = vpop.f32.mrb[251].mxu0 }
 0x8e8   : > { %v5198_v46 = vpack.c.bf16 %v5149_v40, %v5148_v2 }
 0x8ea   : > { %6925 = vmatprep.mubr.msk.bf16.mxu1 %vm606_vm0, %v5198_v46  ;;  %v10556_v19 = vpop.f32.mrb[242].mxu1 }
 0x8eb   : > { %v4408_v32 = vpop.f32.mrb[252].mxu0  ;;  %v10559_v21 = vpop.f32.mrb[243].mxu1 }
 0x8ec   : > { %v5150_v62 = vmul.f32 %v10489_v50, %v4408_v32  ;;  %v4410_v12 = vpop.f32.mrb[253].mxu0 }
 0x8ed   : > { %v4411_v48 = vpop.f32.mrb[254].mxu0 }
 0x8ee   : > { %v5151_v61 = vmul.f32 %v10486_v1, %v4411_v48  ;;  %v4413_v44 = vpop.f32.mrb[255].mxu0 }
 0x8f0   : > { %v5199_v58 = vpack.c.bf16 %v5151_v61, %v5150_v62 }
 0x8f2   : > { %6926 = vmatmul.mubr.msk.bf16.gmra.mrb[28].mxu1 %vm606_vm0, %v5199_v58  ;;  %v10563_v0 = vpop.f32.mrb[244].mxu1 }
 0x8f3   : > { %v4416_v43 = vpop.f32.mrb[0].mxu0  ;;  %v10566_v31 = vpop.f32.mrb[245].mxu1 }
 0x8f4   : > { %v5152_v56 = vmul.f32 %v10496_v45, %v4416_v43  ;;  %v4418_v52 = vpop.f32.mrb[1].mxu0 }
 0x8f5   : > { %v4419_v59 = vpop.f32.mrb[2].mxu0 }
 0x8f6   : > { %v5153_v50 = vmul.f32 %v10493_v27, %v4419_v59  ;;  %v4421_v29 = vpop.f32.mrb[3].mxu0 }
 0x8f8   : > { %v5200_v22 = vpack.c.bf16 %v5153_v50, %v5152_v56 }
 0x8fa   : > { %6929 = vmatprep.mubr.msk.bf16.mxu1 %vm606_vm0, %v5200_v22  ;;  %v10570_v6 = vpop.f32.mrb[246].mxu1 }
 0x8fb   : > { %v4424_v1 = vpop.f32.mrb[4].mxu0  ;;  %v10573_v55 = vpop.f32.mrb[247].mxu1 }
 0x8fc   : > { %v5154_v17 = vmul.f32 %v10503_v18, %v4424_v1  ;;  %v4426_v5 = vpop.f32.mrb[5].mxu0 }
 0x8fd   : > { %v4427_v13 = vpop.f32.mrb[6].mxu0 }
 0x8fe   : > { %v5155_v45 = vmul.f32 %v10500_v15, %v4427_v13  ;;  %v4429_v16 = vpop.f32.mrb[7].mxu0 }
 0x900   : > { %v5201_v26 = vpack.c.bf16 %v5155_v45, %v5154_v17 }
 0x902   : > { %6930 = vmatmul.mubr.msk.bf16.gmra.mrb[32].mxu1 %vm606_vm0, %v5201_v26  ;;  %v10577_v11 = vpop.f32.mrb[248].mxu1 }
 0x903   : > { %v4432_v27 = vpop.f32.mrb[8].mxu0  ;;  %v10580_v49 = vpop.f32.mrb[249].mxu1 }
 0x904   : > { %v5156_v35 = vmul.f32 %v10510_v20, %v4432_v27  ;;  %v4434_v51 = vpop.f32.mrb[9].mxu0 }
 0x905   : > { %v4435_v28 = vpop.f32.mrb[10].mxu0 }
 0x906   : > { %v5157_v18 = vmul.f32 %v10507_v54, %v4435_v28  ;;  %v4437_v25 = vpop.f32.mrb[11].mxu0 }
 0x908   : > { %v5202_v9 = vpack.c.bf16 %v5157_v18, %v5156_v35 }
 0x90a   : > { %6933 = vmatprep.mubr.msk.bf16.mxu1 %vm606_vm0, %v5202_v9  ;;  %v10584_v4 = vpop.f32.mrb[250].mxu1 }
 0x90b   : > { %v4440_v15 = vpop.f32.mrb[12].mxu0  ;;  %v10587_v36 = vpop.f32.mrb[251].mxu1 }
 0x90c   : > { %v5158_v38 = vmul.f32 %v10517_v30, %v4440_v15  ;;  %v4442_v39 = vpop.f32.mrb[13].mxu0 }
 0x90d   : > { %v4443_v41 = vpop.f32.mrb[14].mxu0 }
 0x90e   : > { %v5159_v20 = vmul.f32 %v10514_v63, %v4443_v41  ;;  %v4445_v60 = vpop.f32.mrb[15].mxu0 }
 0x910   : > { %v5203_v3 = vpack.c.bf16 %v5159_v20, %v5158_v38 }
 0x912   : > { %6934 = vmatmul.mubr.msk.bf16.gmra.mrb[36].mxu1 %vm606_vm0, %v5203_v3  ;;  %v10591_v2 = vpop.f32.mrb[252].mxu1 }
 0x913   : > { %v4448_v54 = vpop.f32.mrb[16].mxu0  ;;  %v10594_v40 = vpop.f32.mrb[253].mxu1 }
 0x914   : > { %v5160_v37 = vmul.f32 %v10524_v8, %v4448_v54  ;;  %v4450_v23 = vpop.f32.mrb[17].mxu0 }
 0x915   : > { %v4451_v33 = vpop.f32.mrb[18].mxu0 }
 0x916   : > { %v5161_v30 = vmul.f32 %v10521_v24, %v4451_v33  ;;  %v4453_v46 = vpop.f32.mrb[19].mxu0 }
 0x918   : > { %v5204_v32 = vpack.c.bf16 %v5161_v30, %v5160_v37 }
 0x91a   : > { %6937 = vmatprep.mubr.msk.bf16.mxu1 %vm606_vm0, %v5204_v32  ;;  %v10598_v62 = vpop.f32.mrb[254].mxu1 }
 0x91b   : > { %v4456_v63 = vpop.f32.mrb[20].mxu0  ;;  %v10601_v61 = vpop.f32.mrb[255].mxu1 }
 0x91c   : > { %v5162_v12 = vmul.f32 %v10531_v34, %v4456_v63  ;;  %v4458_v48 = vpop.f32.mrb[21].mxu0 }
 0x91d   : > { %v4459_v44 = vpop.f32.mrb[22].mxu0 }
 0x91e   : > { %v5163_v8 = vmul.f32 %v10528_v10, %v4459_v44  ;;  %v4461_v58 = vpop.f32.mrb[23].mxu0 }
 0x920   : > { %v5205_v43 = vpack.c.bf16 %v5163_v8, %v5162_v12 }
 0x922   : > { %6938 = vmatmul.mubr.msk.bf16.gmra.mrb[40].mxu1 %vm606_vm0, %v5205_v43 }
 0x923   : > { %v4464_v24 = vpop.f32.mrb[24].mxu0 }
 0x924   : > { %v5164_v56 = vmul.f32 %v10538_v47, %v4464_v24  ;;  %v4466_v52 = vpop.f32.mrb[25].mxu0 }
 0x925   : > { %v4467_v59 = vpop.f32.mrb[26].mxu0 }
 0x926   : > { %v5165_v50 = vmul.f32 %v10535_v57, %v4467_v59  ;;  %v4469_v29 = vpop.f32.mrb[27].mxu0 }
 0x928   : > { %v5206_v22 = vpack.c.bf16 %v5165_v50, %v5164_v56 }
 0x92a   : > { %6941 = vmatprep.mubr.msk.bf16.mxu1 %vm606_vm0, %v5206_v22 }
 0x92b   : > { %v4472_v34 = vpop.f32.mrb[28].mxu0 }
 0x92c   : > { %v5166_v1 = vmul.f32 %v10545_v14, %v4472_v34  ;;  %v4474_v17 = vpop.f32.mrb[29].mxu0 }
 0x92d   : > { %v4475_v10 = vpop.f32.mrb[30].mxu0 }
 0x92e   : > { %v5167_v5 = vmul.f32 %v10542_v7, %v4475_v10  ;;  %v4477_v13 = vpop.f32.mrb[31].mxu0 }
 0x930   : > { %v5207_v45 = vpack.c.bf16 %v5167_v5, %v5166_v1 }
 0x932   : > { %6942 = vmatmul.mubr.msk.bf16.gmra.mrb[44].mxu1 %vm606_vm0, %v5207_v45 }
 0x933   : > { %v4480_v47 = vpop.f32.mrb[32].mxu0 }
 0x934   : > { %v5168_v16 = vmul.f32 %v10552_v53, %v4480_v47  ;;  %v4482_v26 = vpop.f32.mrb[33].mxu0 }
 0x935   : > { %v4483_v57 = vpop.f32.mrb[34].mxu0 }
 0x936   : > { %v5169_v27 = vmul.f32 %v10549_v42, %v4483_v57  ;;  %v4485_v35 = vpop.f32.mrb[35].mxu0 }
 0x938   : > { %v5208_v51 = vpack.c.bf16 %v5169_v27, %v5168_v16 }
 0x93a   : > { %6945 = vmatprep.mubr.msk.bf16.mxu1 %vm606_vm0, %v5208_v51 }
 0x93b   : > { %v4488_v14 = vpop.f32.mrb[36].mxu0 }
 0x93c   : > { %v5170_v28 = vmul.f32 %v10559_v21, %v4488_v14  ;;  %v4490_v18 = vpop.f32.mrb[37].mxu0 }
 0x93d   : > { %v4491_v7 = vpop.f32.mrb[38].mxu0 }
 0x93e   : > { %v5171_v25 = vmul.f32 %v10556_v19, %v4491_v7  ;;  %v4493_v9 = vpop.f32.mrb[39].mxu0 }
 0x940   : > { %v5209_v15 = vpack.c.bf16 %v5171_v25, %v5170_v28 }
 0x942   : > { %6946 = vmatmul.mubr.msk.bf16.gmra.mrb[48].mxu1 %vm606_vm0, %v5209_v15 }
 0x943   : > { %v4496_v53 = vpop.f32.mrb[40].mxu0 }
 0x944   : > { %v5172_v38 = vmul.f32 %v10566_v31, %v4496_v53  ;;  %v4498_v39 = vpop.f32.mrb[41].mxu0 }
 0x945   : > { %v4499_v42 = vpop.f32.mrb[42].mxu0 }
 0x946   : > { %v5173_v41 = vmul.f32 %v10563_v0, %v4499_v42  ;;  %v4501_v20 = vpop.f32.mrb[43].mxu0  ;;  %v10626_v0 = vld [vmem:[%s10946_s8 + $0x10b] ss:$0 sm:$0xff] }
 0x948   : > { %v5210_v60 = vpack.c.bf16 %v5173_v41, %v5172_v38 }
 0x94a   : > { %6949 = vmatprep.mubr.msk.bf16.mxu1 %vm606_vm0, %v5210_v60 }
 0x94b   : > { %v4504_v21 = vpop.f32.mrb[44].mxu0 }
 0x94c   : > { %v5174_v3 = vmul.f32 %v10573_v55, %v4504_v21  ;;  %v4506_v54 = vpop.f32.mrb[45].mxu0 }
 0x94d   : > { %v4507_v19 = vpop.f32.mrb[46].mxu0 }
 0x94e   : > { %v5175_v37 = vmul.f32 %v10570_v6, %v4507_v19  ;;  %v4509_v23 = vpop.f32.mrb[47].mxu0 }
 0x950   : > { %v5211_v33 = vpack.c.bf16 %v5175_v37, %v5174_v3 }
 0x952   : > { %6950 = vmatmul.mubr.msk.bf16.gmra.mrb[52].mxu1 %vm606_vm0, %v5211_v33 }
 0x953   : > { %v4512_v31 = vpop.f32.mrb[48].mxu0 }
 0x954   : > { %v5176_v30 = vmul.f32 %v10580_v49, %v4512_v31  ;;  %v4514_v46 = vpop.f32.mrb[49].mxu0 }
 0x955   : > { %v4515_v32 = vpop.f32.mrb[50].mxu0  ;;  %v6899_v63 = vpop.f32.mrb[0].mxu1 }
 0x956   : > { %v5177_v55 = vmul.f32 %v10577_v11, %v4515_v32  ;;  %v5376_v12 = vadd.f32 %v6899_v63, %v10626_v0  ;;  %v4517_v6 = vpop.f32.mrb[51].mxu0  ;;  %v5367_v48 = vpop.f32.mrb[1].mxu1 }
 0x957   : > { %v5368_v44 = vadd.f32 %v10626_v0, %v5367_v48  ;;  %v6900_v8 = vpop.f32.mrb[2].mxu1 }
 0x958   : > { %v5212_v58 = vpack.c.bf16 %v5177_v55, %v5176_v30  ;;  %5624 = vst.msk [vmem:[#allocation2 + $0x10] sm:$0xff] %vm606_vm0, %v5376_v12  ;;  %v5379_v43 = vadd.f32 %v6900_v8, %v10626_v0  ;;  %v5370_v24 = vpop.f32.mrb[3].mxu1 }
 0x959   : > { %5622 = vst.msk [vmem:[#allocation2] sm:$0xff] %vm606_vm0, %v5368_v44  ;;  %v5371_v49 = vadd.f32 %v10626_v0, %v5370_v24 }
 0x95a   : > { %5625 = vst.msk [vmem:[#allocation2 + $0x18] sm:$0xff] %vm606_vm0, %v5379_v43  ;;  %6953 = vmatprep.mubr.msk.bf16.mxu1 %vm606_vm0, %v5212_v58 }
 0x95b   : > { %5623 = vst.msk [vmem:[#allocation2 + $0x8] sm:$0xff] %vm606_vm0, %v5371_v49  ;;  %v4520_v11 = vpop.f32.mrb[52].mxu0 }
 0x95c   : > { %v5178_v56 = vmul.f32 %v10587_v36, %v4520_v11  ;;  %v4522_v52 = vpop.f32.mrb[53].mxu0 }
 0x95d   : > { %v4523_v59 = vpop.f32.mrb[54].mxu0 }
 0x95e   : > { %v5179_v50 = vmul.f32 %v10584_v4, %v4523_v59  ;;  %v4525_v29 = vpop.f32.mrb[55].mxu0 }
 0x960   : > { %v5213_v22 = vpack.c.bf16 %v5179_v50, %v5178_v56 }
 0x962   : > { %6954 = vmatmul.mubr.msk.bf16.gmra.mrb[56].mxu1 %vm606_vm0, %v5213_v22  ;;  %v5718_v34 = vld [vmem:[#allocation2 + $0x1] ss:$4 sm:$0xff]  ;;  %v5750_v16 = vld [vmem:[#allocation2 + $0x2] ss:$4 sm:$0xff]  ;;  %v5782_v51 = vld [vmem:[#allocation2 + $0x3] ss:$4 sm:$0xff] }
 0x963   : > { %v4528_v1 = vpop.f32.mrb[56].mxu0  ;;  %5829 = vrot.lane.b32.xlu1 %v5718_v34, %s7546_s14 }
 0x964   : > { %v5180_v17 = vmul.f32 %v10594_v40, %v4528_v1  ;;  %v4530_v10 = vpop.f32.mrb[57].mxu0 }
 0x965   : > { %v4531_v5 = vpop.f32.mrb[58].mxu0  ;;  %v6903_v13 = vpop.f32.mrb[4].mxu1 }
 0x966   : > { %v5181_v36 = vmul.f32 %v10591_v2, %v4531_v5  ;;  %v5392_v45 = vadd.f32 %v6903_v13, %v10626_v0  ;;  %v4533_v47 = vpop.f32.mrb[59].mxu0  ;;  %v5383_v4 = vpop.f32.mrb[5].mxu1 }
 0x967   : > { %v5384_v26 = vadd.f32 %v10626_v0, %v5383_v4  ;;  %v6904_v57 = vpop.f32.mrb[6].mxu1  ;;  %5893 = vrot.lane.b32.xlu1 %v5750_v16, %s7547_s16 }
 0x968   : > { %v5214_v27 = vpack.c.bf16 %v5181_v36, %v5180_v17  ;;  %5628 = vst.msk [vmem:[#allocation2 + $0x30] sm:$0xff] %vm606_vm0, %v5392_v45  ;;  %v5395_v40 = vadd.f32 %v6904_v57, %v10626_v0  ;;  %v5386_v35 = vpop.f32.mrb[7].mxu1 }
 0x969   : > { %5626 = vst.msk [vmem:[#allocation2 + $0x20] sm:$0xff] %vm606_vm0, %v5384_v26  ;;  %v5387_v2 = vadd.f32 %v10626_v0, %v5386_v35 }
 0x96a   : > { %5629 = vst.msk [vmem:[#allocation2 + $0x38] sm:$0xff] %vm606_vm0, %v5395_v40  ;;  %6957 = vmatprep.mubr.msk.bf16.mxu1 %vm606_vm0, %v5214_v27 }
 0x96b   : > { %5627 = vst.msk [vmem:[#allocation2 + $0x28] sm:$0xff] %vm606_vm0, %v5387_v2  ;;  %v4536_v14 = vpop.f32.mrb[60].mxu0  ;;  %5957 = vrot.lane.b32.xlu1 %v5782_v51, %s7548_s21 }
 0x96c   : > { %v5182_v28 = vmul.f32 %v10601_v61, %v4536_v14  ;;  %v4538_v18 = vpop.f32.mrb[61].mxu0 }
 0x96d   : > { %v4539_v7 = vpop.f32.mrb[62].mxu0 }
 0x96e   : > { %v5183_v25 = vmul.f32 %v10598_v62, %v4539_v7  ;;  %v4541_v9 = vpop.f32.mrb[63].mxu0 }
 0x970   : > { %v5215_v15 = vpack.c.bf16 %v5183_v25, %v5182_v28 }
 0x972   : > { %6958 = vmatmul.mubr.msk.bf16.gmra.mrb[60].mxu1 %vm606_vm0, %v5215_v15  ;;  %v5720_v53 = vld [vmem:[#allocation2 + $0x21] ss:$4 sm:$0xff]  ;;  %v5752_v41 = vld [vmem:[#allocation2 + $0x22] ss:$4 sm:$0xff]  ;;  %v5784_v3 = vld [vmem:[#allocation2 + $0x23] ss:$4 sm:$0xff] }
 0x973   : > { %5831 = vrot.lane.b32.xlu0 %v5720_v53, %s7546_s14 }
 0x975   : > { %v6907_v38 = vpop.f32.mrb[8].mxu1 }
 0x976   : > { %v5408_v39 = vadd.f32 %v6907_v38, %v10626_v0  ;;  %v5399_v42 = vpop.f32.mrb[9].mxu1 }
 0x977   : > { %v5400_v20 = vadd.f32 %v10626_v0, %v5399_v42  ;;  %v6908_v60 = vpop.f32.mrb[10].mxu1  ;;  %5895 = vrot.lane.b32.xlu0 %v5752_v41, %s7547_s16 }
 0x978   : > { %5632 = vst.msk [vmem:[#allocation2 + $0x50] sm:$0xff] %vm606_vm0, %v5408_v39  ;;  %v5411_v62 = vadd.f32 %v6908_v60, %v10626_v0  ;;  %v5402_v61 = vpop.f32.mrb[11].mxu1 }
 0x979   : > { %5630 = vst.msk [vmem:[#allocation2 + $0x40] sm:$0xff] %vm606_vm0, %v5400_v20  ;;  %v5403_v21 = vadd.f32 %v10626_v0, %v5402_v61 }
 0x97a   : > { %5633 = vst.msk [vmem:[#allocation2 + $0x58] sm:$0xff] %vm606_vm0, %v5411_v62 }
 0x97b   : > { %5631 = vst.msk [vmem:[#allocation2 + $0x48] sm:$0xff] %vm606_vm0, %v5403_v21  ;;  %5959 = vrot.lane.b32.xlu0 %v5784_v3, %s7548_s21 }
 0x982   : > { %v5722_v54 = vld [vmem:[#allocation2 + $0x41] ss:$4 sm:$0xff]  ;;  %v5754_v33 = vld [vmem:[#allocation2 + $0x42] ss:$4 sm:$0xff]  ;;  %v5786_v55 = vld [vmem:[#allocation2 + $0x43] ss:$4 sm:$0xff] }
 0x983   : > { %5833 = vrot.lane.b32.xlu1 %v5722_v54, %s7546_s14 }
 0x985   : > { %v6911_v19 = vpop.f32.mrb[12].mxu1 }
 0x986   : > { %v5424_v37 = vadd.f32 %v6911_v19, %v10626_v0  ;;  %v5415_v23 = vpop.f32.mrb[13].mxu1 }
 0x987   : > { %v5416_v31 = vadd.f32 %v10626_v0, %v5415_v23  ;;  %v6912_v30 = vpop.f32.mrb[14].mxu1  ;;  %5897 = vrot.lane.b32.xlu1 %v5754_v33, %s7547_s16 }
 0x988   : > { %5636 = vst.msk [vmem:[#allocation2 + $0x70] sm:$0xff] %vm606_vm0, %v5424_v37  ;;  %v5427_v46 = vadd.f32 %v6912_v30, %v10626_v0  ;;  %v5418_v32 = vpop.f32.mrb[15].mxu1 }
 0x989   : > { %5634 = vst.msk [vmem:[#allocation2 + $0x60] sm:$0xff] %vm606_vm0, %v5416_v31  ;;  %v5419_v63 = vadd.f32 %v10626_v0, %v5418_v32  ;;  %v5686_v31 = vld [vmem:[#allocation2] ss:$4 sm:$0xff] }
 0x98a   : > { %5637 = vst.msk [vmem:[#allocation2 + $0x78] sm:$0xff] %vm606_vm0, %v5427_v46 }
 0x98b   : > { %5635 = vst.msk [vmem:[#allocation2 + $0x68] sm:$0xff] %vm606_vm0, %v5419_v63  ;;  %5961 = vrot.lane.b32.xlu1 %v5786_v55, %s7548_s21 }
 0x992   : > { %v5724_v12 = vld [vmem:[#allocation2 + $0x61] ss:$4 sm:$0xff]  ;;  %v5756_v8 = vld [vmem:[#allocation2 + $0x62] ss:$4 sm:$0xff]  ;;  %v5788_v56 = vld [vmem:[#allocation2 + $0x63] ss:$4 sm:$0xff] }
 0x993   : > { %5835 = vrot.lane.b32.xlu0 %v5724_v12, %s7546_s14 }
 0x995   : > { %v6915_v6 = vpop.f32.mrb[16].mxu1 }
 0x996   : > { %v5440_v48 = vadd.f32 %v6915_v6, %v10626_v0  ;;  %v5431_v44 = vpop.f32.mrb[17].mxu1 }
 0x997   : > { %v5432_v58 = vadd.f32 %v10626_v0, %v5431_v44  ;;  %v6916_v43 = vpop.f32.mrb[18].mxu1  ;;  %5899 = vrot.lane.b32.xlu0 %v5756_v8, %s7547_s16 }
 0x998   : > { %5640 = vst.msk [vmem:[#allocation2 + $0x90] sm:$0xff] %vm606_vm0, %v5440_v48  ;;  %v5443_v24 = vadd.f32 %v6916_v43, %v10626_v0  ;;  %v5434_v49 = vpop.f32.mrb[19].mxu1 }
 0x999   : > { %5638 = vst.msk [vmem:[#allocation2 + $0x80] sm:$0xff] %vm606_vm0, %v5432_v58  ;;  %v5435_v11 = vadd.f32 %v10626_v0, %v5434_v49 }
 0x99a   : > { %5641 = vst.msk [vmem:[#allocation2 + $0x98] sm:$0xff] %vm606_vm0, %v5443_v24 }
 0x99b   : > { %5639 = vst.msk [vmem:[#allocation2 + $0x88] sm:$0xff] %vm606_vm0, %v5435_v11  ;;  %5963 = vrot.lane.b32.xlu0 %v5788_v56, %s7548_s21 }
 0x9a2   : > { %v5726_v52 = vld [vmem:[#allocation2 + $0x81] ss:$4 sm:$0xff]  ;;  %v5758_v22 = vld [vmem:[#allocation2 + $0x82] ss:$4 sm:$0xff]  ;;  %v5790_v13 = vld [vmem:[#allocation2 + $0x83] ss:$4 sm:$0xff] }
 0x9a3   : > { %5837 = vrot.lane.b32.xlu1 %v5726_v52, %s7546_s14 }
 0x9a5   : > { %v6919_v59 = vpop.f32.mrb[20].mxu1 }
 0x9a6   : > { %v5456_v50 = vadd.f32 %v6919_v59, %v10626_v0  ;;  %v5447_v29 = vpop.f32.mrb[21].mxu1  ;;  %v5688_v59 = vld [vmem:[#allocation2 + $0x20] ss:$4 sm:$0xff] }
 0x9a7   : > { %v5448_v34 = vadd.f32 %v10626_v0, %v5447_v29  ;;  %v6920_v1 = vpop.f32.mrb[22].mxu1  ;;  %5901 = vrot.lane.b32.xlu1 %v5758_v22, %s7547_s16 }
 0x9a8   : > { %5644 = vst.msk [vmem:[#allocation2 + $0xb0] sm:$0xff] %vm606_vm0, %v5456_v50  ;;  %v5459_v17 = vadd.f32 %v6920_v1, %v10626_v0  ;;  %v5450_v10 = vpop.f32.mrb[23].mxu1 }
 0x9a9   : > { %5642 = vst.msk [vmem:[#allocation2 + $0xa0] sm:$0xff] %vm606_vm0, %v5448_v34  ;;  %v5451_v5 = vadd.f32 %v10626_v0, %v5450_v10 }
 0x9aa   : > { %5645 = vst.msk [vmem:[#allocation2 + $0xb8] sm:$0xff] %vm606_vm0, %v5459_v17 }
 0x9ab   : > { %5643 = vst.msk [vmem:[#allocation2 + $0xa8] sm:$0xff] %vm606_vm0, %v5451_v5  ;;  %5965 = vrot.lane.b32.xlu1 %v5790_v13, %s7548_s21 }
 0x9b2   : > { %v5728_v36 = vld [vmem:[#allocation2 + $0xa1] ss:$4 sm:$0xff]  ;;  %v5760_v16 = vld [vmem:[#allocation2 + $0xa2] ss:$4 sm:$0xff]  ;;  %v5792_v2 = vld [vmem:[#allocation2 + $0xa3] ss:$4 sm:$0xff] }
 0x9b3   : > { %5839 = vrot.lane.b32.xlu0 %v5728_v36, %s7546_s14 }
 0x9b5   : > { %v6923_v45 = vpop.f32.mrb[24].mxu1 }
 0x9b6   : > { %v5472_v47 = vadd.f32 %v6923_v45, %v10626_v0  ;;  %v5463_v4 = vpop.f32.mrb[25].mxu1 }
 0x9b7   : > { %v5464_v26 = vadd.f32 %v10626_v0, %v5463_v4  ;;  %v6924_v57 = vpop.f32.mrb[26].mxu1  ;;  %5903 = vrot.lane.b32.xlu0 %v5760_v16, %s7547_s16 }
 0x9b8   : > { %5648 = vst.msk [vmem:[#allocation2 + $0xd0] sm:$0xff] %vm606_vm0, %v5472_v47  ;;  %v5475_v27 = vadd.f32 %v6924_v57, %v10626_v0  ;;  %v5466_v40 = vpop.f32.mrb[27].mxu1 }
 0x9b9   : > { %5646 = vst.msk [vmem:[#allocation2 + $0xc0] sm:$0xff] %vm606_vm0, %v5464_v26  ;;  %v5467_v35 = vadd.f32 %v10626_v0, %v5466_v40  ;;  %v5690_v40 = vld [vmem:[#allocation2 + $0x40] ss:$4 sm:$0xff] }
 0x9ba   : > { %5649 = vst.msk [vmem:[#allocation2 + $0xd8] sm:$0xff] %vm606_vm0, %v5475_v27 }
 0x9bb   : > { %5647 = vst.msk [vmem:[#allocation2 + $0xc8] sm:$0xff] %vm606_vm0, %v5467_v35  ;;  %5967 = vrot.lane.b32.xlu0 %v5792_v2, %s7548_s21 }
 0x9c2   : > { %v5730_v51 = vld [vmem:[#allocation2 + $0xc1] ss:$4 sm:$0xff]  ;;  %v5762_v7 = vld [vmem:[#allocation2 + $0xc2] ss:$4 sm:$0xff]  ;;  %v5794_v39 = vld [vmem:[#allocation2 + $0xc3] ss:$4 sm:$0xff] }
 0x9c3   : > { %5841 = vrot.lane.b32.xlu1 %v5730_v51, %s7546_s14 }
 0x9c5   : > { %v6927_v14 = vpop.f32.mrb[28].mxu1 }
 0x9c6   : > { %v5488_v28 = vadd.f32 %v6927_v14, %v10626_v0  ;;  %v5479_v18 = vpop.f32.mrb[29].mxu1 }
 0x9c7   : > { %v5480_v25 = vadd.f32 %v10626_v0, %v5479_v18  ;;  %v6928_v9 = vpop.f32.mrb[30].mxu1  ;;  %5905 = vrot.lane.b32.xlu1 %v5762_v7, %s7547_s16 }
 0x9c8   : > { %5652 = vst.msk [vmem:[#allocation2 + $0xf0] sm:$0xff] %vm606_vm0, %v5488_v28  ;;  %v5491_v15 = vadd.f32 %v6928_v9, %v10626_v0  ;;  %v5482_v53 = vpop.f32.mrb[31].mxu1 }
 0x9c9   : > { %5650 = vst.msk [vmem:[#allocation2 + $0xe0] sm:$0xff] %vm606_vm0, %v5480_v25  ;;  %v5483_v38 = vadd.f32 %v10626_v0, %v5482_v53 }
 0x9ca   : > { %5653 = vst.msk [vmem:[#allocation2 + $0xf8] sm:$0xff] %vm606_vm0, %v5491_v15 }
 0x9cb   : > { %5651 = vst.msk [vmem:[#allocation2 + $0xe8] sm:$0xff] %vm606_vm0, %v5483_v38  ;;  %5969 = vrot.lane.b32.xlu1 %v5794_v39, %s7548_s21 }
 0x9d2   : > { %v5732_v42 = vld [vmem:[#allocation2 + $0xe1] ss:$4 sm:$0xff]  ;;  %v5764_v61 = vld [vmem:[#allocation2 + $0xe2] ss:$4 sm:$0xff]  ;;  %v5796_v33 = vld [vmem:[#allocation2 + $0xe3] ss:$4 sm:$0xff] }
 0x9d3   : > { %5843 = vrot.lane.b32.xlu0 %v5732_v42, %s7546_s14 }
 0x9d5   : > { %v6931_v41 = vpop.f32.mrb[32].mxu1  ;;  %v5830_v20 = vpop.permute.xlu1 %5829 }
 0x9d6   : > { %v5504_v60 = vadd.f32 %v6931_v41, %v10626_v0  ;;  %v5495_v62 = vpop.f32.mrb[33].mxu1  ;;  %v6005_v30 = vsel %vm606_vm0, %v5686_v31, %v5830_v20 }
 0x9d7   : > { %v5496_v21 = vadd.f32 %v10626_v0, %v5495_v62  ;;  %v6932_v3 = vpop.f32.mrb[34].mxu1  ;;  %5907 = vrot.lane.b32.xlu0 %v5764_v61, %s7547_s16  ;;  %v5692_v62 = vld [vmem:[#allocation2 + $0x60] ss:$4 sm:$0xff] }
 0x9d8   : > { %5656 = vst.msk [vmem:[#allocation2 + $0x110] sm:$0xff] %vm606_vm0, %v5504_v60  ;;  %v5507_v54 = vadd.f32 %v6932_v3, %v10626_v0  ;;  %v5498_v19 = vpop.f32.mrb[35].mxu1 }
 0x9d9   : > { %5654 = vst.msk [vmem:[#allocation2 + $0x100] sm:$0xff] %vm606_vm0, %v5496_v21  ;;  %v5499_v37 = vadd.f32 %v10626_v0, %v5498_v19  ;;  %v5894_v23 = vpop.permute.xlu1 %5893 }
 0x9da   : > { %5657 = vst.msk [vmem:[#allocation2 + $0x118] sm:$0xff] %vm606_vm0, %v5507_v54  ;;  %v6022_v46 = vsel %vm6021_vm5, %v6005_v30, %v5894_v23 }
 0x9db   : > { %5655 = vst.msk [vmem:[#allocation2 + $0x108] sm:$0xff] %vm606_vm0, %v5499_v37  ;;  %5971 = vrot.lane.b32.xlu0 %v5796_v33, %s7548_s21 }
 0x9dd   : > { %v5958_v32 = vpop.permute.xlu1 %5957 }
 0x9de   : > { %v6039_v63 = vsel %vm6038_vm6, %v6022_v46, %v5958_v32 }
 0x9df   : > { %6055 = vst [vmem:[%s10742_s25] sm:$0xff] %v6039_v63 }
 0x9e2   : > { %v5734_v55 = vld [vmem:[#allocation2 + $0x101] ss:$4 sm:$0xff]  ;;  %v5766_v8 = vld [vmem:[#allocation2 + $0x102] ss:$4 sm:$0xff]  ;;  %v5798_v52 = vld [vmem:[#allocation2 + $0x103] ss:$4 sm:$0xff] }
 0x9e3   : > { %5845 = vrot.lane.b32.xlu1 %v5734_v55, %s7546_s14 }
 0x9e5   : > { %v6935_v12 = vpop.f32.mrb[36].mxu1  ;;  %v5832_v6 = vpop.permute.xlu0 %5831 }
 0x9e6   : > { %v5520_v48 = vadd.f32 %v6935_v12, %v10626_v0  ;;  %v5511_v44 = vpop.f32.mrb[37].mxu1  ;;  %v6006_v50 = vsel %vm606_vm0, %v5688_v59, %v5832_v6 }
 0x9e7   : > { %v5512_v58 = vadd.f32 %v10626_v0, %v5511_v44  ;;  %v6936_v43 = vpop.f32.mrb[38].mxu1  ;;  %5909 = vrot.lane.b32.xlu1 %v5766_v8, %s7547_s16  ;;  %v5694_v44 = vld [vmem:[#allocation2 + $0x80] ss:$4 sm:$0xff] }
 0x9e8   : > { %5660 = vst.msk [vmem:[#allocation2 + $0x130] sm:$0xff] %vm606_vm0, %v5520_v48  ;;  %v5523_v24 = vadd.f32 %v6936_v43, %v10626_v0  ;;  %v5514_v49 = vpop.f32.mrb[39].mxu1 }
 0x9e9   : > { %5658 = vst.msk [vmem:[#allocation2 + $0x120] sm:$0xff] %vm606_vm0, %v5512_v58  ;;  %v5515_v11 = vadd.f32 %v10626_v0, %v5514_v49  ;;  %v5896_v56 = vpop.permute.xlu0 %5895 }
 0x9ea   : > { %5661 = vst.msk [vmem:[#allocation2 + $0x138] sm:$0xff] %vm606_vm0, %v5523_v24  ;;  %v6023_v29 = vsel %vm6021_vm5, %v6006_v50, %v5896_v56 }
 0x9eb   : > { %5659 = vst.msk [vmem:[#allocation2 + $0x128] sm:$0xff] %vm606_vm0, %v5515_v11  ;;  %5973 = vrot.lane.b32.xlu1 %v5798_v52, %s7548_s21 }
 0x9ed   : > { %v5960_v22 = vpop.permute.xlu0 %5959 }
 0x9ee   : > { %v6040_v34 = vsel %vm6038_vm6, %v6023_v29, %v5960_v22 }
 0x9ef   : > { %6056 = vst [vmem:[%s10742_s25 + $0x8] sm:$0xff] %v6040_v34 }
 0x9f2   : > { %v5736_v1 = vld [vmem:[#allocation2 + $0x121] ss:$4 sm:$0xff]  ;;  %v5768_v36 = vld [vmem:[#allocation2 + $0x122] ss:$4 sm:$0xff]  ;;  %v5800_v27 = vld [vmem:[#allocation2 + $0x123] ss:$4 sm:$0xff] }
 0x9f3   : > { %5847 = vrot.lane.b32.xlu0 %v5736_v1, %s7546_s14 }
 0x9f5   : > { %v6939_v17 = vpop.f32.mrb[40].mxu1  ;;  %v5834_v10 = vpop.permute.xlu1 %5833 }
 0x9f6   : > { %v5536_v5 = vadd.f32 %v6939_v17, %v10626_v0  ;;  %v5527_v13 = vpop.f32.mrb[41].mxu1  ;;  %v6007_v35 = vsel %vm606_vm0, %v5690_v40, %v5834_v10 }
 0x9f7   : > { %v5528_v45 = vadd.f32 %v10626_v0, %v5527_v13  ;;  %v6940_v47 = vpop.f32.mrb[42].mxu1  ;;  %5911 = vrot.lane.b32.xlu0 %v5768_v36, %s7547_s16  ;;  %v5696_v13 = vld [vmem:[#allocation2 + $0xa0] ss:$4 sm:$0xff] }
 0x9f8   : > { %5664 = vst.msk [vmem:[#allocation2 + $0x150] sm:$0xff] %vm606_vm0, %v5536_v5  ;;  %v5539_v4 = vadd.f32 %v6940_v47, %v10626_v0  ;;  %v5530_v16 = vpop.f32.mrb[43].mxu1 }
 0x9f9   : > { %5662 = vst.msk [vmem:[#allocation2 + $0x140] sm:$0xff] %vm606_vm0, %v5528_v45  ;;  %v5531_v26 = vadd.f32 %v10626_v0, %v5530_v16  ;;  %v5898_v57 = vpop.permute.xlu1 %5897 }
 0x9fa   : > { %5665 = vst.msk [vmem:[#allocation2 + $0x158] sm:$0xff] %vm606_vm0, %v5539_v4  ;;  %v6024_v2 = vsel %vm6021_vm5, %v6007_v35, %v5898_v57 }
 0x9fb   : > { %5663 = vst.msk [vmem:[#allocation2 + $0x148] sm:$0xff] %vm606_vm0, %v5531_v26  ;;  %5975 = vrot.lane.b32.xlu0 %v5800_v27, %s7548_s21 }
 0x9fd   : > { %v5962_v51 = vpop.permute.xlu1 %5961 }
 0x9fe   : > { %v6041_v14 = vsel %vm6038_vm6, %v6024_v2, %v5962_v51 }
 0x9ff   : > { %6057 = vst [vmem:[%s10742_s25 + $0x10] sm:$0xff] %v6041_v14 }
 0xa02   : > { %v5738_v28 = vld [vmem:[#allocation2 + $0x141] ss:$4 sm:$0xff]  ;;  %v5770_v15 = vld [vmem:[#allocation2 + $0x142] ss:$4 sm:$0xff]  ;;  %v5802_v60 = vld [vmem:[#allocation2 + $0x143] ss:$4 sm:$0xff] }
 0xa03   : > { %5849 = vrot.lane.b32.xlu1 %v5738_v28, %s7546_s14 }
 0xa05   : > { %v6943_v18 = vpop.f32.mrb[44].mxu1  ;;  %v5836_v7 = vpop.permute.xlu0 %5835 }
 0xa06   : > { %v5552_v25 = vadd.f32 %v6943_v18, %v10626_v0  ;;  %v5543_v9 = vpop.f32.mrb[45].mxu1  ;;  %v6008_v61 = vsel %vm606_vm0, %v5692_v62, %v5836_v7 }
 0xa07   : > { %v5544_v53 = vadd.f32 %v10626_v0, %v5543_v9  ;;  %v6944_v38 = vpop.f32.mrb[46].mxu1  ;;  %5913 = vrot.lane.b32.xlu1 %v5770_v15, %s7547_s16  ;;  %v5698_v9 = vld [vmem:[#allocation2 + $0xc0] ss:$4 sm:$0xff] }
 0xa08   : > { %5668 = vst.msk [vmem:[#allocation2 + $0x170] sm:$0xff] %vm606_vm0, %v5552_v25  ;;  %v5555_v39 = vadd.f32 %v6944_v38, %v10626_v0  ;;  %v5546_v42 = vpop.f32.mrb[47].mxu1 }
 0xa09   : > { %5666 = vst.msk [vmem:[#allocation2 + $0x160] sm:$0xff] %vm606_vm0, %v5544_v53  ;;  %v5547_v41 = vadd.f32 %v10626_v0, %v5546_v42  ;;  %v5900_v20 = vpop.permute.xlu0 %5899 }
 0xa0a   : > { %5669 = vst.msk [vmem:[#allocation2 + $0x178] sm:$0xff] %vm606_vm0, %v5555_v39  ;;  %v6025_v21 = vsel %vm6021_vm5, %v6008_v61, %v5900_v20 }
 0xa0b   : > { %5667 = vst.msk [vmem:[#allocation2 + $0x168] sm:$0xff] %vm606_vm0, %v5547_v41  ;;  %5977 = vrot.lane.b32.xlu1 %v5802_v60, %s7548_s21 }
 0xa0d   : > { %v5964_v3 = vpop.permute.xlu0 %5963 }
 0xa0e   : > { %v6042_v54 = vsel %vm6038_vm6, %v6025_v21, %v5964_v3 }
 0xa0f   : > { %6058 = vst [vmem:[%s10742_s25 + $0x18] sm:$0xff] %v6042_v54 }
 0xa12   : > { %v5740_v19 = vld [vmem:[#allocation2 + $0x161] ss:$4 sm:$0xff]  ;;  %v5772_v30 = vld [vmem:[#allocation2 + $0x162] ss:$4 sm:$0xff]  ;;  %v5804_v48 = vld [vmem:[#allocation2 + $0x163] ss:$4 sm:$0xff] }
 0xa13   : > { %5851 = vrot.lane.b32.xlu0 %v5740_v19, %s7546_s14 }
 0xa15   : > { %v6947_v37 = vpop.f32.mrb[48].mxu1  ;;  %v5838_v23 = vpop.permute.xlu1 %5837 }
 0xa16   : > { %v5568_v33 = vadd.f32 %v6947_v37, %v10626_v0  ;;  %v5559_v31 = vpop.f32.mrb[49].mxu1  ;;  %v6009_v8 = vsel %vm606_vm0, %v5694_v44, %v5838_v23  ;;  %v5702_v44 = vld [vmem:[#allocation2 + $0x100] ss:$4 sm:$0xff] }
 0xa17   : > { %v5560_v46 = vadd.f32 %v10626_v0, %v5559_v31  ;;  %v6948_v32 = vpop.f32.mrb[50].mxu1  ;;  %5915 = vrot.lane.b32.xlu0 %v5772_v30, %s7547_s16  ;;  %v5700_v31 = vld [vmem:[#allocation2 + $0xe0] ss:$4 sm:$0xff] }
 0xa18   : > { %5672 = vst.msk [vmem:[#allocation2 + $0x190] sm:$0xff] %vm606_vm0, %v5568_v33  ;;  %v5571_v63 = vadd.f32 %v6948_v32, %v10626_v0  ;;  %v5562_v55 = vpop.f32.mrb[51].mxu1 }
 0xa19   : > { %5670 = vst.msk [vmem:[#allocation2 + $0x180] sm:$0xff] %vm606_vm0, %v5560_v46  ;;  %v5563_v12 = vadd.f32 %v10626_v0, %v5562_v55  ;;  %v5902_v6 = vpop.permute.xlu1 %5901 }
 0xa1a   : > { %5673 = vst.msk [vmem:[#allocation2 + $0x198] sm:$0xff] %vm606_vm0, %v5571_v63  ;;  %v6026_v58 = vsel %vm6021_vm5, %v6009_v8, %v5902_v6 }
 0xa1b   : > { %5671 = vst.msk [vmem:[#allocation2 + $0x188] sm:$0xff] %vm606_vm0, %v5563_v12  ;;  %5979 = vrot.lane.b32.xlu0 %v5804_v48, %s7548_s21 }
 0xa1d   : > { %v5966_v43 = vpop.permute.xlu1 %5965 }
 0xa1e   : > { %v6043_v24 = vsel %vm6038_vm6, %v6026_v58, %v5966_v43 }
 0xa1f   : > { %6059 = vst [vmem:[%s10742_s25 + $0x20] sm:$0xff] %v6043_v24 }
 0xa22   : > { %v5742_v49 = vld [vmem:[#allocation2 + $0x181] ss:$4 sm:$0xff]  ;;  %v5774_v50 = vld [vmem:[#allocation2 + $0x182] ss:$4 sm:$0xff]  ;;  %v5806_v5 = vld [vmem:[#allocation2 + $0x183] ss:$4 sm:$0xff] }
 0xa23   : > { %5853 = vrot.lane.b32.xlu1 %v5742_v49, %s7546_s14 }
 0xa25   : > { %v6951_v11 = vpop.f32.mrb[52].mxu1  ;;  %v5840_v56 = vpop.permute.xlu0 %5839 }
 0xa26   : > { %v5584_v52 = vadd.f32 %v6951_v11, %v10626_v0  ;;  %v5575_v59 = vpop.f32.mrb[53].mxu1  ;;  %v6010_v36 = vsel %vm606_vm0, %v5696_v13, %v5840_v56  ;;  %v5704_v56 = vld [vmem:[#allocation2 + $0x120] ss:$4 sm:$0xff] }
 0xa27   : > { %v5576_v29 = vadd.f32 %v10626_v0, %v5575_v59  ;;  %v6952_v22 = vpop.f32.mrb[54].mxu1  ;;  %5917 = vrot.lane.b32.xlu1 %v5774_v50, %s7547_s16 }
 0xa28   : > { %5676 = vst.msk [vmem:[#allocation2 + $0x1b0] sm:$0xff] %vm606_vm0, %v5584_v52  ;;  %v5587_v34 = vadd.f32 %v6952_v22, %v10626_v0  ;;  %v5578_v1 = vpop.f32.mrb[55].mxu1 }
 0xa29   : > { %5674 = vst.msk [vmem:[#allocation2 + $0x1a0] sm:$0xff] %vm606_vm0, %v5576_v29  ;;  %v5579_v17 = vadd.f32 %v10626_v0, %v5578_v1  ;;  %v5904_v10 = vpop.permute.xlu0 %5903  ;;  %v5706_v1 = vld [vmem:[#allocation2 + $0x140] ss:$4 sm:$0xff] }
 0xa2a   : > { %5677 = vst.msk [vmem:[#allocation2 + $0x1b8] sm:$0xff] %vm606_vm0, %v5587_v34  ;;  %v6027_v45 = vsel %vm6021_vm5, %v6010_v36, %v5904_v10 }
 0xa2b   : > { %5675 = vst.msk [vmem:[#allocation2 + $0x1a8] sm:$0xff] %vm606_vm0, %v5579_v17  ;;  %5981 = vrot.lane.b32.xlu1 %v5806_v5, %s7548_s21 }
 0xa2d   : > { %v5968_v47 = vpop.permute.xlu0 %5967 }
 0xa2e   : > { %v6044_v4 = vsel %vm6038_vm6, %v6027_v45, %v5968_v47  ;;  %v5708_v47 = vld [vmem:[#allocation2 + $0x160] ss:$4 sm:$0xff] }
 0xa2f   : > { %6060 = vst [vmem:[%s10742_s25 + $0x28] sm:$0xff] %v6044_v4 }
 0xa32   : > { %v5744_v16 = vld [vmem:[#allocation2 + $0x1a1] ss:$4 sm:$0xff]  ;;  %v5776_v35 = vld [vmem:[#allocation2 + $0x1a2] ss:$4 sm:$0xff]  ;;  %v5808_v25 = vld [vmem:[#allocation2 + $0x1a3] ss:$4 sm:$0xff] }
 0xa33   : > { %5855 = vrot.lane.b32.xlu0 %v5744_v16, %s7546_s14 }
 0xa35   : > { %v6955_v26 = vpop.f32.mrb[56].mxu1  ;;  %v5842_v57 = vpop.permute.xlu1 %5841 }
 0xa36   : > { %v5600_v27 = vadd.f32 %v6955_v26, %v10626_v0  ;;  %v5591_v40 = vpop.f32.mrb[57].mxu1  ;;  %v6011_v15 = vsel %vm606_vm0, %v5698_v9, %v5842_v57 }
 0xa37   : > { %v5592_v2 = vadd.f32 %v10626_v0, %v5591_v40  ;;  %v6956_v51 = vpop.f32.mrb[58].mxu1  ;;  %5919 = vrot.lane.b32.xlu0 %v5776_v35, %s7547_s16  ;;  %v5710_v35 = vld [vmem:[#allocation2 + $0x180] ss:$4 sm:$0xff] }
 0xa38   : > { %5680 = vst.msk [vmem:[#allocation2 + $0x1d0] sm:$0xff] %vm606_vm0, %v5600_v27  ;;  %v5603_v14 = vadd.f32 %v6956_v51, %v10626_v0  ;;  %v5594_v28 = vpop.f32.mrb[59].mxu1 }
 0xa39   : > { %5678 = vst.msk [vmem:[#allocation2 + $0x1c0] sm:$0xff] %vm606_vm0, %v5592_v2  ;;  %v5595_v18 = vadd.f32 %v10626_v0, %v5594_v28  ;;  %v5906_v7 = vpop.permute.xlu1 %5905 }
 0xa3a   : > { %5681 = vst.msk [vmem:[#allocation2 + $0x1d8] sm:$0xff] %vm606_vm0, %v5603_v14  ;;  %v6028_v53 = vsel %vm6021_vm5, %v6011_v15, %v5906_v7 }
 0xa3b   : > { %5679 = vst.msk [vmem:[#allocation2 + $0x1c8] sm:$0xff] %vm606_vm0, %v5595_v18  ;;  %5983 = vrot.lane.b32.xlu0 %v5808_v25, %s7548_s21  ;;  %v5712_v25 = vld [vmem:[#allocation2 + $0x1a0] ss:$4 sm:$0xff] }
 0xa3d   : > { %v5970_v38 = vpop.permute.xlu1 %5969 }
 0xa3e   : > { %v6045_v39 = vsel %vm6038_vm6, %v6028_v53, %v5970_v38 }
 0xa3f   : > { %6061 = vst [vmem:[%s10742_s25 + $0x30] sm:$0xff] %v6045_v39 }
 0xa42   : > { %v5746_v42 = vld [vmem:[#allocation2 + $0x1c1] ss:$4 sm:$0xff]  ;;  %v5778_v61 = vld [vmem:[#allocation2 + $0x1c2] ss:$4 sm:$0xff]  ;;  %v5810_v33 = vld [vmem:[#allocation2 + $0x1c3] ss:$4 sm:$0xff] }
 0xa43   : > { %5857 = vrot.lane.b32.xlu1 %v5746_v42, %s7546_s14 }
 0xa45   : > { %v5844_v41 = vpop.permute.xlu0 %5843  ;;  %v6959_v20 = vpop.f32.mrb[60].mxu1 }
 0xa46   : > { %v5616_v60 = vadd.f32 %v6959_v20, %v10626_v0  ;;  %v5607_v62 = vpop.f32.mrb[61].mxu1  ;;  %v6012_v30 = vsel %vm606_vm0, %v5700_v31, %v5844_v41  ;;  %v5714_v41 = vld [vmem:[#allocation2 + $0x1c0] ss:$4 sm:$0xff] }
 0xa47   : > { %v5608_v21 = vadd.f32 %v10626_v0, %v5607_v62  ;;  %5921 = vrot.lane.b32.xlu1 %v5778_v61, %s7547_s16  ;;  %v6960_v3 = vpop.f32.mrb[62].mxu1 }
 0xa48   : > { %5684 = vst.msk [vmem:[#allocation2 + $0x1f0] sm:$0xff] %vm606_vm0, %v5616_v60  ;;  %v5619_v54 = vadd.f32 %v6960_v3, %v10626_v0  ;;  %v5610_v19 = vpop.f32.mrb[63].mxu1 }
 0xa49   : > { %5682 = vst.msk [vmem:[#allocation2 + $0x1e0] sm:$0xff] %vm606_vm0, %v5608_v21  ;;  %v5611_v37 = vadd.f32 %v10626_v0, %v5610_v19  ;;  %v5908_v23 = vpop.permute.xlu0 %5907 }
 0xa4a   : > { %5685 = vst.msk [vmem:[#allocation2 + $0x1f8] sm:$0xff] %vm606_vm0, %v5619_v54  ;;  %v6029_v46 = vsel %vm6021_vm5, %v6012_v30, %v5908_v23 }
 0xa4b   : > { %5683 = vst.msk [vmem:[#allocation2 + $0x1e8] sm:$0xff] %vm606_vm0, %v5611_v37  ;;  %5985 = vrot.lane.b32.xlu1 %v5810_v33, %s7548_s21 }
 0xa4d   : > { %v5972_v32 = vpop.permute.xlu0 %5971 }
 0xa4e   : > { %v6046_v63 = vsel %vm6038_vm6, %v6029_v46, %v5972_v32 }
 0xa4f   : > { %6062 = vst [vmem:[%s10742_s25 + $0x38] sm:$0xff] %v6046_v63 }
 0xa52   : > { %v5748_v55 = vld [vmem:[#allocation2 + $0x1e1] ss:$4 sm:$0xff]  ;;  %v5780_v12 = vld [vmem:[#allocation2 + $0x1e2] ss:$4 sm:$0xff]  ;;  %v5812_v48 = vld [vmem:[#allocation2 + $0x1e3] ss:$4 sm:$0xff] }
 0xa53   : > { %5859 = vrot.lane.b32.xlu0 %v5748_v55, %s7546_s14  ;;  %v5716_v54 = vld [vmem:[#allocation2 + $0x1e0] ss:$4 sm:$0xff]  ;;  %s7478_s14 = scalar_lea.vmem %s10890_s27, 2048 }
 0xa54   : > { %p7479_p11 = scmp.ne.s32.totalorder %s10890_s27, %s7478_s14 }
 0xa55   : > { %v5846_v0 = vpop.permute.xlu1 %5845 }
 0xa56   : > { %v6013_v8 = vsel %vm606_vm0, %v5702_v44, %v5846_v0  ;;  %p7480_p12 = pnand %p7479_p11, %p7639_p5 }
 0xa57   : > { %5923 = vrot.lane.b32.xlu0 %v5780_v12, %s7547_s16  ;;  %s7549_s16 = smov [#allocation3]  }
 0xa58   : > { %p7481_p13 = pneg %p7480_p12 }
 0xa59   : > { %v5910_v6 = vpop.permute.xlu1 %5909 }
 0xa5a   : > { %v6030_v58 = vsel %vm6021_vm5, %v6013_v8, %v5910_v6 }
 0xa5b   : > { %5987 = vrot.lane.b32.xlu0 %v5812_v48, %s7548_s21  ;;  %s7482_s21 = sshll.u32 %s7549_s16, 4  ;;  %s7483_s21 = int_to_ptr.vmem [resolvable:$false] %s7482_s21 }
 0xa5c   : > { %s7484_s23 = scalar_lea.vmem %s7483_s21, 4096  ;;  %p7485_p0 = scmp.lt.s32.totalorder %s10890_s27, %s7483_s21 }
 0xa5d   : > { %v5974_v43 = vpop.permute.xlu1 %5973  ;;  %p7486_p1 = scmp.lt.s32.totalorder %s7484_s23, %s7478_s14 }
 0xa5e   : > { %v6047_v24 = vsel %vm6038_vm6, %v6030_v58, %v5974_v43 }
 0xa5f   : > { %6063 = vst [vmem:[%s10742_s25 + $0x40] sm:$0xff] %v6047_v24  ;;  %p7487_p2 = por %p7486_p1, %p7485_p0 }
 0xa61   : > { %p7488_p3 = pnand %p7487_p2, %p7481_p13 }
 0xa65   : > { %v5848_v49 = vpop.permute.xlu0 %5847 }
 0xa66   : > { %v6014_v52 = vsel %vm606_vm0, %v5704_v56, %v5848_v49 }
 0xa69   : > { %v5912_v11 = vpop.permute.xlu0 %5911 }
 0xa6a   : > { %v6031_v59 = vsel %vm6021_vm5, %v6014_v52, %v5912_v11 }
 0xa6d   : > { %v5976_v50 = vpop.permute.xlu0 %5975 }
 0xa6e   : > { %v6048_v29 = vsel %vm6038_vm6, %v6031_v59, %v5976_v50 }
 0xa6f   : > { %6064 = vst [vmem:[%s10742_s25 + $0x48] sm:$0xff] %v6048_v29 }
 0xa75   : > { %v5850_v22 = vpop.permute.xlu1 %5849 }
 0xa76   : > { %v6015_v17 = vsel %vm606_vm0, %v5706_v1, %v5850_v22 }
 0xa79   : > { %v5914_v34 = vpop.permute.xlu1 %5913 }
 0xa7a   : > { %v6032_v10 = vsel %vm6021_vm5, %v6015_v17, %v5914_v34 }
 0xa7d   : > { %v5978_v5 = vpop.permute.xlu1 %5977 }
 0xa7e   : > { %v6049_v13 = vsel %vm6038_vm6, %v6032_v10, %v5978_v5 }
 0xa7f   : > { %6065 = vst [vmem:[%s10742_s25 + $0x50] sm:$0xff] %v6049_v13 }
 0xa85   : > { %v5852_v36 = vpop.permute.xlu0 %5851 }
 0xa86   : > { %v6016_v4 = vsel %vm606_vm0, %v5708_v47, %v5852_v36 }
 0xa89   : > { %v5916_v45 = vpop.permute.xlu0 %5915 }
 0xa8a   : > { %v6033_v16 = vsel %vm6021_vm5, %v6016_v4, %v5916_v45 }
 0xa8d   : > { %v5980_v26 = vpop.permute.xlu0 %5979 }
 0xa8e   : > { %v6050_v57 = vsel %vm6038_vm6, %v6033_v16, %v5980_v26 }
 0xa8f   : > { %6066 = vst [vmem:[%s10742_s25 + $0x58] sm:$0xff] %v6050_v57 }
 0xa95   : > { %v5854_v27 = vpop.permute.xlu1 %5853 }
 0xa96   : > { %v6017_v2 = vsel %vm606_vm0, %v5710_v35, %v5854_v27 }
 0xa99   : > { %v5918_v40 = vpop.permute.xlu1 %5917 }
 0xa9a   : > { %v6034_v51 = vsel %vm6021_vm5, %v6017_v2, %v5918_v40 }
 0xa9d   : > { %v5982_v14 = vpop.permute.xlu1 %5981 }
 0xa9e   : > { %v6051_v28 = vsel %vm6038_vm6, %v6034_v51, %v5982_v14 }
 0xa9f   : > { %6067 = vst [vmem:[%s10742_s25 + $0x60] sm:$0xff] %v6051_v28 }
 0xaa5   : > { %v5856_v18 = vpop.permute.xlu0 %5855 }
 0xaa6   : > { %v6018_v9 = vsel %vm606_vm0, %v5712_v25, %v5856_v18 }
 0xaa9   : > { %v5920_v7 = vpop.permute.xlu0 %5919 }
 0xaaa   : > { %v6035_v15 = vsel %vm6021_vm5, %v6018_v9, %v5920_v7 }
 0xaad   : > { %v5984_v53 = vpop.permute.xlu0 %5983 }
 0xaae   : > { %v6052_v38 = vsel %vm6038_vm6, %v6035_v15, %v5984_v53 }
 0xaaf   : > { %6068 = vst [vmem:[%s10742_s25 + $0x68] sm:$0xff] %v6052_v38 }
 0xab5   : > { %v5858_v39 = vpop.permute.xlu1 %5857 }
 0xab6   : > { %v6019_v20 = vsel %vm606_vm0, %v5714_v41, %v5858_v39 }
 0xab9   : > { %v5922_v42 = vpop.permute.xlu1 %5921 }
 0xaba   : > { %v6036_v60 = vsel %vm6021_vm5, %v6019_v20, %v5922_v42 }
 0xabd   : > { %v5986_v62 = vpop.permute.xlu1 %5985 }
 0xabe   : > { %v6053_v61 = vsel %vm6038_vm6, %v6036_v60, %v5986_v62 }
 0xabf   : > { %6069 = vst [vmem:[%s10742_s25 + $0x70] sm:$0xff] %v6053_v61 }
 0xac5   : > { %v5860_v21 = vpop.permute.xlu0 %5859 }
 0xac6   : > { %v6020_v19 = vsel %vm606_vm0, %v5716_v54, %v5860_v21 }
 0xac9   : > { %v5924_v3 = vpop.permute.xlu0 %5923 }
 0xaca   : > { %v6037_v37 = vsel %vm6021_vm5, %v6020_v19, %v5924_v3 }
 0xacd   : > { %v5988_v23 = vpop.permute.xlu0 %5987 }
 0xace   : > { %v6054_v33 = vsel %vm6038_vm6, %v6037_v37, %v5988_v23 }
 0xacf   : > { %6070 = vst [vmem:[%s10742_s25 + $0x78] sm:$0xff] %v6054_v33 }
 0xad0   : > { %7491 = shalt.err (!%p7488_p3)
}
 0xad1   : > { %s7492_s22 = scalar_lea.hbm %s10887_s24, 2048  ;;  %s7496_s28 = scalar_lea.hbm %s10947_s9, 4096 }
 0xad2   : > { %p7493_p4 = scmp.ne.s32.totalorder %s10887_s24, %s7492_s22  ;;  %p7497_p9 = scmp.lt.u32.totalorder %s10887_s24, %s10947_s9 }
 0xad3   : > { %p7498_p10 = scmp.lt.u32.totalorder %s7496_s28, %s7492_s22  ;;  %p7500_p12 = scmp.lt.u32.totalorder %s7492_s22, %s10887_s24 }
 0xad4   : > { %p7494_p7 = pnand %p7493_p4, %p7639_p5 }
 0xad5   : > { %p7499_p11 = por %p7498_p10, %p7497_p9 }
 0xad6   : > { %p7495_p8 = pneg %p7494_p7 }
 0xad7   : > { %p7501_p13 = por %p7500_p12, %p7499_p11 }
 0xad9   : > { %p7502_p0 = pnand %p7501_p13, %p7495_p8 }
 0xadb   : > { %7505 = shalt.err (!%p7502_p0)
}
 0xadc   : > { %s7550_s14 = smov 128  }
 0xadd   : > { %6977 = dma.vmem_to_hbm [thread:$0]  (%p7639_p5), %s10890_s27, 2048, %s10887_s24, %s10896_s13, %s7550_s14, %s7550_s14, %s7544_s17  }
 0xade PF: > { %p6983_p1 = scmp.ge.s32.totalorder %s7540_s12, 2  ;;  %s6101_s21 = sand.u32 1, %s7528_s30  }
 0xadf   : > { %s6102_s23 = scalar_lea.sflag [#allocation4], %s6101_s21 }
 0xae0   : > { %p6980_p2 = pnand %p6983_p1, %p7643_p6 }
 0xae2   : > { %7523 = dma.done.wait (!%p6980_p2), %s6102_s23, 2048  }
 0xae3   : > { %7525 = vsyncadd (!%p6980_p2), %s6102_s23, 4294965248  ;;  %p19_p3 = scmp.ge.s32.totalorder %s7626_s15, 4   ;;  %s11544_s30 = smov %s7532_s10 }
 0xae4   : > { %s11545_s10 = smov %s7536_s11  ;;  %s11546_s11 = smov %s7637_s18 }
 0xae5   : > { %s11547_s12 = smov %s7626_s15  ;;  %21 = sbr.rel (!%p19_p3) target bundleno = 3 (0x3), region = 157 }
 0xaec   :  { %6107 = vsyncpa [#allocation4], 1 }
 0xaed   :  { %6109 = vsyncpa [#allocation4 + $0x1], 1 }

</bundles_post_ra>
